<compile_context>
chip_gen: v7x
topology: tpu7x:2x2x1
jax: 0.10.0
libtpu: 0.0.40
codegen_flags: <defaults>
</compile_context>

<pallas_src>
import jax
import jax.numpy as jnp
from jax import lax
from jax.experimental import pallas as pl
from jax.experimental.pallas import tpu as pltpu


_VMEM = pl.BlockSpec(memory_space=pltpu.MemorySpace.VMEM)


# ---------------------------------------------------------------------------
# Fused kernel factory
# ---------------------------------------------------------------------------
def _make_fused_kernel(num_layers, T, H, P):
    """Build the fused LSTM(+head) kernel for static (num_layers, T, H, P)."""
    G = 4 * H  # fused gate width (i|f|g|o)

    def kernel(*refs):
        x_ref = refs[0]                                  # (T, D_in)
        layer_refs = refs[1:1 + 3 * num_layers]          # per layer: wih, whh, b
        wh_ref = refs[1 + 3 * num_layers]                # (1, H) head weight
        bh_ref = refs[2 + 3 * num_layers]                # (1, 1) head bias
        out_ref = refs[3 + 3 * num_layers]               # (P, 1)
        pre0_scr = refs[4 + 3 * num_layers]              # (T, G) scratch
        htail_scr = refs[5 + 3 * num_layers]             # (P, H) scratch

        # Hoist every weight / bias load out of the recurrence (done once).
        wih = [layer_refs[3 * l + 0][...] for l in range(num_layers)]
        whh = [layer_refs[3 * l + 1][...] for l in range(num_layers)]
        bias = [layer_refs[3 * l + 2][...] for l in range(num_layers)]
        w_head = wh_ref[...]
        b_head = bh_ref[...]

        # Layer-0 input projection for the WHOLE sequence: one MXU matmul,
        # outside the serial recurrence.
        pre0_scr[...] = (
            jnp.dot(x_ref[...], wih[0], preferred_element_type=jnp.float32)
            + bias[0])

        # Lane mask selecting the 'g' gate (tanh) inside the fused 4H vector.
        lane = lax.broadcasted_iota(jnp.int32, (1, G), 1)
        g_mask = (lane >= 2 * H) & (lane < 3 * H)

        def cell(pre, c):
            # pre: (1, G) fused pre-activation [i|f|g|o]
            # c:   (1, G) cell state; only lanes [0, H) are meaningful.
            # Full-width transcendentals on the EUP (its slot is otherwise idle),
            # gate selection with one VPU select, alignment via XLU lane rolls.
            act = jnp.where(g_mask, jnp.tanh(pre), jax.nn.sigmoid(pre))
            f_al = pltpu.roll(act, shift=3 * H, axis=1)   # f -> lanes [0, H)
            g_al = pltpu.roll(act, shift=2 * H, axis=1)   # g -> lanes [0, H)
            o_al = pltpu.roll(act, shift=H, axis=1)       # o -> lanes [0, H)
            c_new = f_al * c + act * g_al                 # i == act on lanes [0,H)
            h_full = o_al * jnp.tanh(c_new)
            return h_full[:, :H], c_new                   # (1, H), (1, G)

        # Recurrent state lives in vregs (Python locals), not VMEM scratch.
        h_state = [jnp.zeros((1, H), jnp.float32) for _ in range(num_layers)]
        c_state = [jnp.zeros((1, G), jnp.float32) for _ in range(num_layers)]
        h_hist = [[None] * T for _ in range(num_layers)]

        # Fully unrolled wavefront: at wave step t, layer l processes time t-l,
        # so adjacent layers' cells in one region are independent and can be
        # overlapped by the scheduler.
        for t in range(T + num_layers - 1):
            for l in range(num_layers):
                s = t - l
                if s < 0 or s >= T:
                    continue
                if l == 0:
                    xpre = pre0_scr[pl.ds(s, 1), :]                    # (1, G)
                else:
                    xpre = (jnp.dot(h_hist[l - 1][s], wih[l],
                                    preferred_element_type=jnp.float32)
                            + bias[l])
                pre = xpre + jnp.dot(h_state[l], whh[l],
                                     preferred_element_type=jnp.float32)
                h_new, c_new = cell(pre, c_state[l])
                h_state[l] = h_new
                c_state[l] = c_new
                h_hist[l][s] = h_new
                # Keep only the tail of the last layer for the head.
                if l == num_layers - 1 and s >= T - P:
                    htail_scr[pl.ds(s - (T - P), 1), :] = h_new

        # Linear head (output_size == 1): VPU multiply + lane reduce on just
        # the last P rows — no MXU drain, no extra kernel launch.
        h_tail = htail_scr[...]                                        # (P, H)
        preds = jnp.sum(h_tail * w_head, axis=-1, keepdims=True) + b_head
        out_ref[...] = preds

    return kernel


# ---------------------------------------------------------------------------
# Wrapper
# ---------------------------------------------------------------------------
def my_lstm_forward(input_seq, params, predict_steps):
    """Mirrors MyLstm.forward with zero initial (h, c)."""
    T = input_seq.shape[0]
    layers = params["layers"]
    num_layers = len(layers)
    H = params["hidden"]
    G = 4 * H
    assert params["head_w"].shape[0] == 1, "output_size must be 1 (torch .view(T))"
    assert predict_steps <= T

    flat_inputs = [input_seq]
    for (wih, whh, b) in layers:
        flat_inputs += [wih, whh, b]
    flat_inputs += [params["head_w"], params["head_b"]]

    kernel = _make_fused_kernel(num_layers, T, H, predict_steps)
    preds = pl.pallas_call(
        kernel,
        out_shape=jax.ShapeDtypeStruct((predict_steps, 1), jnp.float32),
        in_specs=[_VMEM] * len(flat_inputs),
        out_specs=_VMEM,
        scratch_shapes=[
            pltpu.VMEM((T, G), jnp.float32),              # layer-0 pre-activations
            pltpu.VMEM((predict_steps, H), jnp.float32),  # last-layer tail h's
        ],
    )(*flat_inputs)
    return preds.reshape(-1)


# ---------------------------------------------------------------------------
# Deterministic parameter initialization (PyTorch-style uniform(-k, k))
# ---------------------------------------------------------------------------
def init_params(key, input_size, hidden, num_layers, output_size):
    assert output_size == 1, "forward() .view(len(input_seq)) requires output_size == 1"
    k = hidden ** -0.5
    layers = []
    for layer in range(num_layers):
        d_in = input_size if layer == 0 else hidden
        key, k1, k2, k3, k4 = jax.random.split(key, 5)
        w_ih = jax.random.uniform(k1, (4 * hidden, d_in), jnp.float32, -k, k)
        w_hh = jax.random.uniform(k2, (4 * hidden, hidden), jnp.float32, -k, k)
        b_ih = jax.random.uniform(k3, (4 * hidden,), jnp.float32, -k, k)
        b_hh = jax.random.uniform(k4, (4 * hidden,), jnp.float32, -k, k)
        # PyTorch layout: rows are [i; f; g; o] chunks of size H.
        # Fused layout: transpose so one matmul gives the (1, 4H) pre-activation.
        wih = w_ih.T                                   # (d_in, 4H)
        whh = w_hh.T                                   # (H, 4H)
        b = (b_ih + b_hh).reshape(1, 4 * hidden)       # (1, 4H)
        layers.append((wih, whh, b))
    key, k5, k6 = jax.random.split(key, 3)
    lin_w = jax.random.uniform(k5, (output_size, hidden), jnp.float32, -k, k)
    lin_b = jax.random.uniform(k6, (output_size,), jnp.float32, -k, k)
    return {
        "layers": layers,
        "head_w": lin_w,                 # (1, H)
        "head_b": lin_b.reshape(1, 1),   # (1, 1)
        "hidden": hidden,
    }


# ---------------------------------------------------------------------------
# Pure-JAX reference (correctness sanity check)
# ---------------------------------------------------------------------------
def ref_forward(input_seq, params, predict_steps):
    H = params["hidden"]
    h_seq = input_seq
    for (wih, whh, b) in params["layers"]:
        def step(carry, x_t, wih=wih, whh=whh, b=b):
            h, c = carry
            pre = x_t[None, :] @ wih + h @ whh + b
            i = jax.nn.sigmoid(pre[:, 0 * H:1 * H])
            f = jax.nn.sigmoid(pre[:, 1 * H:2 * H])
            g = jnp.tanh(pre[:, 2 * H:3 * H])
            o = jax.nn.sigmoid(pre[:, 3 * H:4 * H])
            c = f * c + i * g
            h = o * jnp.tanh(c)
            return (h, c), h[0]

        (_, _), h_seq = lax.scan(
            step,
            (jnp.zeros((1, H), jnp.float32), jnp.zeros((1, H), jnp.float32)),
            h_seq)
    preds = h_seq @ params["head_w"].T + params["head_b"]   # (T, 1)
    return preds.reshape(-1)[-predict_steps:]


# ---------------------------------------------------------------------------
if __name__ == "__main__":
    # Module hyperparameters (output_size must be 1 for the .view(T) in forward).
    input_size = 4
    output_size = 1
    hidden_layer_size = 32
    num_layers = 2
    predict_steps = 4
    seq_len = 16

    key = jax.random.PRNGKey(0)
    key, xk, pk = jax.random.split(key, 3)
    input_seq = jax.random.normal(xk, (seq_len, input_size), jnp.float32)
    params = init_params(pk, input_size, hidden_layer_size, num_layers, output_size)

    out = my_lstm_forward(input_seq, params, predict_steps)
    out = jax.block_until_ready(out)

    ref = ref_forward(input_seq, params, predict_steps)
    assert out.shape == (predict_steps,)
    assert jnp.allclose(out, ref, rtol=1e-2, atol=1e-2), (out, ref)

    print("KERNEL_OK")
</pallas_src>

<mosaic_0001>
module attributes {stable_mosaic.version = 11 : i64} {
  func.func @kernel(%arg0: memref<16x4xf32, #tpu.memory_space<vmem>>, %arg1: memref<4x128xf32, #tpu.memory_space<vmem>>, %arg2: memref<32x128xf32, #tpu.memory_space<vmem>>, %arg3: memref<1x128xf32, #tpu.memory_space<vmem>>, %arg4: memref<32x128xf32, #tpu.memory_space<vmem>>, %arg5: memref<32x128xf32, #tpu.memory_space<vmem>>, %arg6: memref<1x128xf32, #tpu.memory_space<vmem>>, %arg7: memref<1x32xf32, #tpu.memory_space<vmem>>, %arg8: memref<1x1xf32, #tpu.memory_space<vmem>>, %arg9: memref<4x1xf32, #tpu.memory_space<vmem>>, %arg10: memref<16x128xf32, #tpu.memory_space<vmem>>, %arg11: memref<4x32xf32, #tpu.memory_space<vmem>>) attributes {dimension_semantics = [], scalar_prefetch = 0 : i64, scratch_operands = 2 : i64, tpu.core_type = #tpu.core_type<tc>} {
    %c0 = arith.constant 0 : index
    %c0_0 = arith.constant 0 : index
    %0 = vector.load %arg1[%c0, %c0_0] : memref<4x128xf32, #tpu.memory_space<vmem>>, vector<4x128xf32>
    %c0_1 = arith.constant 0 : index
    %c0_2 = arith.constant 0 : index
    %1 = vector.load %arg4[%c0_1, %c0_2] : memref<32x128xf32, #tpu.memory_space<vmem>>, vector<32x128xf32>
    %c0_3 = arith.constant 0 : index
    %c0_4 = arith.constant 0 : index
    %2 = vector.load %arg2[%c0_3, %c0_4] : memref<32x128xf32, #tpu.memory_space<vmem>>, vector<32x128xf32>
    %c0_5 = arith.constant 0 : index
    %c0_6 = arith.constant 0 : index
    %3 = vector.load %arg5[%c0_5, %c0_6] : memref<32x128xf32, #tpu.memory_space<vmem>>, vector<32x128xf32>
    %c0_7 = arith.constant 0 : index
    %c0_8 = arith.constant 0 : index
    %4 = vector.load %arg3[%c0_7, %c0_8] : memref<1x128xf32, #tpu.memory_space<vmem>>, vector<1x128xf32>
    %c0_9 = arith.constant 0 : index
    %c0_10 = arith.constant 0 : index
    %5 = vector.load %arg6[%c0_9, %c0_10] : memref<1x128xf32, #tpu.memory_space<vmem>>, vector<1x128xf32>
    %c0_11 = arith.constant 0 : index
    %c0_12 = arith.constant 0 : index
    %6 = vector.load %arg7[%c0_11, %c0_12] : memref<1x32xf32, #tpu.memory_space<vmem>>, vector<1x32xf32>
    %c0_13 = arith.constant 0 : index
    %c0_14 = arith.constant 0 : index
    %7 = vector.load %arg8[%c0_13, %c0_14] : memref<1x1xf32, #tpu.memory_space<vmem>>, vector<1x1xf32>
    %c0_15 = arith.constant 0 : index
    %c0_16 = arith.constant 0 : index
    %8 = vector.load %arg0[%c0_15, %c0_16] : memref<16x4xf32, #tpu.memory_space<vmem>>, vector<16x4xf32>
    %cst = arith.constant dense<0.000000e+00> : vector<16x128xf32>
    %9 = tpu.matmul %8, %0, %cst {dimension_numbers = #tpu.dot_dimension_numbers<[1], [0], [0], [1], [0, 0, 1, 1], [], []>} : vector<16x4xf32>, vector<4x128xf32>, vector<16x128xf32> -> vector<16x128xf32>
    %10 = vector.broadcast %4 : vector<1x128xf32> to vector<16x128xf32>
    %11 = arith.addf %9, %10 : vector<16x128xf32>
    %c0_17 = arith.constant 0 : index
    %c0_18 = arith.constant 0 : index
    %12 = vector.load %arg10[%c0_17, %c0_18] : memref<16x128xf32, #tpu.memory_space<vmem>>, vector<16x128xf32>
    tpu.vector_store %arg10[%c0_17, %c0_18], %11 {strides = array<i32>} : memref<16x128xf32, #tpu.memory_space<vmem>>, vector<16x128xf32>,
    %13 = tpu.iota {dimensions = array<i32: 1>} : vector<1x128xi32>
    %c64_i32 = arith.constant 64 : i32
    %14 = vector.broadcast %c64_i32 : i32 to vector<1x128xi32>
    %15 = arith.cmpi sge, %13, %14 : vector<1x128xi32>
    %c96_i32 = arith.constant 96 : i32
    %16 = vector.broadcast %c96_i32 : i32 to vector<1x128xi32>
    %17 = arith.cmpi slt, %13, %16 : vector<1x128xi32>
    %18 = arith.andi %15, %17 : vector<1x128xi1>
    %cst_19 = arith.constant 0.000000e+00 : f32
    %19 = vector.broadcast %cst_19 : f32 to vector<1x32xf32>
    %cst_20 = arith.constant 0.000000e+00 : f32
    %20 = vector.broadcast %cst_20 : f32 to vector<1x32xf32>
    %cst_21 = arith.constant 0.000000e+00 : f32
    %21 = vector.broadcast %cst_21 : f32 to vector<1x128xf32>
    %cst_22 = arith.constant 0.000000e+00 : f32
    %22 = vector.broadcast %cst_22 : f32 to vector<1x128xf32>
    %c0_23 = arith.constant 0 : index
    %c0_24 = arith.constant 0 : index
    %23 = vector.load %arg10[%c0_23, %c0_24] : memref<16x128xf32, #tpu.memory_space<vmem>>, vector<1x128xf32>
    %cst_25 = arith.constant dense<0.000000e+00> : vector<1x128xf32>
    %24 = tpu.matmul %19, %2, %cst_25 {dimension_numbers = #tpu.dot_dimension_numbers<[1], [0], [0], [1], [0, 0, 1, 1], [], []>} : vector<1x32xf32>, vector<32x128xf32>, vector<1x128xf32> -> vector<1x128xf32>
    %25 = arith.addf %23, %24 : vector<1x128xf32>
    %26 = math.tanh %25 : vector<1x128xf32>
    %27 = arith.negf %25 : vector<1x128xf32>
    %28 = math.exp %27 : vector<1x128xf32>
    %cst_26 = arith.constant 1.000000e+00 : f32
    %29 = vector.broadcast %cst_26 : f32 to vector<1x128xf32>
    %30 = arith.addf %29, %28 : vector<1x128xf32>
    %31 = arith.divf %29, %30 : vector<1x128xf32>
    %32 = arith.select %18, %26, %31 : vector<1x128xi1>, vector<1x128xf32>
    %c96_i32_27 = arith.constant 96 : i32
    %33 = tpu.dynamic_rotate %32 by %c96_i32_27 dim 1 : vector<1x128xf32>, i32 -> vector<1x128xf32>
    %c64_i32_28 = arith.constant 64 : i32
    %34 = tpu.dynamic_rotate %32 by %c64_i32_28 dim 1 : vector<1x128xf32>, i32 -> vector<1x128xf32>
    %c32_i32 = arith.constant 32 : i32
    %35 = tpu.dynamic_rotate %32 by %c32_i32 dim 1 : vector<1x128xf32>, i32 -> vector<1x128xf32>
    %36 = arith.mulf %33, %21 : vector<1x128xf32>
    %37 = arith.mulf %32, %34 : vector<1x128xf32>
    %38 = arith.addf %36, %37 : vector<1x128xf32>
    %39 = math.tanh %38 : vector<1x128xf32>
    %40 = arith.mulf %35, %39 : vector<1x128xf32>
    %41 = vector.extract_strided_slice %40 {offsets = [0, 0], sizes = [1, 32], strides = [1, 1]} : vector<1x128xf32> to vector<1x32xf32>
    %c1 = arith.constant 1 : index
    %c0_29 = arith.constant 0 : index
    %42 = vector.load %arg10[%c1, %c0_29] : memref<16x128xf32, #tpu.memory_space<vmem>>, vector<1x128xf32>
    %cst_30 = arith.constant dense<0.000000e+00> : vector<1x128xf32>
    %43 = tpu.matmul %41, %2, %cst_30 {dimension_numbers = #tpu.dot_dimension_numbers<[1], [0], [0], [1], [0, 0, 1, 1], [], []>} : vector<1x32xf32>, vector<32x128xf32>, vector<1x128xf32> -> vector<1x128xf32>
    %44 = arith.addf %42, %43 : vector<1x128xf32>
    %45 = math.tanh %44 : vector<1x128xf32>
    %46 = arith.negf %44 : vector<1x128xf32>
    %47 = math.exp %46 : vector<1x128xf32>
    %cst_31 = arith.constant 1.000000e+00 : f32
    %48 = vector.broadcast %cst_31 : f32 to vector<1x128xf32>
    %49 = arith.addf %48, %47 : vector<1x128xf32>
    %50 = arith.divf %48, %49 : vector<1x128xf32>
    %51 = arith.select %18, %45, %50 : vector<1x128xi1>, vector<1x128xf32>
    %c96_i32_32 = arith.constant 96 : i32
    %52 = tpu.dynamic_rotate %51 by %c96_i32_32 dim 1 : vector<1x128xf32>, i32 -> vector<1x128xf32>
    %c64_i32_33 = arith.constant 64 : i32
    %53 = tpu.dynamic_rotate %51 by %c64_i32_33 dim 1 : vector<1x128xf32>, i32 -> vector<1x128xf32>
    %c32_i32_34 = arith.constant 32 : i32
    %54 = tpu.dynamic_rotate %51 by %c32_i32_34 dim 1 : vector<1x128xf32>, i32 -> vector<1x128xf32>
    %55 = arith.mulf %52, %38 : vector<1x128xf32>
    %56 = arith.mulf %51, %53 : vector<1x128xf32>
    %57 = arith.addf %55, %56 : vector<1x128xf32>
    %58 = math.tanh %57 : vector<1x128xf32>
    %59 = arith.mulf %54, %58 : vector<1x128xf32>
    %60 = vector.extract_strided_slice %59 {offsets = [0, 0], sizes = [1, 32], strides = [1, 1]} : vector<1x128xf32> to vector<1x32xf32>
    %cst_35 = arith.constant dense<0.000000e+00> : vector<1x128xf32>
    %61 = tpu.matmul %41, %1, %cst_35 {dimension_numbers = #tpu.dot_dimension_numbers<[1], [0], [0], [1], [0, 0, 1, 1], [], []>} : vector<1x32xf32>, vector<32x128xf32>, vector<1x128xf32> -> vector<1x128xf32>
    %62 = arith.addf %61, %5 : vector<1x128xf32>
    %cst_36 = arith.constant dense<0.000000e+00> : vector<1x128xf32>
    %63 = tpu.matmul %20, %3, %cst_36 {dimension_numbers = #tpu.dot_dimension_numbers<[1], [0], [0], [1], [0, 0, 1, 1], [], []>} : vector<1x32xf32>, vector<32x128xf32>, vector<1x128xf32> -> vector<1x128xf32>
    %64 = arith.addf %62, %63 : vector<1x128xf32>
    %65 = math.tanh %64 : vector<1x128xf32>
    %66 = arith.negf %64 : vector<1x128xf32>
    %67 = math.exp %66 : vector<1x128xf32>
    %cst_37 = arith.constant 1.000000e+00 : f32
    %68 = vector.broadcast %cst_37 : f32 to vector<1x128xf32>
    %69 = arith.addf %68, %67 : vector<1x128xf32>
    %70 = arith.divf %68, %69 : vector<1x128xf32>
    %71 = arith.select %18, %65, %70 : vector<1x128xi1>, vector<1x128xf32>
    %c96_i32_38 = arith.constant 96 : i32
    %72 = tpu.dynamic_rotate %71 by %c96_i32_38 dim 1 : vector<1x128xf32>, i32 -> vector<1x128xf32>
    %c64_i32_39 = arith.constant 64 : i32
    %73 = tpu.dynamic_rotate %71 by %c64_i32_39 dim 1 : vector<1x128xf32>, i32 -> vector<1x128xf32>
    %c32_i32_40 = arith.constant 32 : i32
    %74 = tpu.dynamic_rotate %71 by %c32_i32_40 dim 1 : vector<1x128xf32>, i32 -> vector<1x128xf32>
    %75 = arith.mulf %72, %22 : vector<1x128xf32>
    %76 = arith.mulf %71, %73 : vector<1x128xf32>
    %77 = arith.addf %75, %76 : vector<1x128xf32>
    %78 = math.tanh %77 : vector<1x128xf32>
    %79 = arith.mulf %74, %78 : vector<1x128xf32>
    %80 = vector.extract_strided_slice %79 {offsets = [0, 0], sizes = [1, 32], strides = [1, 1]} : vector<1x128xf32> to vector<1x32xf32>
    %c2 = arith.constant 2 : index
    %c0_41 = arith.constant 0 : index
    %81 = vector.load %arg10[%c2, %c0_41] : memref<16x128xf32, #tpu.memory_space<vmem>>, vector<1x128xf32>
    %cst_42 = arith.constant dense<0.000000e+00> : vector<1x128xf32>
    %82 = tpu.matmul %60, %2, %cst_42 {dimension_numbers = #tpu.dot_dimension_numbers<[1], [0], [0], [1], [0, 0, 1, 1], [], []>} : vector<1x32xf32>, vector<32x128xf32>, vector<1x128xf32> -> vector<1x128xf32>
    %83 = arith.addf %81, %82 : vector<1x128xf32>
    %84 = math.tanh %83 : vector<1x128xf32>
    %85 = arith.negf %83 : vector<1x128xf32>
    %86 = math.exp %85 : vector<1x128xf32>
    %cst_43 = arith.constant 1.000000e+00 : f32
    %87 = vector.broadcast %cst_43 : f32 to vector<1x128xf32>
    %88 = arith.addf %87, %86 : vector<1x128xf32>
    %89 = arith.divf %87, %88 : vector<1x128xf32>
    %90 = arith.select %18, %84, %89 : vector<1x128xi1>, vector<1x128xf32>
    %c96_i32_44 = arith.constant 96 : i32
    %91 = tpu.dynamic_rotate %90 by %c96_i32_44 dim 1 : vector<1x128xf32>, i32 -> vector<1x128xf32>
    %c64_i32_45 = arith.constant 64 : i32
    %92 = tpu.dynamic_rotate %90 by %c64_i32_45 dim 1 : vector<1x128xf32>, i32 -> vector<1x128xf32>
    %c32_i32_46 = arith.constant 32 : i32
    %93 = tpu.dynamic_rotate %90 by %c32_i32_46 dim 1 : vector<1x128xf32>, i32 -> vector<1x128xf32>
    %94 = arith.mulf %91, %57 : vector<1x128xf32>
    %95 = arith.mulf %90, %92 : vector<1x128xf32>
    %96 = arith.addf %94, %95 : vector<1x128xf32>
    %97 = math.tanh %96 : vector<1x128xf32>
    %98 = arith.mulf %93, %97 : vector<1x128xf32>
    %99 = vector.extract_strided_slice %98 {offsets = [0, 0], sizes = [1, 32], strides = [1, 1]} : vector<1x128xf32> to vector<1x32xf32>
    %cst_47 = arith.constant dense<0.000000e+00> : vector<1x128xf32>
    %100 = tpu.matmul %60, %1, %cst_47 {dimension_numbers = #tpu.dot_dimension_numbers<[1], [0], [0], [1], [0, 0, 1, 1], [], []>} : vector<1x32xf32>, vector<32x128xf32>, vector<1x128xf32> -> vector<1x128xf32>
    %101 = arith.addf %100, %5 : vector<1x128xf32>
    %cst_48 = arith.constant dense<0.000000e+00> : vector<1x128xf32>
    %102 = tpu.matmul %80, %3, %cst_48 {dimension_numbers = #tpu.dot_dimension_numbers<[1], [0], [0], [1], [0, 0, 1, 1], [], []>} : vector<1x32xf32>, vector<32x128xf32>, vector<1x128xf32> -> vector<1x128xf32>
    %103 = arith.addf %101, %102 : vector<1x128xf32>
    %104 = math.tanh %103 : vector<1x128xf32>
    %105 = arith.negf %103 : vector<1x128xf32>
    %106 = math.exp %105 : vector<1x128xf32>
    %cst_49 = arith.constant 1.000000e+00 : f32
    %107 = vector.broadcast %cst_49 : f32 to vector<1x128xf32>
    %108 = arith.addf %107, %106 : vector<1x128xf32>
    %109 = arith.divf %107, %108 : vector<1x128xf32>
    %110 = arith.select %18, %104, %109 : vector<1x128xi1>, vector<1x128xf32>
    %c96_i32_50 = arith.constant 96 : i32
    %111 = tpu.dynamic_rotate %110 by %c96_i32_50 dim 1 : vector<1x128xf32>, i32 -> vector<1x128xf32>
    %c64_i32_51 = arith.constant 64 : i32
    %112 = tpu.dynamic_rotate %110 by %c64_i32_51 dim 1 : vector<1x128xf32>, i32 -> vector<1x128xf32>
    %c32_i32_52 = arith.constant 32 : i32
    %113 = tpu.dynamic_rotate %110 by %c32_i32_52 dim 1 : vector<1x128xf32>, i32 -> vector<1x128xf32>
    %114 = arith.mulf %111, %77 : vector<1x128xf32>
    %115 = arith.mulf %110, %112 : vector<1x128xf32>
    %116 = arith.addf %114, %115 : vector<1x128xf32>
    %117 = math.tanh %116 : vector<1x128xf32>
    %118 = arith.mulf %113, %117 : vector<1x128xf32>
    %119 = vector.extract_strided_slice %118 {offsets = [0, 0], sizes = [1, 32], strides = [1, 1]} : vector<1x128xf32> to vector<1x32xf32>
    %c3 = arith.constant 3 : index
    %c0_53 = arith.constant 0 : index
    %120 = vector.load %arg10[%c3, %c0_53] : memref<16x128xf32, #tpu.memory_space<vmem>>, vector<1x128xf32>
    %cst_54 = arith.constant dense<0.000000e+00> : vector<1x128xf32>
    %121 = tpu.matmul %99, %2, %cst_54 {dimension_numbers = #tpu.dot_dimension_numbers<[1], [0], [0], [1], [0, 0, 1, 1], [], []>} : vector<1x32xf32>, vector<32x128xf32>, vector<1x128xf32> -> vector<1x128xf32>
    %122 = arith.addf %120, %121 : vector<1x128xf32>
    %123 = math.tanh %122 : vector<1x128xf32>
    %124 = arith.negf %122 : vector<1x128xf32>
    %125 = math.exp %124 : vector<1x128xf32>
    %cst_55 = arith.constant 1.000000e+00 : f32
    %126 = vector.broadcast %cst_55 : f32 to vector<1x128xf32>
    %127 = arith.addf %126, %125 : vector<1x128xf32>
    %128 = arith.divf %126, %127 : vector<1x128xf32>
    %129 = arith.select %18, %123, %128 : vector<1x128xi1>, vector<1x128xf32>
    %c96_i32_56 = arith.constant 96 : i32
    %130 = tpu.dynamic_rotate %129 by %c96_i32_56 dim 1 : vector<1x128xf32>, i32 -> vector<1x128xf32>
    %c64_i32_57 = arith.constant 64 : i32
    %131 = tpu.dynamic_rotate %129 by %c64_i32_57 dim 1 : vector<1x128xf32>, i32 -> vector<1x128xf32>
    %c32_i32_58 = arith.constant 32 : i32
    %132 = tpu.dynamic_rotate %129 by %c32_i32_58 dim 1 : vector<1x128xf32>, i32 -> vector<1x128xf32>
    %133 = arith.mulf %130, %96 : vector<1x128xf32>
    %134 = arith.mulf %129, %131 : vector<1x128xf32>
    %135 = arith.addf %133, %134 : vector<1x128xf32>
    %136 = math.tanh %135 : vector<1x128xf32>
    %137 = arith.mulf %132, %136 : vector<1x128xf32>
    %138 = vector.extract_strided_slice %137 {offsets = [0, 0], sizes = [1, 32], strides = [1, 1]} : vector<1x128xf32> to vector<1x32xf32>
    %cst_59 = arith.constant dense<0.000000e+00> : vector<1x128xf32>
    %139 = tpu.matmul %99, %1, %cst_59 {dimension_numbers = #tpu.dot_dimension_numbers<[1], [0], [0], [1], [0, 0, 1, 1], [], []>} : vector<1x32xf32>, vector<32x128xf32>, vector<1x128xf32> -> vector<1x128xf32>
    %140 = arith.addf %139, %5 : vector<1x128xf32>
    %cst_60 = arith.constant dense<0.000000e+00> : vector<1x128xf32>
    %141 = tpu.matmul %119, %3, %cst_60 {dimension_numbers = #tpu.dot_dimension_numbers<[1], [0], [0], [1], [0, 0, 1, 1], [], []>} : vector<1x32xf32>, vector<32x128xf32>, vector<1x128xf32> -> vector<1x128xf32>
    %142 = arith.addf %140, %141 : vector<1x128xf32>
    %143 = math.tanh %142 : vector<1x128xf32>
    %144 = arith.negf %142 : vector<1x128xf32>
    %145 = math.exp %144 : vector<1x128xf32>
    %cst_61 = arith.constant 1.000000e+00 : f32
    %146 = vector.broadcast %cst_61 : f32 to vector<1x128xf32>
    %147 = arith.addf %146, %145 : vector<1x128xf32>
    %148 = arith.divf %146, %147 : vector<1x128xf32>
    %149 = arith.select %18, %143, %148 : vector<1x128xi1>, vector<1x128xf32>
    %c96_i32_62 = arith.constant 96 : i32
    %150 = tpu.dynamic_rotate %149 by %c96_i32_62 dim 1 : vector<1x128xf32>, i32 -> vector<1x128xf32>
    %c64_i32_63 = arith.constant 64 : i32
    %151 = tpu.dynamic_rotate %149 by %c64_i32_63 dim 1 : vector<1x128xf32>, i32 -> vector<1x128xf32>
    %c32_i32_64 = arith.constant 32 : i32
    %152 = tpu.dynamic_rotate %149 by %c32_i32_64 dim 1 : vector<1x128xf32>, i32 -> vector<1x128xf32>
    %153 = arith.mulf %150, %116 : vector<1x128xf32>
    %154 = arith.mulf %149, %151 : vector<1x128xf32>
    %155 = arith.addf %153, %154 : vector<1x128xf32>
    %156 = math.tanh %155 : vector<1x128xf32>
    %157 = arith.mulf %152, %156 : vector<1x128xf32>
    %158 = vector.extract_strided_slice %157 {offsets = [0, 0], sizes = [1, 32], strides = [1, 1]} : vector<1x128xf32> to vector<1x32xf32>
    %c4 = arith.constant 4 : index
    %c0_65 = arith.constant 0 : index
    %159 = vector.load %arg10[%c4, %c0_65] : memref<16x128xf32, #tpu.memory_space<vmem>>, vector<1x128xf32>
    %cst_66 = arith.constant dense<0.000000e+00> : vector<1x128xf32>
    %160 = tpu.matmul %138, %2, %cst_66 {dimension_numbers = #tpu.dot_dimension_numbers<[1], [0], [0], [1], [0, 0, 1, 1], [], []>} : vector<1x32xf32>, vector<32x128xf32>, vector<1x128xf32> -> vector<1x128xf32>
    %161 = arith.addf %159, %160 : vector<1x128xf32>
    %162 = math.tanh %161 : vector<1x128xf32>
    %163 = arith.negf %161 : vector<1x128xf32>
    %164 = math.exp %163 : vector<1x128xf32>
    %cst_67 = arith.constant 1.000000e+00 : f32
    %165 = vector.broadcast %cst_67 : f32 to vector<1x128xf32>
    %166 = arith.addf %165, %164 : vector<1x128xf32>
    %167 = arith.divf %165, %166 : vector<1x128xf32>
    %168 = arith.select %18, %162, %167 : vector<1x128xi1>, vector<1x128xf32>
    %c96_i32_68 = arith.constant 96 : i32
    %169 = tpu.dynamic_rotate %168 by %c96_i32_68 dim 1 : vector<1x128xf32>, i32 -> vector<1x128xf32>
    %c64_i32_69 = arith.constant 64 : i32
    %170 = tpu.dynamic_rotate %168 by %c64_i32_69 dim 1 : vector<1x128xf32>, i32 -> vector<1x128xf32>
    %c32_i32_70 = arith.constant 32 : i32
    %171 = tpu.dynamic_rotate %168 by %c32_i32_70 dim 1 : vector<1x128xf32>, i32 -> vector<1x128xf32>
    %172 = arith.mulf %169, %135 : vector<1x128xf32>
    %173 = arith.mulf %168, %170 : vector<1x128xf32>
    %174 = arith.addf %172, %173 : vector<1x128xf32>
    %175 = math.tanh %174 : vector<1x128xf32>
    %176 = arith.mulf %171, %175 : vector<1x128xf32>
    %177 = vector.extract_strided_slice %176 {offsets = [0, 0], sizes = [1, 32], strides = [1, 1]} : vector<1x128xf32> to vector<1x32xf32>
    %cst_71 = arith.constant dense<0.000000e+00> : vector<1x128xf32>
    %178 = tpu.matmul %138, %1, %cst_71 {dimension_numbers = #tpu.dot_dimension_numbers<[1], [0], [0], [1], [0, 0, 1, 1], [], []>} : vector<1x32xf32>, vector<32x128xf32>, vector<1x128xf32> -> vector<1x128xf32>
    %179 = arith.addf %178, %5 : vector<1x128xf32>
    %cst_72 = arith.constant dense<0.000000e+00> : vector<1x128xf32>
    %180 = tpu.matmul %158, %3, %cst_72 {dimension_numbers = #tpu.dot_dimension_numbers<[1], [0], [0], [1], [0, 0, 1, 1], [], []>} : vector<1x32xf32>, vector<32x128xf32>, vector<1x128xf32> -> vector<1x128xf32>
    %181 = arith.addf %179, %180 : vector<1x128xf32>
    %182 = math.tanh %181 : vector<1x128xf32>
    %183 = arith.negf %181 : vector<1x128xf32>
    %184 = math.exp %183 : vector<1x128xf32>
    %cst_73 = arith.constant 1.000000e+00 : f32
    %185 = vector.broadcast %cst_73 : f32 to vector<1x128xf32>
    %186 = arith.addf %185, %184 : vector<1x128xf32>
    %187 = arith.divf %185, %186 : vector<1x128xf32>
    %188 = arith.select %18, %182, %187 : vector<1x128xi1>, vector<1x128xf32>
    %c96_i32_74 = arith.constant 96 : i32
    %189 = tpu.dynamic_rotate %188 by %c96_i32_74 dim 1 : vector<1x128xf32>, i32 -> vector<1x128xf32>
    %c64_i32_75 = arith.constant 64 : i32
    %190 = tpu.dynamic_rotate %188 by %c64_i32_75 dim 1 : vector<1x128xf32>, i32 -> vector<1x128xf32>
    %c32_i32_76 = arith.constant 32 : i32
    %191 = tpu.dynamic_rotate %188 by %c32_i32_76 dim 1 : vector<1x128xf32>, i32 -> vector<1x128xf32>
    %192 = arith.mulf %189, %155 : vector<1x128xf32>
    %193 = arith.mulf %188, %190 : vector<1x128xf32>
    %194 = arith.addf %192, %193 : vector<1x128xf32>
    %195 = math.tanh %194 : vector<1x128xf32>
    %196 = arith.mulf %191, %195 : vector<1x128xf32>
    %197 = vector.extract_strided_slice %196 {offsets = [0, 0], sizes = [1, 32], strides = [1, 1]} : vector<1x128xf32> to vector<1x32xf32>
    %c5 = arith.constant 5 : index
    %c0_77 = arith.constant 0 : index
    %198 = vector.load %arg10[%c5, %c0_77] : memref<16x128xf32, #tpu.memory_space<vmem>>, vector<1x128xf32>
    %cst_78 = arith.constant dense<0.000000e+00> : vector<1x128xf32>
    %199 = tpu.matmul %177, %2, %cst_78 {dimension_numbers = #tpu.dot_dimension_numbers<[1], [0], [0], [1], [0, 0, 1, 1], [], []>} : vector<1x32xf32>, vector<32x128xf32>, vector<1x128xf32> -> vector<1x128xf32>
    %200 = arith.addf %198, %199 : vector<1x128xf32>
    %201 = math.tanh %200 : vector<1x128xf32>
    %202 = arith.negf %200 : vector<1x128xf32>
    %203 = math.exp %202 : vector<1x128xf32>
    %cst_79 = arith.constant 1.000000e+00 : f32
    %204 = vector.broadcast %cst_79 : f32 to vector<1x128xf32>
    %205 = arith.addf %204, %203 : vector<1x128xf32>
    %206 = arith.divf %204, %205 : vector<1x128xf32>
    %207 = arith.select %18, %201, %206 : vector<1x128xi1>, vector<1x128xf32>
    %c96_i32_80 = arith.constant 96 : i32
    %208 = tpu.dynamic_rotate %207 by %c96_i32_80 dim 1 : vector<1x128xf32>, i32 -> vector<1x128xf32>
    %c64_i32_81 = arith.constant 64 : i32
    %209 = tpu.dynamic_rotate %207 by %c64_i32_81 dim 1 : vector<1x128xf32>, i32 -> vector<1x128xf32>
    %c32_i32_82 = arith.constant 32 : i32
    %210 = tpu.dynamic_rotate %207 by %c32_i32_82 dim 1 : vector<1x128xf32>, i32 -> vector<1x128xf32>
    %211 = arith.mulf %208, %174 : vector<1x128xf32>
    %212 = arith.mulf %207, %209 : vector<1x128xf32>
    %213 = arith.addf %211, %212 : vector<1x128xf32>
    %214 = math.tanh %213 : vector<1x128xf32>
    %215 = arith.mulf %210, %214 : vector<1x128xf32>
    %216 = vector.extract_strided_slice %215 {offsets = [0, 0], sizes = [1, 32], strides = [1, 1]} : vector<1x128xf32> to vector<1x32xf32>
    %cst_83 = arith.constant dense<0.000000e+00> : vector<1x128xf32>
    %217 = tpu.matmul %177, %1, %cst_83 {dimension_numbers = #tpu.dot_dimension_numbers<[1], [0], [0], [1], [0, 0, 1, 1], [], []>} : vector<1x32xf32>, vector<32x128xf32>, vector<1x128xf32> -> vector<1x128xf32>
    %218 = arith.addf %217, %5 : vector<1x128xf32>
    %cst_84 = arith.constant dense<0.000000e+00> : vector<1x128xf32>
    %219 = tpu.matmul %197, %3, %cst_84 {dimension_numbers = #tpu.dot_dimension_numbers<[1], [0], [0], [1], [0, 0, 1, 1], [], []>} : vector<1x32xf32>, vector<32x128xf32>, vector<1x128xf32> -> vector<1x128xf32>
    %220 = arith.addf %218, %219 : vector<1x128xf32>
    %221 = math.tanh %220 : vector<1x128xf32>
    %222 = arith.negf %220 : vector<1x128xf32>
    %223 = math.exp %222 : vector<1x128xf32>
    %cst_85 = arith.constant 1.000000e+00 : f32
    %224 = vector.broadcast %cst_85 : f32 to vector<1x128xf32>
    %225 = arith.addf %224, %223 : vector<1x128xf32>
    %226 = arith.divf %224, %225 : vector<1x128xf32>
    %227 = arith.select %18, %221, %226 : vector<1x128xi1>, vector<1x128xf32>
    %c96_i32_86 = arith.constant 96 : i32
    %228 = tpu.dynamic_rotate %227 by %c96_i32_86 dim 1 : vector<1x128xf32>, i32 -> vector<1x128xf32>
    %c64_i32_87 = arith.constant 64 : i32
    %229 = tpu.dynamic_rotate %227 by %c64_i32_87 dim 1 : vector<1x128xf32>, i32 -> vector<1x128xf32>
    %c32_i32_88 = arith.constant 32 : i32
    %230 = tpu.dynamic_rotate %227 by %c32_i32_88 dim 1 : vector<1x128xf32>, i32 -> vector<1x128xf32>
    %231 = arith.mulf %228, %194 : vector<1x128xf32>
    %232 = arith.mulf %227, %229 : vector<1x128xf32>
    %233 = arith.addf %231, %232 : vector<1x128xf32>
    %234 = math.tanh %233 : vector<1x128xf32>
    %235 = arith.mulf %230, %234 : vector<1x128xf32>
    %236 = vector.extract_strided_slice %235 {offsets = [0, 0], sizes = [1, 32], strides = [1, 1]} : vector<1x128xf32> to vector<1x32xf32>
    %c6 = arith.constant 6 : index
    %c0_89 = arith.constant 0 : index
    %237 = vector.load %arg10[%c6, %c0_89] : memref<16x128xf32, #tpu.memory_space<vmem>>, vector<1x128xf32>
    %cst_90 = arith.constant dense<0.000000e+00> : vector<1x128xf32>
    %238 = tpu.matmul %216, %2, %cst_90 {dimension_numbers = #tpu.dot_dimension_numbers<[1], [0], [0], [1], [0, 0, 1, 1], [], []>} : vector<1x32xf32>, vector<32x128xf32>, vector<1x128xf32> -> vector<1x128xf32>
    %239 = arith.addf %237, %238 : vector<1x128xf32>
    %240 = math.tanh %239 : vector<1x128xf32>
    %241 = arith.negf %239 : vector<1x128xf32>
    %242 = math.exp %241 : vector<1x128xf32>
    %cst_91 = arith.constant 1.000000e+00 : f32
    %243 = vector.broadcast %cst_91 : f32 to vector<1x128xf32>
    %244 = arith.addf %243, %242 : vector<1x128xf32>
    %245 = arith.divf %243, %244 : vector<1x128xf32>
    %246 = arith.select %18, %240, %245 : vector<1x128xi1>, vector<1x128xf32>
    %c96_i32_92 = arith.constant 96 : i32
    %247 = tpu.dynamic_rotate %246 by %c96_i32_92 dim 1 : vector<1x128xf32>, i32 -> vector<1x128xf32>
    %c64_i32_93 = arith.constant 64 : i32
    %248 = tpu.dynamic_rotate %246 by %c64_i32_93 dim 1 : vector<1x128xf32>, i32 -> vector<1x128xf32>
    %c32_i32_94 = arith.constant 32 : i32
    %249 = tpu.dynamic_rotate %246 by %c32_i32_94 dim 1 : vector<1x128xf32>, i32 -> vector<1x128xf32>
    %250 = arith.mulf %247, %213 : vector<1x128xf32>
    %251 = arith.mulf %246, %248 : vector<1x128xf32>
    %252 = arith.addf %250, %251 : vector<1x128xf32>
    %253 = math.tanh %252 : vector<1x128xf32>
    %254 = arith.mulf %249, %253 : vector<1x128xf32>
    %255 = vector.extract_strided_slice %254 {offsets = [0, 0], sizes = [1, 32], strides = [1, 1]} : vector<1x128xf32> to vector<1x32xf32>
    %cst_95 = arith.constant dense<0.000000e+00> : vector<1x128xf32>
    %256 = tpu.matmul %216, %1, %cst_95 {dimension_numbers = #tpu.dot_dimension_numbers<[1], [0], [0], [1], [0, 0, 1, 1], [], []>} : vector<1x32xf32>, vector<32x128xf32>, vector<1x128xf32> -> vector<1x128xf32>
    %257 = arith.addf %256, %5 : vector<1x128xf32>
    %cst_96 = arith.constant dense<0.000000e+00> : vector<1x128xf32>
    %258 = tpu.matmul %236, %3, %cst_96 {dimension_numbers = #tpu.dot_dimension_numbers<[1], [0], [0], [1], [0, 0, 1, 1], [], []>} : vector<1x32xf32>, vector<32x128xf32>, vector<1x128xf32> -> vector<1x128xf32>
    %259 = arith.addf %257, %258 : vector<1x128xf32>
    %260 = math.tanh %259 : vector<1x128xf32>
    %261 = arith.negf %259 : vector<1x128xf32>
    %262 = math.exp %261 : vector<1x128xf32>
    %cst_97 = arith.constant 1.000000e+00 : f32
    %263 = vector.broadcast %cst_97 : f32 to vector<1x128xf32>
    %264 = arith.addf %263, %262 : vector<1x128xf32>
    %265 = arith.divf %263, %264 : vector<1x128xf32>
    %266 = arith.select %18, %260, %265 : vector<1x128xi1>, vector<1x128xf32>
    %c96_i32_98 = arith.constant 96 : i32
    %267 = tpu.dynamic_rotate %266 by %c96_i32_98 dim 1 : vector<1x128xf32>, i32 -> vector<1x128xf32>
    %c64_i32_99 = arith.constant 64 : i32
    %268 = tpu.dynamic_rotate %266 by %c64_i32_99 dim 1 : vector<1x128xf32>, i32 -> vector<1x128xf32>
    %c32_i32_100 = arith.constant 32 : i32
    %269 = tpu.dynamic_rotate %266 by %c32_i32_100 dim 1 : vector<1x128xf32>, i32 -> vector<1x128xf32>
    %270 = arith.mulf %267, %233 : vector<1x128xf32>
    %271 = arith.mulf %266, %268 : vector<1x128xf32>
    %272 = arith.addf %270, %271 : vector<1x128xf32>
    %273 = math.tanh %272 : vector<1x128xf32>
    %274 = arith.mulf %269, %273 : vector<1x128xf32>
    %275 = vector.extract_strided_slice %274 {offsets = [0, 0], sizes = [1, 32], strides = [1, 1]} : vector<1x128xf32> to vector<1x32xf32>
    %c7 = arith.constant 7 : index
    %c0_101 = arith.constant 0 : index
    %276 = vector.load %arg10[%c7, %c0_101] : memref<16x128xf32, #tpu.memory_space<vmem>>, vector<1x128xf32>
    %cst_102 = arith.constant dense<0.000000e+00> : vector<1x128xf32>
    %277 = tpu.matmul %255, %2, %cst_102 {dimension_numbers = #tpu.dot_dimension_numbers<[1], [0], [0], [1], [0, 0, 1, 1], [], []>} : vector<1x32xf32>, vector<32x128xf32>, vector<1x128xf32> -> vector<1x128xf32>
    %278 = arith.addf %276, %277 : vector<1x128xf32>
    %279 = math.tanh %278 : vector<1x128xf32>
    %280 = arith.negf %278 : vector<1x128xf32>
    %281 = math.exp %280 : vector<1x128xf32>
    %cst_103 = arith.constant 1.000000e+00 : f32
    %282 = vector.broadcast %cst_103 : f32 to vector<1x128xf32>
    %283 = arith.addf %282, %281 : vector<1x128xf32>
    %284 = arith.divf %282, %283 : vector<1x128xf32>
    %285 = arith.select %18, %279, %284 : vector<1x128xi1>, vector<1x128xf32>
    %c96_i32_104 = arith.constant 96 : i32
    %286 = tpu.dynamic_rotate %285 by %c96_i32_104 dim 1 : vector<1x128xf32>, i32 -> vector<1x128xf32>
    %c64_i32_105 = arith.constant 64 : i32
    %287 = tpu.dynamic_rotate %285 by %c64_i32_105 dim 1 : vector<1x128xf32>, i32 -> vector<1x128xf32>
    %c32_i32_106 = arith.constant 32 : i32
    %288 = tpu.dynamic_rotate %285 by %c32_i32_106 dim 1 : vector<1x128xf32>, i32 -> vector<1x128xf32>
    %289 = arith.mulf %286, %252 : vector<1x128xf32>
    %290 = arith.mulf %285, %287 : vector<1x128xf32>
    %291 = arith.addf %289, %290 : vector<1x128xf32>
    %292 = math.tanh %291 : vector<1x128xf32>
    %293 = arith.mulf %288, %292 : vector<1x128xf32>
    %294 = vector.extract_strided_slice %293 {offsets = [0, 0], sizes = [1, 32], strides = [1, 1]} : vector<1x128xf32> to vector<1x32xf32>
    %cst_107 = arith.constant dense<0.000000e+00> : vector<1x128xf32>
    %295 = tpu.matmul %255, %1, %cst_107 {dimension_numbers = #tpu.dot_dimension_numbers<[1], [0], [0], [1], [0, 0, 1, 1], [], []>} : vector<1x32xf32>, vector<32x128xf32>, vector<1x128xf32> -> vector<1x128xf32>
    %296 = arith.addf %295, %5 : vector<1x128xf32>
    %cst_108 = arith.constant dense<0.000000e+00> : vector<1x128xf32>
    %297 = tpu.matmul %275, %3, %cst_108 {dimension_numbers = #tpu.dot_dimension_numbers<[1], [0], [0], [1], [0, 0, 1, 1], [], []>} : vector<1x32xf32>, vector<32x128xf32>, vector<1x128xf32> -> vector<1x128xf32>
    %298 = arith.addf %296, %297 : vector<1x128xf32>
    %299 = math.tanh %298 : vector<1x128xf32>
    %300 = arith.negf %298 : vector<1x128xf32>
    %301 = math.exp %300 : vector<1x128xf32>
    %cst_109 = arith.constant 1.000000e+00 : f32
    %302 = vector.broadcast %cst_109 : f32 to vector<1x128xf32>
    %303 = arith.addf %302, %301 : vector<1x128xf32>
    %304 = arith.divf %302, %303 : vector<1x128xf32>
    %305 = arith.select %18, %299, %304 : vector<1x128xi1>, vector<1x128xf32>
    %c96_i32_110 = arith.constant 96 : i32
    %306 = tpu.dynamic_rotate %305 by %c96_i32_110 dim 1 : vector<1x128xf32>, i32 -> vector<1x128xf32>
    %c64_i32_111 = arith.constant 64 : i32
    %307 = tpu.dynamic_rotate %305 by %c64_i32_111 dim 1 : vector<1x128xf32>, i32 -> vector<1x128xf32>
    %c32_i32_112 = arith.constant 32 : i32
    %308 = tpu.dynamic_rotate %305 by %c32_i32_112 dim 1 : vector<1x128xf32>, i32 -> vector<1x128xf32>
    %309 = arith.mulf %306, %272 : vector<1x128xf32>
    %310 = arith.mulf %305, %307 : vector<1x128xf32>
    %311 = arith.addf %309, %310 : vector<1x128xf32>
    %312 = math.tanh %311 : vector<1x128xf32>
    %313 = arith.mulf %308, %312 : vector<1x128xf32>
    %314 = vector.extract_strided_slice %313 {offsets = [0, 0], sizes = [1, 32], strides = [1, 1]} : vector<1x128xf32> to vector<1x32xf32>
    %c8 = arith.constant 8 : index
    %c0_113 = arith.constant 0 : index
    %315 = vector.load %arg10[%c8, %c0_113] : memref<16x128xf32, #tpu.memory_space<vmem>>, vector<1x128xf32>
    %cst_114 = arith.constant dense<0.000000e+00> : vector<1x128xf32>
    %316 = tpu.matmul %294, %2, %cst_114 {dimension_numbers = #tpu.dot_dimension_numbers<[1], [0], [0], [1], [0, 0, 1, 1], [], []>} : vector<1x32xf32>, vector<32x128xf32>, vector<1x128xf32> -> vector<1x128xf32>
    %317 = arith.addf %315, %316 : vector<1x128xf32>
    %318 = math.tanh %317 : vector<1x128xf32>
    %319 = arith.negf %317 : vector<1x128xf32>
    %320 = math.exp %319 : vector<1x128xf32>
    %cst_115 = arith.constant 1.000000e+00 : f32
    %321 = vector.broadcast %cst_115 : f32 to vector<1x128xf32>
    %322 = arith.addf %321, %320 : vector<1x128xf32>
    %323 = arith.divf %321, %322 : vector<1x128xf32>
    %324 = arith.select %18, %318, %323 : vector<1x128xi1>, vector<1x128xf32>
    %c96_i32_116 = arith.constant 96 : i32
    %325 = tpu.dynamic_rotate %324 by %c96_i32_116 dim 1 : vector<1x128xf32>, i32 -> vector<1x128xf32>
    %c64_i32_117 = arith.constant 64 : i32
    %326 = tpu.dynamic_rotate %324 by %c64_i32_117 dim 1 : vector<1x128xf32>, i32 -> vector<1x128xf32>
    %c32_i32_118 = arith.constant 32 : i32
    %327 = tpu.dynamic_rotate %324 by %c32_i32_118 dim 1 : vector<1x128xf32>, i32 -> vector<1x128xf32>
    %328 = arith.mulf %325, %291 : vector<1x128xf32>
    %329 = arith.mulf %324, %326 : vector<1x128xf32>
    %330 = arith.addf %328, %329 : vector<1x128xf32>
    %331 = math.tanh %330 : vector<1x128xf32>
    %332 = arith.mulf %327, %331 : vector<1x128xf32>
    %333 = vector.extract_strided_slice %332 {offsets = [0, 0], sizes = [1, 32], strides = [1, 1]} : vector<1x128xf32> to vector<1x32xf32>
    %cst_119 = arith.constant dense<0.000000e+00> : vector<1x128xf32>
    %334 = tpu.matmul %294, %1, %cst_119 {dimension_numbers = #tpu.dot_dimension_numbers<[1], [0], [0], [1], [0, 0, 1, 1], [], []>} : vector<1x32xf32>, vector<32x128xf32>, vector<1x128xf32> -> vector<1x128xf32>
    %335 = arith.addf %334, %5 : vector<1x128xf32>
    %cst_120 = arith.constant dense<0.000000e+00> : vector<1x128xf32>
    %336 = tpu.matmul %314, %3, %cst_120 {dimension_numbers = #tpu.dot_dimension_numbers<[1], [0], [0], [1], [0, 0, 1, 1], [], []>} : vector<1x32xf32>, vector<32x128xf32>, vector<1x128xf32> -> vector<1x128xf32>
    %337 = arith.addf %335, %336 : vector<1x128xf32>
    %338 = math.tanh %337 : vector<1x128xf32>
    %339 = arith.negf %337 : vector<1x128xf32>
    %340 = math.exp %339 : vector<1x128xf32>
    %cst_121 = arith.constant 1.000000e+00 : f32
    %341 = vector.broadcast %cst_121 : f32 to vector<1x128xf32>
    %342 = arith.addf %341, %340 : vector<1x128xf32>
    %343 = arith.divf %341, %342 : vector<1x128xf32>
    %344 = arith.select %18, %338, %343 : vector<1x128xi1>, vector<1x128xf32>
    %c96_i32_122 = arith.constant 96 : i32
    %345 = tpu.dynamic_rotate %344 by %c96_i32_122 dim 1 : vector<1x128xf32>, i32 -> vector<1x128xf32>
    %c64_i32_123 = arith.constant 64 : i32
    %346 = tpu.dynamic_rotate %344 by %c64_i32_123 dim 1 : vector<1x128xf32>, i32 -> vector<1x128xf32>
    %c32_i32_124 = arith.constant 32 : i32
    %347 = tpu.dynamic_rotate %344 by %c32_i32_124 dim 1 : vector<1x128xf32>, i32 -> vector<1x128xf32>
    %348 = arith.mulf %345, %311 : vector<1x128xf32>
    %349 = arith.mulf %344, %346 : vector<1x128xf32>
    %350 = arith.addf %348, %349 : vector<1x128xf32>
    %351 = math.tanh %350 : vector<1x128xf32>
    %352 = arith.mulf %347, %351 : vector<1x128xf32>
    %353 = vector.extract_strided_slice %352 {offsets = [0, 0], sizes = [1, 32], strides = [1, 1]} : vector<1x128xf32> to vector<1x32xf32>
    %c9 = arith.constant 9 : index
    %c0_125 = arith.constant 0 : index
    %354 = vector.load %arg10[%c9, %c0_125] : memref<16x128xf32, #tpu.memory_space<vmem>>, vector<1x128xf32>
    %cst_126 = arith.constant dense<0.000000e+00> : vector<1x128xf32>
    %355 = tpu.matmul %333, %2, %cst_126 {dimension_numbers = #tpu.dot_dimension_numbers<[1], [0], [0], [1], [0, 0, 1, 1], [], []>} : vector<1x32xf32>, vector<32x128xf32>, vector<1x128xf32> -> vector<1x128xf32>
    %356 = arith.addf %354, %355 : vector<1x128xf32>
    %357 = math.tanh %356 : vector<1x128xf32>
    %358 = arith.negf %356 : vector<1x128xf32>
    %359 = math.exp %358 : vector<1x128xf32>
    %cst_127 = arith.constant 1.000000e+00 : f32
    %360 = vector.broadcast %cst_127 : f32 to vector<1x128xf32>
    %361 = arith.addf %360, %359 : vector<1x128xf32>
    %362 = arith.divf %360, %361 : vector<1x128xf32>
    %363 = arith.select %18, %357, %362 : vector<1x128xi1>, vector<1x128xf32>
    %c96_i32_128 = arith.constant 96 : i32
    %364 = tpu.dynamic_rotate %363 by %c96_i32_128 dim 1 : vector<1x128xf32>, i32 -> vector<1x128xf32>
    %c64_i32_129 = arith.constant 64 : i32
    %365 = tpu.dynamic_rotate %363 by %c64_i32_129 dim 1 : vector<1x128xf32>, i32 -> vector<1x128xf32>
    %c32_i32_130 = arith.constant 32 : i32
    %366 = tpu.dynamic_rotate %363 by %c32_i32_130 dim 1 : vector<1x128xf32>, i32 -> vector<1x128xf32>
    %367 = arith.mulf %364, %330 : vector<1x128xf32>
    %368 = arith.mulf %363, %365 : vector<1x128xf32>
    %369 = arith.addf %367, %368 : vector<1x128xf32>
    %370 = math.tanh %369 : vector<1x128xf32>
    %371 = arith.mulf %366, %370 : vector<1x128xf32>
    %372 = vector.extract_strided_slice %371 {offsets = [0, 0], sizes = [1, 32], strides = [1, 1]} : vector<1x128xf32> to vector<1x32xf32>
    %cst_131 = arith.constant dense<0.000000e+00> : vector<1x128xf32>
    %373 = tpu.matmul %333, %1, %cst_131 {dimension_numbers = #tpu.dot_dimension_numbers<[1], [0], [0], [1], [0, 0, 1, 1], [], []>} : vector<1x32xf32>, vector<32x128xf32>, vector<1x128xf32> -> vector<1x128xf32>
    %374 = arith.addf %373, %5 : vector<1x128xf32>
    %cst_132 = arith.constant dense<0.000000e+00> : vector<1x128xf32>
    %375 = tpu.matmul %353, %3, %cst_132 {dimension_numbers = #tpu.dot_dimension_numbers<[1], [0], [0], [1], [0, 0, 1, 1], [], []>} : vector<1x32xf32>, vector<32x128xf32>, vector<1x128xf32> -> vector<1x128xf32>
    %376 = arith.addf %374, %375 : vector<1x128xf32>
    %377 = math.tanh %376 : vector<1x128xf32>
    %378 = arith.negf %376 : vector<1x128xf32>
    %379 = math.exp %378 : vector<1x128xf32>
    %cst_133 = arith.constant 1.000000e+00 : f32
    %380 = vector.broadcast %cst_133 : f32 to vector<1x128xf32>
    %381 = arith.addf %380, %379 : vector<1x128xf32>
    %382 = arith.divf %380, %381 : vector<1x128xf32>
    %383 = arith.select %18, %377, %382 : vector<1x128xi1>, vector<1x128xf32>
    %c96_i32_134 = arith.constant 96 : i32
    %384 = tpu.dynamic_rotate %383 by %c96_i32_134 dim 1 : vector<1x128xf32>, i32 -> vector<1x128xf32>
    %c64_i32_135 = arith.constant 64 : i32
    %385 = tpu.dynamic_rotate %383 by %c64_i32_135 dim 1 : vector<1x128xf32>, i32 -> vector<1x128xf32>
    %c32_i32_136 = arith.constant 32 : i32
    %386 = tpu.dynamic_rotate %383 by %c32_i32_136 dim 1 : vector<1x128xf32>, i32 -> vector<1x128xf32>
    %387 = arith.mulf %384, %350 : vector<1x128xf32>
    %388 = arith.mulf %383, %385 : vector<1x128xf32>
    %389 = arith.addf %387, %388 : vector<1x128xf32>
    %390 = math.tanh %389 : vector<1x128xf32>
    %391 = arith.mulf %386, %390 : vector<1x128xf32>
    %392 = vector.extract_strided_slice %391 {offsets = [0, 0], sizes = [1, 32], strides = [1, 1]} : vector<1x128xf32> to vector<1x32xf32>
    %c10 = arith.constant 10 : index
    %c0_137 = arith.constant 0 : index
    %393 = vector.load %arg10[%c10, %c0_137] : memref<16x128xf32, #tpu.memory_space<vmem>>, vector<1x128xf32>
    %cst_138 = arith.constant dense<0.000000e+00> : vector<1x128xf32>
    %394 = tpu.matmul %372, %2, %cst_138 {dimension_numbers = #tpu.dot_dimension_numbers<[1], [0], [0], [1], [0, 0, 1, 1], [], []>} : vector<1x32xf32>, vector<32x128xf32>, vector<1x128xf32> -> vector<1x128xf32>
    %395 = arith.addf %393, %394 : vector<1x128xf32>
    %396 = math.tanh %395 : vector<1x128xf32>
    %397 = arith.negf %395 : vector<1x128xf32>
    %398 = math.exp %397 : vector<1x128xf32>
    %cst_139 = arith.constant 1.000000e+00 : f32
    %399 = vector.broadcast %cst_139 : f32 to vector<1x128xf32>
    %400 = arith.addf %399, %398 : vector<1x128xf32>
    %401 = arith.divf %399, %400 : vector<1x128xf32>
    %402 = arith.select %18, %396, %401 : vector<1x128xi1>, vector<1x128xf32>
    %c96_i32_140 = arith.constant 96 : i32
    %403 = tpu.dynamic_rotate %402 by %c96_i32_140 dim 1 : vector<1x128xf32>, i32 -> vector<1x128xf32>
    %c64_i32_141 = arith.constant 64 : i32
    %404 = tpu.dynamic_rotate %402 by %c64_i32_141 dim 1 : vector<1x128xf32>, i32 -> vector<1x128xf32>
    %c32_i32_142 = arith.constant 32 : i32
    %405 = tpu.dynamic_rotate %402 by %c32_i32_142 dim 1 : vector<1x128xf32>, i32 -> vector<1x128xf32>
    %406 = arith.mulf %403, %369 : vector<1x128xf32>
    %407 = arith.mulf %402, %404 : vector<1x128xf32>
    %408 = arith.addf %406, %407 : vector<1x128xf32>
    %409 = math.tanh %408 : vector<1x128xf32>
    %410 = arith.mulf %405, %409 : vector<1x128xf32>
    %411 = vector.extract_strided_slice %410 {offsets = [0, 0], sizes = [1, 32], strides = [1, 1]} : vector<1x128xf32> to vector<1x32xf32>
    %cst_143 = arith.constant dense<0.000000e+00> : vector<1x128xf32>
    %412 = tpu.matmul %372, %1, %cst_143 {dimension_numbers = #tpu.dot_dimension_numbers<[1], [0], [0], [1], [0, 0, 1, 1], [], []>} : vector<1x32xf32>, vector<32x128xf32>, vector<1x128xf32> -> vector<1x128xf32>
    %413 = arith.addf %412, %5 : vector<1x128xf32>
    %cst_144 = arith.constant dense<0.000000e+00> : vector<1x128xf32>
    %414 = tpu.matmul %392, %3, %cst_144 {dimension_numbers = #tpu.dot_dimension_numbers<[1], [0], [0], [1], [0, 0, 1, 1], [], []>} : vector<1x32xf32>, vector<32x128xf32>, vector<1x128xf32> -> vector<1x128xf32>
    %415 = arith.addf %413, %414 : vector<1x128xf32>
    %416 = math.tanh %415 : vector<1x128xf32>
    %417 = arith.negf %415 : vector<1x128xf32>
    %418 = math.exp %417 : vector<1x128xf32>
    %cst_145 = arith.constant 1.000000e+00 : f32
    %419 = vector.broadcast %cst_145 : f32 to vector<1x128xf32>
    %420 = arith.addf %419, %418 : vector<1x128xf32>
    %421 = arith.divf %419, %420 : vector<1x128xf32>
    %422 = arith.select %18, %416, %421 : vector<1x128xi1>, vector<1x128xf32>
    %c96_i32_146 = arith.constant 96 : i32
    %423 = tpu.dynamic_rotate %422 by %c96_i32_146 dim 1 : vector<1x128xf32>, i32 -> vector<1x128xf32>
    %c64_i32_147 = arith.constant 64 : i32
    %424 = tpu.dynamic_rotate %422 by %c64_i32_147 dim 1 : vector<1x128xf32>, i32 -> vector<1x128xf32>
    %c32_i32_148 = arith.constant 32 : i32
    %425 = tpu.dynamic_rotate %422 by %c32_i32_148 dim 1 : vector<1x128xf32>, i32 -> vector<1x128xf32>
    %426 = arith.mulf %423, %389 : vector<1x128xf32>
    %427 = arith.mulf %422, %424 : vector<1x128xf32>
    %428 = arith.addf %426, %427 : vector<1x128xf32>
    %429 = math.tanh %428 : vector<1x128xf32>
    %430 = arith.mulf %425, %429 : vector<1x128xf32>
    %431 = vector.extract_strided_slice %430 {offsets = [0, 0], sizes = [1, 32], strides = [1, 1]} : vector<1x128xf32> to vector<1x32xf32>
    %c11 = arith.constant 11 : index
    %c0_149 = arith.constant 0 : index
    %432 = vector.load %arg10[%c11, %c0_149] : memref<16x128xf32, #tpu.memory_space<vmem>>, vector<1x128xf32>
    %cst_150 = arith.constant dense<0.000000e+00> : vector<1x128xf32>
    %433 = tpu.matmul %411, %2, %cst_150 {dimension_numbers = #tpu.dot_dimension_numbers<[1], [0], [0], [1], [0, 0, 1, 1], [], []>} : vector<1x32xf32>, vector<32x128xf32>, vector<1x128xf32> -> vector<1x128xf32>
    %434 = arith.addf %432, %433 : vector<1x128xf32>
    %435 = math.tanh %434 : vector<1x128xf32>
    %436 = arith.negf %434 : vector<1x128xf32>
    %437 = math.exp %436 : vector<1x128xf32>
    %cst_151 = arith.constant 1.000000e+00 : f32
    %438 = vector.broadcast %cst_151 : f32 to vector<1x128xf32>
    %439 = arith.addf %438, %437 : vector<1x128xf32>
    %440 = arith.divf %438, %439 : vector<1x128xf32>
    %441 = arith.select %18, %435, %440 : vector<1x128xi1>, vector<1x128xf32>
    %c96_i32_152 = arith.constant 96 : i32
    %442 = tpu.dynamic_rotate %441 by %c96_i32_152 dim 1 : vector<1x128xf32>, i32 -> vector<1x128xf32>
    %c64_i32_153 = arith.constant 64 : i32
    %443 = tpu.dynamic_rotate %441 by %c64_i32_153 dim 1 : vector<1x128xf32>, i32 -> vector<1x128xf32>
    %c32_i32_154 = arith.constant 32 : i32
    %444 = tpu.dynamic_rotate %441 by %c32_i32_154 dim 1 : vector<1x128xf32>, i32 -> vector<1x128xf32>
    %445 = arith.mulf %442, %408 : vector<1x128xf32>
    %446 = arith.mulf %441, %443 : vector<1x128xf32>
    %447 = arith.addf %445, %446 : vector<1x128xf32>
    %448 = math.tanh %447 : vector<1x128xf32>
    %449 = arith.mulf %444, %448 : vector<1x128xf32>
    %450 = vector.extract_strided_slice %449 {offsets = [0, 0], sizes = [1, 32], strides = [1, 1]} : vector<1x128xf32> to vector<1x32xf32>
    %cst_155 = arith.constant dense<0.000000e+00> : vector<1x128xf32>
    %451 = tpu.matmul %411, %1, %cst_155 {dimension_numbers = #tpu.dot_dimension_numbers<[1], [0], [0], [1], [0, 0, 1, 1], [], []>} : vector<1x32xf32>, vector<32x128xf32>, vector<1x128xf32> -> vector<1x128xf32>
    %452 = arith.addf %451, %5 : vector<1x128xf32>
    %cst_156 = arith.constant dense<0.000000e+00> : vector<1x128xf32>
    %453 = tpu.matmul %431, %3, %cst_156 {dimension_numbers = #tpu.dot_dimension_numbers<[1], [0], [0], [1], [0, 0, 1, 1], [], []>} : vector<1x32xf32>, vector<32x128xf32>, vector<1x128xf32> -> vector<1x128xf32>
    %454 = arith.addf %452, %453 : vector<1x128xf32>
    %455 = math.tanh %454 : vector<1x128xf32>
    %456 = arith.negf %454 : vector<1x128xf32>
    %457 = math.exp %456 : vector<1x128xf32>
    %cst_157 = arith.constant 1.000000e+00 : f32
    %458 = vector.broadcast %cst_157 : f32 to vector<1x128xf32>
    %459 = arith.addf %458, %457 : vector<1x128xf32>
    %460 = arith.divf %458, %459 : vector<1x128xf32>
    %461 = arith.select %18, %455, %460 : vector<1x128xi1>, vector<1x128xf32>
    %c96_i32_158 = arith.constant 96 : i32
    %462 = tpu.dynamic_rotate %461 by %c96_i32_158 dim 1 : vector<1x128xf32>, i32 -> vector<1x128xf32>
    %c64_i32_159 = arith.constant 64 : i32
    %463 = tpu.dynamic_rotate %461 by %c64_i32_159 dim 1 : vector<1x128xf32>, i32 -> vector<1x128xf32>
    %c32_i32_160 = arith.constant 32 : i32
    %464 = tpu.dynamic_rotate %461 by %c32_i32_160 dim 1 : vector<1x128xf32>, i32 -> vector<1x128xf32>
    %465 = arith.mulf %462, %428 : vector<1x128xf32>
    %466 = arith.mulf %461, %463 : vector<1x128xf32>
    %467 = arith.addf %465, %466 : vector<1x128xf32>
    %468 = math.tanh %467 : vector<1x128xf32>
    %469 = arith.mulf %464, %468 : vector<1x128xf32>
    %470 = vector.extract_strided_slice %469 {offsets = [0, 0], sizes = [1, 32], strides = [1, 1]} : vector<1x128xf32> to vector<1x32xf32>
    %c12 = arith.constant 12 : index
    %c0_161 = arith.constant 0 : index
    %471 = vector.load %arg10[%c12, %c0_161] : memref<16x128xf32, #tpu.memory_space<vmem>>, vector<1x128xf32>
    %cst_162 = arith.constant dense<0.000000e+00> : vector<1x128xf32>
    %472 = tpu.matmul %450, %2, %cst_162 {dimension_numbers = #tpu.dot_dimension_numbers<[1], [0], [0], [1], [0, 0, 1, 1], [], []>} : vector<1x32xf32>, vector<32x128xf32>, vector<1x128xf32> -> vector<1x128xf32>
    %473 = arith.addf %471, %472 : vector<1x128xf32>
    %474 = math.tanh %473 : vector<1x128xf32>
    %475 = arith.negf %473 : vector<1x128xf32>
    %476 = math.exp %475 : vector<1x128xf32>
    %cst_163 = arith.constant 1.000000e+00 : f32
    %477 = vector.broadcast %cst_163 : f32 to vector<1x128xf32>
    %478 = arith.addf %477, %476 : vector<1x128xf32>
    %479 = arith.divf %477, %478 : vector<1x128xf32>
    %480 = arith.select %18, %474, %479 : vector<1x128xi1>, vector<1x128xf32>
    %c96_i32_164 = arith.constant 96 : i32
    %481 = tpu.dynamic_rotate %480 by %c96_i32_164 dim 1 : vector<1x128xf32>, i32 -> vector<1x128xf32>
    %c64_i32_165 = arith.constant 64 : i32
    %482 = tpu.dynamic_rotate %480 by %c64_i32_165 dim 1 : vector<1x128xf32>, i32 -> vector<1x128xf32>
    %c32_i32_166 = arith.constant 32 : i32
    %483 = tpu.dynamic_rotate %480 by %c32_i32_166 dim 1 : vector<1x128xf32>, i32 -> vector<1x128xf32>
    %484 = arith.mulf %481, %447 : vector<1x128xf32>
    %485 = arith.mulf %480, %482 : vector<1x128xf32>
    %486 = arith.addf %484, %485 : vector<1x128xf32>
    %487 = math.tanh %486 : vector<1x128xf32>
    %488 = arith.mulf %483, %487 : vector<1x128xf32>
    %489 = vector.extract_strided_slice %488 {offsets = [0, 0], sizes = [1, 32], strides = [1, 1]} : vector<1x128xf32> to vector<1x32xf32>
    %cst_167 = arith.constant dense<0.000000e+00> : vector<1x128xf32>
    %490 = tpu.matmul %450, %1, %cst_167 {dimension_numbers = #tpu.dot_dimension_numbers<[1], [0], [0], [1], [0, 0, 1, 1], [], []>} : vector<1x32xf32>, vector<32x128xf32>, vector<1x128xf32> -> vector<1x128xf32>
    %491 = arith.addf %490, %5 : vector<1x128xf32>
    %cst_168 = arith.constant dense<0.000000e+00> : vector<1x128xf32>
    %492 = tpu.matmul %470, %3, %cst_168 {dimension_numbers = #tpu.dot_dimension_numbers<[1], [0], [0], [1], [0, 0, 1, 1], [], []>} : vector<1x32xf32>, vector<32x128xf32>, vector<1x128xf32> -> vector<1x128xf32>
    %493 = arith.addf %491, %492 : vector<1x128xf32>
    %494 = math.tanh %493 : vector<1x128xf32>
    %495 = arith.negf %493 : vector<1x128xf32>
    %496 = math.exp %495 : vector<1x128xf32>
    %cst_169 = arith.constant 1.000000e+00 : f32
    %497 = vector.broadcast %cst_169 : f32 to vector<1x128xf32>
    %498 = arith.addf %497, %496 : vector<1x128xf32>
    %499 = arith.divf %497, %498 : vector<1x128xf32>
    %500 = arith.select %18, %494, %499 : vector<1x128xi1>, vector<1x128xf32>
    %c96_i32_170 = arith.constant 96 : i32
    %501 = tpu.dynamic_rotate %500 by %c96_i32_170 dim 1 : vector<1x128xf32>, i32 -> vector<1x128xf32>
    %c64_i32_171 = arith.constant 64 : i32
    %502 = tpu.dynamic_rotate %500 by %c64_i32_171 dim 1 : vector<1x128xf32>, i32 -> vector<1x128xf32>
    %c32_i32_172 = arith.constant 32 : i32
    %503 = tpu.dynamic_rotate %500 by %c32_i32_172 dim 1 : vector<1x128xf32>, i32 -> vector<1x128xf32>
    %504 = arith.mulf %501, %467 : vector<1x128xf32>
    %505 = arith.mulf %500, %502 : vector<1x128xf32>
    %506 = arith.addf %504, %505 : vector<1x128xf32>
    %507 = math.tanh %506 : vector<1x128xf32>
    %508 = arith.mulf %503, %507 : vector<1x128xf32>
    %509 = vector.extract_strided_slice %508 {offsets = [0, 0], sizes = [1, 32], strides = [1, 1]} : vector<1x128xf32> to vector<1x32xf32>
    %c13 = arith.constant 13 : index
    %c0_173 = arith.constant 0 : index
    %510 = vector.load %arg10[%c13, %c0_173] : memref<16x128xf32, #tpu.memory_space<vmem>>, vector<1x128xf32>
    %cst_174 = arith.constant dense<0.000000e+00> : vector<1x128xf32>
    %511 = tpu.matmul %489, %2, %cst_174 {dimension_numbers = #tpu.dot_dimension_numbers<[1], [0], [0], [1], [0, 0, 1, 1], [], []>} : vector<1x32xf32>, vector<32x128xf32>, vector<1x128xf32> -> vector<1x128xf32>
    %512 = arith.addf %510, %511 : vector<1x128xf32>
    %513 = math.tanh %512 : vector<1x128xf32>
    %514 = arith.negf %512 : vector<1x128xf32>
    %515 = math.exp %514 : vector<1x128xf32>
    %cst_175 = arith.constant 1.000000e+00 : f32
    %516 = vector.broadcast %cst_175 : f32 to vector<1x128xf32>
    %517 = arith.addf %516, %515 : vector<1x128xf32>
    %518 = arith.divf %516, %517 : vector<1x128xf32>
    %519 = arith.select %18, %513, %518 : vector<1x128xi1>, vector<1x128xf32>
    %c96_i32_176 = arith.constant 96 : i32
    %520 = tpu.dynamic_rotate %519 by %c96_i32_176 dim 1 : vector<1x128xf32>, i32 -> vector<1x128xf32>
    %c64_i32_177 = arith.constant 64 : i32
    %521 = tpu.dynamic_rotate %519 by %c64_i32_177 dim 1 : vector<1x128xf32>, i32 -> vector<1x128xf32>
    %c32_i32_178 = arith.constant 32 : i32
    %522 = tpu.dynamic_rotate %519 by %c32_i32_178 dim 1 : vector<1x128xf32>, i32 -> vector<1x128xf32>
    %523 = arith.mulf %520, %486 : vector<1x128xf32>
    %524 = arith.mulf %519, %521 : vector<1x128xf32>
    %525 = arith.addf %523, %524 : vector<1x128xf32>
    %526 = math.tanh %525 : vector<1x128xf32>
    %527 = arith.mulf %522, %526 : vector<1x128xf32>
    %528 = vector.extract_strided_slice %527 {offsets = [0, 0], sizes = [1, 32], strides = [1, 1]} : vector<1x128xf32> to vector<1x32xf32>
    %cst_179 = arith.constant dense<0.000000e+00> : vector<1x128xf32>
    %529 = tpu.matmul %489, %1, %cst_179 {dimension_numbers = #tpu.dot_dimension_numbers<[1], [0], [0], [1], [0, 0, 1, 1], [], []>} : vector<1x32xf32>, vector<32x128xf32>, vector<1x128xf32> -> vector<1x128xf32>
    %530 = arith.addf %529, %5 : vector<1x128xf32>
    %cst_180 = arith.constant dense<0.000000e+00> : vector<1x128xf32>
    %531 = tpu.matmul %509, %3, %cst_180 {dimension_numbers = #tpu.dot_dimension_numbers<[1], [0], [0], [1], [0, 0, 1, 1], [], []>} : vector<1x32xf32>, vector<32x128xf32>, vector<1x128xf32> -> vector<1x128xf32>
    %532 = arith.addf %530, %531 : vector<1x128xf32>
    %533 = math.tanh %532 : vector<1x128xf32>
    %534 = arith.negf %532 : vector<1x128xf32>
    %535 = math.exp %534 : vector<1x128xf32>
    %cst_181 = arith.constant 1.000000e+00 : f32
    %536 = vector.broadcast %cst_181 : f32 to vector<1x128xf32>
    %537 = arith.addf %536, %535 : vector<1x128xf32>
    %538 = arith.divf %536, %537 : vector<1x128xf32>
    %539 = arith.select %18, %533, %538 : vector<1x128xi1>, vector<1x128xf32>
    %c96_i32_182 = arith.constant 96 : i32
    %540 = tpu.dynamic_rotate %539 by %c96_i32_182 dim 1 : vector<1x128xf32>, i32 -> vector<1x128xf32>
    %c64_i32_183 = arith.constant 64 : i32
    %541 = tpu.dynamic_rotate %539 by %c64_i32_183 dim 1 : vector<1x128xf32>, i32 -> vector<1x128xf32>
    %c32_i32_184 = arith.constant 32 : i32
    %542 = tpu.dynamic_rotate %539 by %c32_i32_184 dim 1 : vector<1x128xf32>, i32 -> vector<1x128xf32>
    %543 = arith.mulf %540, %506 : vector<1x128xf32>
    %544 = arith.mulf %539, %541 : vector<1x128xf32>
    %545 = arith.addf %543, %544 : vector<1x128xf32>
    %546 = math.tanh %545 : vector<1x128xf32>
    %547 = arith.mulf %542, %546 : vector<1x128xf32>
    %548 = vector.extract_strided_slice %547 {offsets = [0, 0], sizes = [1, 32], strides = [1, 1]} : vector<1x128xf32> to vector<1x32xf32>
    %c0_185 = arith.constant 0 : index
    %c0_186 = arith.constant 0 : index
    %549 = vector.load %arg11[%c0_185, %c0_186] : memref<4x32xf32, #tpu.memory_space<vmem>>, vector<1x32xf32>
    tpu.vector_store %arg11[%c0_185, %c0_186], %548 {strides = array<i32>} : memref<4x32xf32, #tpu.memory_space<vmem>>, vector<1x32xf32>,
    %c14 = arith.constant 14 : index
    %c0_187 = arith.constant 0 : index
    %550 = vector.load %arg10[%c14, %c0_187] : memref<16x128xf32, #tpu.memory_space<vmem>>, vector<1x128xf32>
    %cst_188 = arith.constant dense<0.000000e+00> : vector<1x128xf32>
    %551 = tpu.matmul %528, %2, %cst_188 {dimension_numbers = #tpu.dot_dimension_numbers<[1], [0], [0], [1], [0, 0, 1, 1], [], []>} : vector<1x32xf32>, vector<32x128xf32>, vector<1x128xf32> -> vector<1x128xf32>
    %552 = arith.addf %550, %551 : vector<1x128xf32>
    %553 = math.tanh %552 : vector<1x128xf32>
    %554 = arith.negf %552 : vector<1x128xf32>
    %555 = math.exp %554 : vector<1x128xf32>
    %cst_189 = arith.constant 1.000000e+00 : f32
    %556 = vector.broadcast %cst_189 : f32 to vector<1x128xf32>
    %557 = arith.addf %556, %555 : vector<1x128xf32>
    %558 = arith.divf %556, %557 : vector<1x128xf32>
    %559 = arith.select %18, %553, %558 : vector<1x128xi1>, vector<1x128xf32>
    %c96_i32_190 = arith.constant 96 : i32
    %560 = tpu.dynamic_rotate %559 by %c96_i32_190 dim 1 : vector<1x128xf32>, i32 -> vector<1x128xf32>
    %c64_i32_191 = arith.constant 64 : i32
    %561 = tpu.dynamic_rotate %559 by %c64_i32_191 dim 1 : vector<1x128xf32>, i32 -> vector<1x128xf32>
    %c32_i32_192 = arith.constant 32 : i32
    %562 = tpu.dynamic_rotate %559 by %c32_i32_192 dim 1 : vector<1x128xf32>, i32 -> vector<1x128xf32>
    %563 = arith.mulf %560, %525 : vector<1x128xf32>
    %564 = arith.mulf %559, %561 : vector<1x128xf32>
    %565 = arith.addf %563, %564 : vector<1x128xf32>
    %566 = math.tanh %565 : vector<1x128xf32>
    %567 = arith.mulf %562, %566 : vector<1x128xf32>
    %568 = vector.extract_strided_slice %567 {offsets = [0, 0], sizes = [1, 32], strides = [1, 1]} : vector<1x128xf32> to vector<1x32xf32>
    %cst_193 = arith.constant dense<0.000000e+00> : vector<1x128xf32>
    %569 = tpu.matmul %528, %1, %cst_193 {dimension_numbers = #tpu.dot_dimension_numbers<[1], [0], [0], [1], [0, 0, 1, 1], [], []>} : vector<1x32xf32>, vector<32x128xf32>, vector<1x128xf32> -> vector<1x128xf32>
    %570 = arith.addf %569, %5 : vector<1x128xf32>
    %cst_194 = arith.constant dense<0.000000e+00> : vector<1x128xf32>
    %571 = tpu.matmul %548, %3, %cst_194 {dimension_numbers = #tpu.dot_dimension_numbers<[1], [0], [0], [1], [0, 0, 1, 1], [], []>} : vector<1x32xf32>, vector<32x128xf32>, vector<1x128xf32> -> vector<1x128xf32>
    %572 = arith.addf %570, %571 : vector<1x128xf32>
    %573 = math.tanh %572 : vector<1x128xf32>
    %574 = arith.negf %572 : vector<1x128xf32>
    %575 = math.exp %574 : vector<1x128xf32>
    %cst_195 = arith.constant 1.000000e+00 : f32
    %576 = vector.broadcast %cst_195 : f32 to vector<1x128xf32>
    %577 = arith.addf %576, %575 : vector<1x128xf32>
    %578 = arith.divf %576, %577 : vector<1x128xf32>
    %579 = arith.select %18, %573, %578 : vector<1x128xi1>, vector<1x128xf32>
    %c96_i32_196 = arith.constant 96 : i32
    %580 = tpu.dynamic_rotate %579 by %c96_i32_196 dim 1 : vector<1x128xf32>, i32 -> vector<1x128xf32>
    %c64_i32_197 = arith.constant 64 : i32
    %581 = tpu.dynamic_rotate %579 by %c64_i32_197 dim 1 : vector<1x128xf32>, i32 -> vector<1x128xf32>
    %c32_i32_198 = arith.constant 32 : i32
    %582 = tpu.dynamic_rotate %579 by %c32_i32_198 dim 1 : vector<1x128xf32>, i32 -> vector<1x128xf32>
    %583 = arith.mulf %580, %545 : vector<1x128xf32>
    %584 = arith.mulf %579, %581 : vector<1x128xf32>
    %585 = arith.addf %583, %584 : vector<1x128xf32>
    %586 = math.tanh %585 : vector<1x128xf32>
    %587 = arith.mulf %582, %586 : vector<1x128xf32>
    %588 = vector.extract_strided_slice %587 {offsets = [0, 0], sizes = [1, 32], strides = [1, 1]} : vector<1x128xf32> to vector<1x32xf32>
    %c1_199 = arith.constant 1 : index
    %c0_200 = arith.constant 0 : index
    %589 = vector.load %arg11[%c1_199, %c0_200] : memref<4x32xf32, #tpu.memory_space<vmem>>, vector<1x32xf32>
    tpu.vector_store %arg11[%c1_199, %c0_200], %588 {strides = array<i32>} : memref<4x32xf32, #tpu.memory_space<vmem>>, vector<1x32xf32>,
    %c15 = arith.constant 15 : index
    %c0_201 = arith.constant 0 : index
    %590 = vector.load %arg10[%c15, %c0_201] : memref<16x128xf32, #tpu.memory_space<vmem>>, vector<1x128xf32>
    %cst_202 = arith.constant dense<0.000000e+00> : vector<1x128xf32>
    %591 = tpu.matmul %568, %2, %cst_202 {dimension_numbers = #tpu.dot_dimension_numbers<[1], [0], [0], [1], [0, 0, 1, 1], [], []>} : vector<1x32xf32>, vector<32x128xf32>, vector<1x128xf32> -> vector<1x128xf32>
    %592 = arith.addf %590, %591 : vector<1x128xf32>
    %593 = math.tanh %592 : vector<1x128xf32>
    %594 = arith.negf %592 : vector<1x128xf32>
    %595 = math.exp %594 : vector<1x128xf32>
    %cst_203 = arith.constant 1.000000e+00 : f32
    %596 = vector.broadcast %cst_203 : f32 to vector<1x128xf32>
    %597 = arith.addf %596, %595 : vector<1x128xf32>
    %598 = arith.divf %596, %597 : vector<1x128xf32>
    %599 = arith.select %18, %593, %598 : vector<1x128xi1>, vector<1x128xf32>
    %c96_i32_204 = arith.constant 96 : i32
    %600 = tpu.dynamic_rotate %599 by %c96_i32_204 dim 1 : vector<1x128xf32>, i32 -> vector<1x128xf32>
    %c64_i32_205 = arith.constant 64 : i32
    %601 = tpu.dynamic_rotate %599 by %c64_i32_205 dim 1 : vector<1x128xf32>, i32 -> vector<1x128xf32>
    %c32_i32_206 = arith.constant 32 : i32
    %602 = tpu.dynamic_rotate %599 by %c32_i32_206 dim 1 : vector<1x128xf32>, i32 -> vector<1x128xf32>
    %603 = arith.mulf %600, %565 : vector<1x128xf32>
    %604 = arith.mulf %599, %601 : vector<1x128xf32>
    %605 = arith.addf %603, %604 : vector<1x128xf32>
    %606 = math.tanh %605 : vector<1x128xf32>
    %607 = arith.mulf %602, %606 : vector<1x128xf32>
    %608 = vector.extract_strided_slice %607 {offsets = [0, 0], sizes = [1, 32], strides = [1, 1]} : vector<1x128xf32> to vector<1x32xf32>
    %cst_207 = arith.constant dense<0.000000e+00> : vector<1x128xf32>
    %609 = tpu.matmul %568, %1, %cst_207 {dimension_numbers = #tpu.dot_dimension_numbers<[1], [0], [0], [1], [0, 0, 1, 1], [], []>} : vector<1x32xf32>, vector<32x128xf32>, vector<1x128xf32> -> vector<1x128xf32>
    %610 = arith.addf %609, %5 : vector<1x128xf32>
    %cst_208 = arith.constant dense<0.000000e+00> : vector<1x128xf32>
    %611 = tpu.matmul %588, %3, %cst_208 {dimension_numbers = #tpu.dot_dimension_numbers<[1], [0], [0], [1], [0, 0, 1, 1], [], []>} : vector<1x32xf32>, vector<32x128xf32>, vector<1x128xf32> -> vector<1x128xf32>
    %612 = arith.addf %610, %611 : vector<1x128xf32>
    %613 = math.tanh %612 : vector<1x128xf32>
    %614 = arith.negf %612 : vector<1x128xf32>
    %615 = math.exp %614 : vector<1x128xf32>
    %cst_209 = arith.constant 1.000000e+00 : f32
    %616 = vector.broadcast %cst_209 : f32 to vector<1x128xf32>
    %617 = arith.addf %616, %615 : vector<1x128xf32>
    %618 = arith.divf %616, %617 : vector<1x128xf32>
    %619 = arith.select %18, %613, %618 : vector<1x128xi1>, vector<1x128xf32>
    %c96_i32_210 = arith.constant 96 : i32
    %620 = tpu.dynamic_rotate %619 by %c96_i32_210 dim 1 : vector<1x128xf32>, i32 -> vector<1x128xf32>
    %c64_i32_211 = arith.constant 64 : i32
    %621 = tpu.dynamic_rotate %619 by %c64_i32_211 dim 1 : vector<1x128xf32>, i32 -> vector<1x128xf32>
    %c32_i32_212 = arith.constant 32 : i32
    %622 = tpu.dynamic_rotate %619 by %c32_i32_212 dim 1 : vector<1x128xf32>, i32 -> vector<1x128xf32>
    %623 = arith.mulf %620, %585 : vector<1x128xf32>
    %624 = arith.mulf %619, %621 : vector<1x128xf32>
    %625 = arith.addf %623, %624 : vector<1x128xf32>
    %626 = math.tanh %625 : vector<1x128xf32>
    %627 = arith.mulf %622, %626 : vector<1x128xf32>
    %628 = vector.extract_strided_slice %627 {offsets = [0, 0], sizes = [1, 32], strides = [1, 1]} : vector<1x128xf32> to vector<1x32xf32>
    %c2_213 = arith.constant 2 : index
    %c0_214 = arith.constant 0 : index
    %629 = vector.load %arg11[%c2_213, %c0_214] : memref<4x32xf32, #tpu.memory_space<vmem>>, vector<1x32xf32>
    tpu.vector_store %arg11[%c2_213, %c0_214], %628 {strides = array<i32>} : memref<4x32xf32, #tpu.memory_space<vmem>>, vector<1x32xf32>,
    %cst_215 = arith.constant dense<0.000000e+00> : vector<1x128xf32>
    %630 = tpu.matmul %608, %1, %cst_215 {dimension_numbers = #tpu.dot_dimension_numbers<[1], [0], [0], [1], [0, 0, 1, 1], [], []>} : vector<1x32xf32>, vector<32x128xf32>, vector<1x128xf32> -> vector<1x128xf32>
    %631 = arith.addf %630, %5 : vector<1x128xf32>
    %cst_216 = arith.constant dense<0.000000e+00> : vector<1x128xf32>
    %632 = tpu.matmul %628, %3, %cst_216 {dimension_numbers = #tpu.dot_dimension_numbers<[1], [0], [0], [1], [0, 0, 1, 1], [], []>} : vector<1x32xf32>, vector<32x128xf32>, vector<1x128xf32> -> vector<1x128xf32>
    %633 = arith.addf %631, %632 : vector<1x128xf32>
    %634 = math.tanh %633 : vector<1x128xf32>
    %635 = arith.negf %633 : vector<1x128xf32>
    %636 = math.exp %635 : vector<1x128xf32>
    %cst_217 = arith.constant 1.000000e+00 : f32
    %637 = vector.broadcast %cst_217 : f32 to vector<1x128xf32>
    %638 = arith.addf %637, %636 : vector<1x128xf32>
    %639 = arith.divf %637, %638 : vector<1x128xf32>
    %640 = arith.select %18, %634, %639 : vector<1x128xi1>, vector<1x128xf32>
    %c96_i32_218 = arith.constant 96 : i32
    %641 = tpu.dynamic_rotate %640 by %c96_i32_218 dim 1 : vector<1x128xf32>, i32 -> vector<1x128xf32>
    %c64_i32_219 = arith.constant 64 : i32
    %642 = tpu.dynamic_rotate %640 by %c64_i32_219 dim 1 : vector<1x128xf32>, i32 -> vector<1x128xf32>
    %c32_i32_220 = arith.constant 32 : i32
    %643 = tpu.dynamic_rotate %640 by %c32_i32_220 dim 1 : vector<1x128xf32>, i32 -> vector<1x128xf32>
    %644 = arith.mulf %641, %625 : vector<1x128xf32>
    %645 = arith.mulf %640, %642 : vector<1x128xf32>
    %646 = arith.addf %644, %645 : vector<1x128xf32>
    %647 = math.tanh %646 : vector<1x128xf32>
    %648 = arith.mulf %643, %647 : vector<1x128xf32>
    %649 = vector.extract_strided_slice %648 {offsets = [0, 0], sizes = [1, 32], strides = [1, 1]} : vector<1x128xf32> to vector<1x32xf32>
    %c3_221 = arith.constant 3 : index
    %c0_222 = arith.constant 0 : index
    %650 = vector.load %arg11[%c3_221, %c0_222] : memref<4x32xf32, #tpu.memory_space<vmem>>, vector<1x32xf32>
    tpu.vector_store %arg11[%c3_221, %c0_222], %649 {strides = array<i32>} : memref<4x32xf32, #tpu.memory_space<vmem>>, vector<1x32xf32>,
    %c0_223 = arith.constant 0 : index
    %c0_224 = arith.constant 0 : index
    %651 = vector.load %arg11[%c0_223, %c0_224] : memref<4x32xf32, #tpu.memory_space<vmem>>, vector<4x32xf32>
    %652 = vector.broadcast %6 : vector<1x32xf32> to vector<4x32xf32>
    %653 = arith.mulf %651, %652 : vector<4x32xf32>
    %cst_225 = arith.constant dense<0.000000e+00> : vector<4xf32>
    %654 = vector.multi_reduction <add>, %653, %cst_225 [1] : vector<4x32xf32> to vector<4xf32>
    %655 = vector.shape_cast %654 : vector<4xf32> to vector<4x1xf32>
    %656 = vector.broadcast %7 : vector<1x1xf32> to vector<4x1xf32>
    %657 = arith.addf %655, %656 : vector<4x1xf32>
    %c0_226 = arith.constant 0 : index
    %c0_227 = arith.constant 0 : index
    %658 = vector.load %arg9[%c0_226, %c0_227] : memref<4x1xf32, #tpu.memory_space<vmem>>, vector<4x1xf32>
    tpu.vector_store %arg9[%c0_226, %c0_227], %657 {strides = array<i32>} : memref<4x1xf32, #tpu.memory_space<vmem>>, vector<4x1xf32>,
    return
  }
}

</mosaic_0001>

<bundles_post_ra>
// kernel: tpu_custom_call.1
= control target key start
LH: loop header
LB: loop body
LE: loop exit
PB: predicated region body
PF: predicated region fallthrough
CT: control target
= control target key end

     0   :  { %s6603_s0 = inlined_call_operand.vmem [shape: f32[16,4], index: 0, kind: input, shape index: {}]   ;;  %s6604_s1 = inlined_call_operand.vmem [shape: f32[4,128], index: 1, kind: input, shape index: {}]   ;;  %s6605_s2 = inlined_call_operand.hbm [shape: f32[32,128], index: 2, kind: input, shape index: {}]   ;;  %s6606_s3 = inlined_call_operand.vmem [shape: f32[1,128], index: 3, kind: input, shape index: {}]   ;;  %s6607_s4 = inlined_call_operand.vmem [shape: f32[32,128], index: 4, kind: input, shape index: {}]   ;;  %s6608_s5 = inlined_call_operand.hbm [shape: f32[32,128], index: 5, kind: input, shape index: {}]   ;;  %s6609_s6 = inlined_call_operand.vmem [shape: f32[1,128], index: 6, kind: input, shape index: {}]   ;;  %s6610_s7 = inlined_call_operand.vmem [shape: f32[1,32], index: 7, kind: input, shape index: {}]   ;;  %s6611_s8 = inlined_call_operand.<no memory space> [shape: f32[1,1], index: 8, kind: input, shape index: {}]   ;;  %s6612_s9 = inlined_call_operand.vmem [shape: f32[4,1], index: 9, kind: output, shape index: {}]  }
   0x1   :  { %v14_v0 = vstv %s6611_s8 }
   0x2   :  { %15 = vst [vmem:[#allocation4] sm:$0x1] %v14_v0 }
   0x3   :  { %16 = vsyncpa [#allocation6], 0 }
   0x4   :  { %17 = vsyncpa [#allocation8], 0  ;;  %s5836_s11 = smov [#allocation5]   ;;  %s5788_s15 = scalar_lea.hbm %s6605_s2, 512 }
   0x5   :  { %s27_s12 = sshll.u32 %s5836_s11, 4  ;;  %p5789_p0 = scmp.ne.s32.totalorder %s6605_s2, %s5788_s15  ;;  %s28_s12 = int_to_ptr.vmem [resolvable:$true] %s27_s12 }
   0x6   :  { %p5792_p1 = scmp.lt.u32.totalorder %s5788_s15, %s6605_s2 }
   0x8   :  { %p5794_p2 = pnand %p5792_p1, %p5789_p0 }
   0xa   :  { %5797 = shalt.err (!%p5794_p2)
}
   0xb   :  { %s5798_s8 = scalar_lea.vmem %s28_s12, 512  ;;  %p5803_p4 = scmp.lt.s32.totalorder %s28_s12, %s28_s12 }
   0xc   :  { %p5799_p3 = scmp.ne.s32.totalorder %s28_s12, %s5798_s8  ;;  %p5804_p5 = scmp.lt.s32.totalorder %s5798_s8, %s5798_s8 }
   0xe   :  { %p5805_p6 = por %p5804_p5, %p5803_p4 }
  0x10   :  { %p5806_p7 = pnand %p5805_p6, %p5799_p3 }
  0x12   :  { %5809 = shalt.err (!%p5806_p7)
}
  0x13   :  { %s5837_s20 = smov 128   ;;  %s5838_s21 = smov 8  }
  0x14   :  { %33 = dma.hbm_to_vmem [thread:$0]  %s6605_s2, 512, %s28_s12, [#allocation6], %s5837_s20, %s5837_s20, %s5838_s21  }
  0x15   :  { %s5839_s24 = smov [#allocation7]   ;;  %s5810_s28 = scalar_lea.hbm %s6608_s5, 512 }
  0x16   :  { %s43_s25 = sshll.u32 %s5839_s24, 4  ;;  %p5811_p8 = scmp.ne.s32.totalorder %s6608_s5, %s5810_s28  ;;  %s44_s25 = int_to_ptr.vmem [resolvable:$true] %s43_s25 }
  0x17   :  { %p5814_p9 = scmp.lt.u32.totalorder %s5810_s28, %s6608_s5 }
  0x19   :  { %p5816_p10 = pnand %p5814_p9, %p5811_p8 }
  0x1b   :  { %5819 = shalt.err (!%p5816_p10)
}
  0x1c   :  { %s5820_s13 = scalar_lea.vmem %s44_s25, 512  ;;  %p5825_p12 = scmp.lt.s32.totalorder %s44_s25, %s44_s25 }
  0x1d   :  { %p5821_p11 = scmp.ne.s32.totalorder %s44_s25, %s5820_s13  ;;  %p5826_p13 = scmp.lt.s32.totalorder %s5820_s13, %s5820_s13 }
  0x1f   :  { %p5827_p0 = por %p5826_p13, %p5825_p12 }
  0x21   :  { %p5828_p1 = pnand %p5827_p0, %p5821_p11 }
  0x23   :  { %5831 = shalt.err (!%p5828_p1)
}
  0x24   :  { %49 = dma.hbm_to_vmem [thread:$0]  %s6608_s5, 512, %s44_s25, [#allocation8], %s5837_s20, %s5837_s20, %s5838_s21  }
  0x25   :  { %5832 = dma.done.wait [#allocation6], 512  }
  0x26   :  { %5833 = vsyncadd [#allocation6], 4294966784 }
  0x27   :  { %5834 = dma.done.wait [#allocation8], 512  }
  0x28   :  { %5835 = vsyncadd [#allocation8], 4294966784  ;;  %v5840_v1 = vmov 0.0|0.0   ;;  %vm5841_vm0 = vmmov 0   ;;  %v5842_v2 = vmov 0.0   ;;  %vm94_vm1 = vcmask 1043456  }
  0x29   :  { %5185 = vmatprep.subr.bf16.mxu1 %v5840_v1  ;;  %4665 = vmatprep.mubr.msk.f32.mxu1 %vm5841_vm0, %v5842_v2  ;;  %vm87_vm2 = vcmask 31744   ;;  %v62_v3 = vld [vmem:[%s6604_s1] sm:$0xf]  ;;  %v80_v5 = vld [vmem:[%s6603_s0 + $0x8] sm:$0xff]  ;;  %v67_v6 = vld [vmem:[#allocation5] sm:$0xff]  ;;  %v175_v23 = vlaneseq  ;;  %s5843_s25 = smov 32  }
  0x2a   :  { %v79_v4 = vld [vmem:[%s6603_s0] sm:$0xff]  ;;  %4652 = vmatprep.subr.msk.mxu0 %vm94_vm1, %v62_v3  ;;  %v70_v10 = vld [vmem:[#allocation5 + $0x18] sm:$0xff]  ;;  %v66_v31 = vld [vmem:[%s6607_s4 + $0x18] sm:$0xff]  ;;  %s5844_s26 = smov 96   ;;  %vm181_vm6 = vcmask 261120   ;;  %vm3613_vm7 = vcmask 253952  }
  0x2b   :  { %4654 = vmatprep.mubr.msk.f32.mxu0 %vm87_vm2, %v79_v4  ;;  %v68_v7 = vld [vmem:[#allocation5 + $0x8] sm:$0xff]  ;;  %v69_v8 = vld [vmem:[#allocation5 + $0x10] sm:$0xff]  ;;  %4653 = vmatpush3.msk.msra.mxu0 %vm94_vm1, %v62_v3  ;;  %v176_v25 = vand.u32 127, %v175_v23  ;;  %v65_v28 = vld [vmem:[%s6607_s4 + $0x10] sm:$0xff]  ;;  %vm4306_vm8 = vcmask 257024   ;;  %vm4317_vm9 = vcmask 3072  }
  0x2c   :  { %v5935_v9 = vpack.c.bf16 %v68_v7, %v67_v6  ;;  %4655 = vmatmul.mubr.msk.f32.vlgmr.msra.gmra.mrb[0].mxu0 %vm87_vm2, %v80_v5  ;;  %5191 = vmatprep.subr.bf16.mxu0 %v5840_v1  ;;  %v5939_v11 = vpack.c.bf16 %v70_v10, %v69_v8  ;;  %v4325_v12 = vld [vmem:[%s6606_s3] ss:$0 sm:$0xff]  ;;  %v64_v27 = vld [vmem:[%s6607_s4 + $0x8] sm:$0xff]  ;;  %v5975_v34 = vpack.c.bf16 %v66_v31, %v65_v28  ;;  %v71_v41 = vld [vmem:[#allocation7] sm:$0xff] }
  0x2d   :  { %4676 = vmatprep.mubr.msk.f32.mxu0 %vm5841_vm0, %v5842_v2  ;;  %vm177_vm3 = vcmp.ge.s32.totalorder %v176_v25, 64  ;;  %vm178_vm4 = vcmp.lt.s32.totalorder %v176_v25, 96  ;;  %v63_v26 = vld [vmem:[%s6607_s4] sm:$0xff]  ;;  %s5845_s4 = smov 64   ;;  %v74_v48 = vld [vmem:[#allocation7 + $0x18] sm:$0xff] }
  0x2e   :  { %5187 = vmatpush3.bf16.msra.mxu1 %v5935_v9  ;;  %5193 = vmatpush3.bf16.msra.mxu0 %v5935_v9  ;;  %vm5965_vm5 = vmand %vm177_vm3, %vm178_vm4  ;;  %v5969_v30 = vpack.c.bf16 %v64_v27, %v63_v26  ;;  %v72_v42 = vld [vmem:[#allocation7 + $0x8] sm:$0xff]  ;;  %v73_v47 = vld [vmem:[#allocation7 + $0x10] sm:$0xff] }
  0x2f   :  { %5188 = vmatprep.subr.bf16.mxu1 %v5840_v1  ;;  %5194 = vmatprep.subr.bf16.mxu0 %v5840_v1  ;;  %v5988_v45 = vpack.c.bf16 %v72_v42, %v71_v41  ;;  %v5993_v49 = vpack.c.bf16 %v74_v48, %v73_v47  ;;  %v6016_v55 = vld [vmem:[%s6609_s6] sm:$0x1] }
  0x30   :  { %v4407_v29 = vld [vmem:[%s6610_s7] ss:$0 sm:$0xff] }
  0x32   :  { %5190 = vmatpush3.bf16.msra.mxu1 %v5939_v11  ;;  %5196 = vmatpush3.bf16.msra.mxu0 %v5939_v11 }
  0x33   :  { %5197 = vmatprep.subr.bf16.mxu1 %v5840_v1  ;;  %5209 = vmatprep.subr.bf16.mxu0 %v5840_v1 }
  0x35   :  { %4666 = vmatmul.mubr.f32.vlgmr.msra.gmra.mrb[0].mxu1 %v5842_v2 }
  0x36   :  { %4687 = vmatprep.mubr.msk.f32.mxu1 %vm5841_vm0, %v5842_v2  ;;  %5199 = vmatpush3.bf16.msra.mxu1 %v5969_v30 }
  0x37   :  { %5200 = vmatprep.subr.bf16.mxu1 %v5840_v1 }
  0x3a   :  { %5202 = vmatpush3.bf16.msra.mxu1 %v5975_v34 }
  0x3b   :  { %5203 = vmatprep.subr.bf16.mxu1 %v5840_v1 }
  0xff   :  { %v4656_v13 = vpop.f32.mrb[0].mxu0 }
 0x100   :  { %v170_v14 = vadd.f32 %v4656_v13, %v4325_v12  ;;  %v164_v15 = vpop.f32.mrb[1].mxu0 }
 0x101   :  { %v165_v16 = vadd.f32 %v4325_v12, %v164_v15 }
 0x102   :  { %174 = vst [vmem:[#allocation2 + $0x8] sm:$0xff] %v170_v14 }
 0x103   :  { %173 = vst [vmem:[#allocation2] sm:$0xff] %v165_v16 }
 0x108   :  { %v251_v17 = vpop.f32.mrb[0].mxu1 }
 0x109   :  { %v4667_v18 = vpop.f32.mrb[1].mxu1 }
 0x10a   :  { %v180_v19 = vld [vmem:[#allocation2] sm:$0x1]  ;;  %v275_v50 = vld [vmem:[#allocation2 + $0x1] sm:$0x1]  ;;  %v529_v26 = vld [vmem:[#allocation2 + $0x2] sm:$0x1] }
 0x10b   :  { %v255_v20 = vadd.f32 %v251_v17, %v180_v19 }
 0x10d   :  { %v4329_v21 = vmul.f32 -1.442695, %v255_v20 }
 0x10f   :  { %5531 = vpow2.f32 %v4329_v21 }
 0x110   :  { %5533 = vtanh.f32 %v255_v20 }
 0x119   :  { %v5532_v22 = vpop.eup %5531 }
 0x11a   :  { %v260_v24 = vadd.f32 1.0, %v5532_v22  ;;  %v5534_v32 = vpop.eup %5533 }
 0x11c   :  { %5535 = vrcp.f32 %v260_v24 }
 0x126   :  { %v5536_v33 = vpop.eup %5535 }
 0x127   :  { %v263_v35 = vsel %vm5965_vm5, %v5534_v32, %v5536_v33 }
 0x128   :  { %268 = vrot.lane.b32.xlu1 %v263_v35, %s5843_s25  ;;  %264 = vrot.lane.b32.xlu0 %v263_v35, %s5844_s26 }
 0x12c   :  { %266 = vrot.lane.b32.xlu0 %v263_v35, %s5845_s4 }
 0x19a   :  { %v265_v36 = vpop.permute.xlu0 %264  ;;  %v269_v44 = vpop.permute.xlu1 %268 }
 0x19b   :  { %v270_v38 = vmul.f32 0.0, %v265_v36 }
 0x19e   :  { %v267_v37 = vpop.permute.xlu0 %266 }
 0x19f   :  { %v271_v39 = vmul.f32 %v267_v37, %v263_v35 }
 0x1a1   :  { %v5985_v40 = vadd.f32 %v271_v39, %v270_v38 }
 0x1a3   :  { %5537 = vtanh.f32 %v5985_v40 }
 0x1ad   :  { %v5538_v43 = vpop.eup %5537 }
 0x1ae   :  { %v274_v46 = vmul.f32 %v5538_v43, %v269_v44 }
 0x1b0   :  { %4677 = vmatmul.mubr.msk.f32.vlgmr.msra.gmra.mrb[2].mxu0 %vm181_vm6, %v274_v46  ;;  %4688 = vmatmul.mubr.msk.f32.vlgmr.msra.gmra.mrb[2].mxu1 %vm181_vm6, %v274_v46 }
 0x1b1   :  { %5205 = vmatpush3.bf16.msra.mxu1 %v5988_v45  ;;  %4698 = vmatprep.mubr.msk.f32.mxu1 %vm5841_vm0, %v5842_v2 }
 0x1b2   :  { %5206 = vmatprep.subr.bf16.mxu1 %v5840_v1  ;;  %5211 = vmatpush3.bf16.msra.mxu0 %v5935_v9 }
 0x1b3   :  { %5212 = vmatprep.subr.bf16.mxu0 %v5840_v1  ;;  %4709 = vmatprep.mubr.msk.f32.mxu0 %vm5841_vm0, %v5842_v2 }
 0x1b5   :  { %5208 = vmatpush3.bf16.msra.mxu1 %v5993_v49 }
 0x1b6   :  { %5214 = vmatpush3.bf16.msra.mxu0 %v5939_v11  ;;  %5227 = vmatprep.subr.bf16.mxu1 %v5840_v1 }
 0x1b7   :  { %5215 = vmatprep.subr.bf16.mxu0 %v5840_v1 }
 0x1b8   :  { %4699 = vmatmul.mubr.f32.vlgmr.msra.gmra.mrb[2].mxu1 %v5842_v2 }
 0x1b9   :  { %5229 = vmatpush3.bf16.msra.mxu1 %v5935_v9  ;;  %4742 = vmatprep.mubr.msk.f32.mxu1 %vm5841_vm0, %v5842_v2 }
 0x1ba   :  { %5230 = vmatprep.subr.bf16.mxu1 %v5840_v1 }
 0x1bd   :  { %5232 = vmatpush3.bf16.msra.mxu1 %v5939_v11 }
 0x1be   :  { %5233 = vmatprep.subr.bf16.mxu1 %v5840_v1 }
 0x283   :  { %v345_v51 = vpop.f32.mrb[2].mxu0 }
 0x284   :  { %v349_v52 = vadd.f32 %v345_v51, %v275_v50  ;;  %v4678_v53 = vpop.f32.mrb[3].mxu0 }
 0x286   :  { %v4331_v54 = vmul.f32 -1.442695, %v349_v52 }
 0x288   :  { %5539 = vpow2.f32 %v4331_v54 }
 0x28b   :  { %v505_v56 = vpop.f32.mrb[2].mxu1 }
 0x28c   :  { %v5473_v57 = vadd.f32 %v505_v56, %v6016_v55  ;;  %v4700_v58 = vpop.f32.mrb[3].mxu1 }
 0x28e   :  { %v4333_v59 = vmul.f32 -1.442695, %v5473_v57 }
 0x290   :  { %5541 = vpow2.f32 %v4333_v59 }
 0x291   :  { %5543 = vtanh.f32 %v349_v52 }
 0x292   :  { %v5540_v60 = vpop.eup %5539 }
 0x293   :  { %v354_v61 = vadd.f32 1.0, %v5540_v60 }
 0x295   :  { %5545 = vrcp.f32 %v354_v61 }
 0x296   :  { %5547 = vtanh.f32 %v5473_v57 }
 0x29a   :  { %v5542_v62 = vpop.eup %5541 }
 0x29b   :  { %v514_v63 = vadd.f32 1.0, %v5542_v62  ;;  %v5544_v0 = vpop.eup %5543 }
 0x29d   :  { %5549 = vrcp.f32 %v514_v63 }
 0x29f   :  { %v5546_v3 = vpop.eup %5545 }
 0x2a0   :  { %v357_v4 = vsel %vm5965_vm5, %v5544_v0, %v5546_v3  ;;  %v5548_v5 = vpop.eup %5547 }
 0x2a1   :  { %360 = vrot.lane.b32.xlu0 %v357_v4, %s5845_s4  ;;  %358 = vrot.lane.b32.xlu1 %v357_v4, %s5844_s26 }
 0x2a5   :  { %362 = vrot.lane.b32.xlu1 %v357_v4, %s5843_s25 }
 0x2a7   :  { %v5550_v6 = vpop.eup %5549 }
 0x2a8   :  { %v517_v7 = vsel %vm5965_vm5, %v5548_v5, %v5550_v6  ;;  %v786_v5 = vld [vmem:[#allocation2 + $0x3] sm:$0x1] }
 0x2a9   :  { %518 = vrot.lane.b32.xlu0 %v517_v7, %s5844_s26  ;;  %520 = vrot.lane.b32.xlu1 %v517_v7, %s5845_s4 }
 0x2ad   :  { %522 = vrot.lane.b32.xlu0 %v517_v7, %s5843_s25 }
 0x313   :  { %v361_v8 = vpop.permute.xlu0 %360  ;;  %v359_v10 = vpop.permute.xlu1 %358 }
 0x314   :  { %v365_v12 = vmul.f32 %v361_v8, %v357_v4  ;;  %v364_v13 = vmul.f32 %v359_v10, %v5985_v40 }
 0x316   :  { %v6030_v14 = vadd.f32 %v365_v12, %v364_v13 }
 0x317   :  { %v363_v15 = vpop.permute.xlu1 %362 }
 0x318   :  { %5551 = vtanh.f32 %v6030_v14 }
 0x31b   :  { %v519_v16 = vpop.permute.xlu0 %518  ;;  %v521_v17 = vpop.permute.xlu1 %520 }
 0x31c   :  { %v524_v18 = vmul.f32 0.0, %v519_v16  ;;  %v525_v19 = vmul.f32 %v521_v17, %v517_v7 }
 0x31e   :  { %v6033_v21 = vadd.f32 %v525_v19, %v524_v18 }
 0x31f   :  { %v523_v24 = vpop.permute.xlu0 %522 }
 0x320   :  { %5553 = vtanh.f32 %v6033_v21 }
 0x322   :  { %v5552_v20 = vpop.eup %5551 }
 0x323   :  { %v368_v22 = vmul.f32 %v5552_v20, %v363_v15 }
 0x325   :  { %4710 = vmatmul.mubr.msk.f32.vlgmr.msra.gmra.mrb[4].mxu0 %vm181_vm6, %v368_v22 }
 0x326   :  { %5217 = vmatpush3.bf16.msra.mxu0 %v5969_v30  ;;  %4720 = vmatprep.mubr.msk.f32.mxu0 %vm5841_vm0, %v5842_v2 }
 0x327   :  { %5218 = vmatprep.subr.bf16.mxu0 %v5840_v1 }
 0x32a   :  { %5220 = vmatpush3.bf16.msra.mxu0 %v5975_v34  ;;  %v5554_v23 = vpop.eup %5553 }
 0x32b   :  { %5221 = vmatprep.subr.bf16.mxu0 %v5840_v1  ;;  %v528_v25 = vmul.f32 %v5554_v23, %v523_v24 }
 0x32d   :  { %4721 = vmatmul.mubr.msk.f32.vlgmr.msra.gmra.mrb[6].mxu0 %vm181_vm6, %v368_v22 }
 0x32e   :  { %5223 = vmatpush3.bf16.msra.mxu0 %v5988_v45  ;;  %4731 = vmatprep.mubr.msk.f32.mxu0 %vm5841_vm0, %v5842_v2 }
 0x32f   :  { %5224 = vmatprep.subr.bf16.mxu0 %v5840_v1 }
 0x332   :  { %5226 = vmatpush3.bf16.msra.mxu0 %v5993_v49 }
 0x333   :  { %5245 = vmatprep.subr.bf16.mxu0 %v5840_v1 }
 0x335   :  { %4732 = vmatmul.mubr.msk.f32.vlgmr.msra.gmra.mrb[6].mxu0 %vm181_vm6, %v528_v25 }
 0x336   :  { %5247 = vmatpush3.bf16.msra.mxu0 %v5935_v9  ;;  %4775 = vmatprep.mubr.msk.f32.mxu0 %vm5841_vm0, %v5842_v2 }
 0x337   :  { %5248 = vmatprep.subr.bf16.mxu0 %v5840_v1 }
 0x33a   :  { %5250 = vmatpush3.bf16.msra.mxu0 %v5939_v11 }
 0x33b   :  { %5251 = vmatprep.subr.bf16.mxu0 %v5840_v1 }
 0x3f8   :  { %v599_v27 = vpop.f32.mrb[4].mxu0 }
 0x3f9   :  { %v603_v28 = vadd.f32 %v599_v27, %v529_v26  ;;  %v4711_v31 = vpop.f32.mrb[5].mxu0 }
 0x3fb   :  { %v4335_v32 = vmul.f32 -1.442695, %v603_v28 }
 0x3fd   :  { %5555 = vpow2.f32 %v4335_v32 }
 0x3fe   :  { %5557 = vtanh.f32 %v603_v28 }
 0x407   :  { %v5556_v33 = vpop.eup %5555 }
 0x408   :  { %v608_v35 = vadd.f32 1.0, %v5556_v33  ;;  %v762_v36 = vpop.f32.mrb[6].mxu0  ;;  %v5558_v40 = vpop.eup %5557 }
 0x409   :  { %v5474_v37 = vadd.f32 %v762_v36, %v6016_v55  ;;  %v4733_v38 = vpop.f32.mrb[7].mxu0 }
 0x40a   :  { %5559 = vrcp.f32 %v608_v35 }
 0x40b   :  { %v4338_v39 = vmul.f32 -1.442695, %v5474_v37 }
 0x40d   :  { %5561 = vpow2.f32 %v4338_v39 }
 0x40e   :  { %5563 = vtanh.f32 %v5474_v37 }
 0x414   :  { %v5560_v41 = vpop.eup %5559 }
 0x415   :  { %v611_v42 = vsel %vm5965_vm5, %v5558_v40, %v5560_v41 }
 0x416   :  { %614 = vrot.lane.b32.xlu0 %v611_v42, %s5845_s4  ;;  %612 = vrot.lane.b32.xlu1 %v611_v42, %s5844_s26 }
 0x417   :  { %v5562_v43 = vpop.eup %5561 }
 0x418   :  { %v771_v44 = vadd.f32 1.0, %v5562_v43  ;;  %v5564_v46 = vpop.eup %5563 }
 0x41a   :  { %5565 = vrcp.f32 %v771_v44  ;;  %616 = vrot.lane.b32.xlu1 %v611_v42, %s5843_s25 }
 0x424   :  { %v5566_v47 = vpop.eup %5565 }
 0x425   :  { %v774_v48 = vsel %vm5965_vm5, %v5564_v46, %v5566_v47  ;;  %v1043_v46 = vld [vmem:[#allocation2 + $0x4] sm:$0x1] }
 0x426   :  { %777 = vrot.lane.b32.xlu1 %v774_v48, %s5845_s4  ;;  %775 = vrot.lane.b32.xlu0 %v774_v48, %s5844_s26 }
 0x42a   :  { %779 = vrot.lane.b32.xlu0 %v774_v48, %s5843_s25 }
 0x488   :  { %v615_v50 = vpop.permute.xlu0 %614  ;;  %v613_v51 = vpop.permute.xlu1 %612 }
 0x489   :  { %v619_v52 = vmul.f32 %v615_v50, %v611_v42  ;;  %v618_v53 = vmul.f32 %v613_v51, %v6030_v14 }
 0x48b   :  { %v6069_v54 = vadd.f32 %v619_v52, %v618_v53 }
 0x48c   :  { %v617_v56 = vpop.permute.xlu1 %616 }
 0x48d   :  { %5567 = vtanh.f32 %v6069_v54 }
 0x497   :  { %v5568_v57 = vpop.eup %5567 }
 0x498   :  { %v622_v58 = vmul.f32 %v5568_v57, %v617_v56  ;;  %v778_v59 = vpop.permute.xlu1 %777  ;;  %v776_v60 = vpop.permute.xlu0 %775 }
 0x499   :  { %v782_v61 = vmul.f32 %v778_v59, %v774_v48  ;;  %v781_v62 = vmul.f32 %v776_v60, %v6033_v21 }
 0x49a   :  { %4743 = vmatmul.mubr.msk.f32.vlgmr.msra.gmra.mrb[4].mxu1 %vm181_vm6, %v622_v58 }
 0x49b   :  { %v6074_v63 = vadd.f32 %v782_v61, %v781_v62  ;;  %5235 = vmatpush3.bf16.msra.mxu1 %v5969_v30  ;;  %4753 = vmatprep.mubr.msk.f32.mxu1 %vm5841_vm0, %v5842_v2 }
 0x49c   :  { %5236 = vmatprep.subr.bf16.mxu1 %v5840_v1  ;;  %v780_v3 = vpop.permute.xlu0 %779 }
 0x49d   :  { %5569 = vtanh.f32 %v6074_v63 }
 0x49f   :  { %5238 = vmatpush3.bf16.msra.mxu1 %v5975_v34 }
 0x4a0   :  { %5239 = vmatprep.subr.bf16.mxu1 %v5840_v1 }
 0x4a2   :  { %4754 = vmatmul.mubr.msk.f32.vlgmr.msra.gmra.mrb[6].mxu1 %vm181_vm6, %v622_v58 }
 0x4a3   :  { %5241 = vmatpush3.bf16.msra.mxu1 %v5988_v45  ;;  %4764 = vmatprep.mubr.msk.f32.mxu1 %vm5841_vm0, %v5842_v2 }
 0x4a4   :  { %5242 = vmatprep.subr.bf16.mxu1 %v5840_v1 }
 0x4a7   :  { %v5570_v0 = vpop.eup %5569  ;;  %5244 = vmatpush3.bf16.msra.mxu1 %v5993_v49 }
 0x4a8   :  { %v785_v4 = vmul.f32 %v5570_v0, %v780_v3  ;;  %5263 = vmatprep.subr.bf16.mxu1 %v5840_v1 }
 0x4aa   :  { %4765 = vmatmul.mubr.msk.f32.vlgmr.msra.gmra.mrb[6].mxu1 %vm181_vm6, %v785_v4 }
 0x4ab   :  { %5265 = vmatpush3.bf16.msra.mxu1 %v5935_v9  ;;  %4808 = vmatprep.mubr.msk.f32.mxu1 %vm5841_vm0, %v5842_v2 }
 0x4ac   :  { %5266 = vmatprep.subr.bf16.mxu1 %v5840_v1 }
 0x4af   :  { %5268 = vmatpush3.bf16.msra.mxu1 %v5939_v11 }
 0x4b0   :  { %5269 = vmatprep.subr.bf16.mxu1 %v5840_v1 }
 0x56d   :  { %v856_v6 = vpop.f32.mrb[4].mxu1 }
 0x56e   :  { %v860_v7 = vadd.f32 %v856_v6, %v786_v5  ;;  %v4744_v8 = vpop.f32.mrb[5].mxu1 }
 0x570   :  { %v4340_v10 = vmul.f32 -1.442695, %v860_v7 }
 0x572   :  { %5571 = vpow2.f32 %v4340_v10 }
 0x573   :  { %5573 = vtanh.f32 %v860_v7 }
 0x57c   :  { %v5572_v12 = vpop.eup %5571 }
 0x57d   :  { %v865_v13 = vadd.f32 1.0, %v5572_v12  ;;  %v1019_v14 = vpop.f32.mrb[6].mxu1  ;;  %v5574_v18 = vpop.eup %5573 }
 0x57e   :  { %v5475_v15 = vadd.f32 %v1019_v14, %v6016_v55  ;;  %v4766_v16 = vpop.f32.mrb[7].mxu1 }
 0x57f   :  { %5575 = vrcp.f32 %v865_v13 }
 0x580   :  { %v4343_v17 = vmul.f32 -1.442695, %v5475_v15 }
 0x582   :  { %5577 = vpow2.f32 %v4343_v17 }
 0x583   :  { %5579 = vtanh.f32 %v5475_v15 }
 0x589   :  { %v5576_v19 = vpop.eup %5575 }
 0x58a   :  { %v868_v20 = vsel %vm5965_vm5, %v5574_v18, %v5576_v19 }
 0x58b   :  { %869 = vrot.lane.b32.xlu1 %v868_v20, %s5844_s26  ;;  %871 = vrot.lane.b32.xlu0 %v868_v20, %s5845_s4 }
 0x58c   :  { %v5578_v21 = vpop.eup %5577 }
 0x58d   :  { %v1028_v22 = vadd.f32 1.0, %v5578_v21  ;;  %v5580_v23 = vpop.eup %5579 }
 0x58f   :  { %5581 = vrcp.f32 %v1028_v22  ;;  %873 = vrot.lane.b32.xlu1 %v868_v20, %s5843_s25 }
 0x599   :  { %v5582_v24 = vpop.eup %5581 }
 0x59a   :  { %v1031_v25 = vsel %vm5965_vm5, %v5580_v23, %v5582_v24  ;;  %v1300_v23 = vld [vmem:[#allocation2 + $0x5] sm:$0x1] }
 0x59b   :  { %1034 = vrot.lane.b32.xlu1 %v1031_v25, %s5845_s4  ;;  %1032 = vrot.lane.b32.xlu0 %v1031_v25, %s5844_s26 }
 0x59f   :  { %1036 = vrot.lane.b32.xlu0 %v1031_v25, %s5843_s25 }
 0x5fd   :  { %v870_v26 = vpop.permute.xlu1 %869  ;;  %v872_v27 = vpop.permute.xlu0 %871 }
 0x5fe   :  { %v875_v28 = vmul.f32 %v870_v26, %v6069_v54  ;;  %v876_v31 = vmul.f32 %v872_v27, %v868_v20 }
 0x600   :  { %v6109_v32 = vadd.f32 %v876_v31, %v875_v28 }
 0x601   :  { %v874_v33 = vpop.permute.xlu1 %873 }
 0x602   :  { %5583 = vtanh.f32 %v6109_v32 }
 0x60c   :  { %v5584_v35 = vpop.eup %5583 }
 0x60d   :  { %v879_v36 = vmul.f32 %v5584_v35, %v874_v33  ;;  %v1035_v37 = vpop.permute.xlu1 %1034  ;;  %v1033_v38 = vpop.permute.xlu0 %1032 }
 0x60e   :  { %v1039_v39 = vmul.f32 %v1035_v37, %v1031_v25  ;;  %v1038_v40 = vmul.f32 %v1033_v38, %v6074_v63 }
 0x60f   :  { %4776 = vmatmul.mubr.msk.f32.vlgmr.msra.gmra.mrb[8].mxu0 %vm181_vm6, %v879_v36 }
 0x610   :  { %v6114_v41 = vadd.f32 %v1039_v39, %v1038_v40  ;;  %5253 = vmatpush3.bf16.msra.mxu0 %v5969_v30  ;;  %4786 = vmatprep.mubr.msk.f32.mxu0 %vm5841_vm0, %v5842_v2 }
 0x611   :  { %5254 = vmatprep.subr.bf16.mxu0 %v5840_v1  ;;  %v1037_v43 = vpop.permute.xlu0 %1036 }
 0x612   :  { %5585 = vtanh.f32 %v6114_v41 }
 0x614   :  { %5256 = vmatpush3.bf16.msra.mxu0 %v5975_v34 }
 0x615   :  { %5257 = vmatprep.subr.bf16.mxu0 %v5840_v1 }
 0x617   :  { %4787 = vmatmul.mubr.msk.f32.vlgmr.msra.gmra.mrb[10].mxu0 %vm181_vm6, %v879_v36 }
 0x618   :  { %5259 = vmatpush3.bf16.msra.mxu0 %v5988_v45  ;;  %4797 = vmatprep.mubr.msk.f32.mxu0 %vm5841_vm0, %v5842_v2 }
 0x619   :  { %5260 = vmatprep.subr.bf16.mxu0 %v5840_v1 }
 0x61c   :  { %v5586_v42 = vpop.eup %5585  ;;  %5262 = vmatpush3.bf16.msra.mxu0 %v5993_v49 }
 0x61d   :  { %v1042_v44 = vmul.f32 %v5586_v42, %v1037_v43  ;;  %5281 = vmatprep.subr.bf16.mxu0 %v5840_v1 }
 0x61f   :  { %4798 = vmatmul.mubr.msk.f32.vlgmr.msra.gmra.mrb[10].mxu0 %vm181_vm6, %v1042_v44 }
 0x620   :  { %5283 = vmatpush3.bf16.msra.mxu0 %v5935_v9  ;;  %4841 = vmatprep.mubr.msk.f32.mxu0 %vm5841_vm0, %v5842_v2 }
 0x621   :  { %5284 = vmatprep.subr.bf16.mxu0 %v5840_v1 }
 0x624   :  { %5286 = vmatpush3.bf16.msra.mxu0 %v5939_v11 }
 0x625   :  { %5287 = vmatprep.subr.bf16.mxu0 %v5840_v1 }
 0x6e2   :  { %v1113_v47 = vpop.f32.mrb[8].mxu0 }
 0x6e3   :  { %v1117_v48 = vadd.f32 %v1113_v47, %v1043_v46  ;;  %v4777_v50 = vpop.f32.mrb[9].mxu0 }
 0x6e5   :  { %v4345_v51 = vmul.f32 -1.442695, %v1117_v48 }
 0x6e7   :  { %5587 = vpow2.f32 %v4345_v51 }
 0x6e8   :  { %5589 = vtanh.f32 %v1117_v48 }
 0x6f1   :  { %v5588_v52 = vpop.eup %5587 }
 0x6f2   :  { %v1122_v53 = vadd.f32 1.0, %v5588_v52  ;;  %v1276_v54 = vpop.f32.mrb[10].mxu0  ;;  %v5590_v59 = vpop.eup %5589 }
 0x6f3   :  { %v5476_v56 = vadd.f32 %v1276_v54, %v6016_v55  ;;  %v4799_v57 = vpop.f32.mrb[11].mxu0 }
 0x6f4   :  { %5591 = vrcp.f32 %v1122_v53 }
 0x6f5   :  { %v4348_v58 = vmul.f32 -1.442695, %v5476_v56 }
 0x6f7   :  { %5593 = vpow2.f32 %v4348_v58 }
 0x6f8   :  { %5595 = vtanh.f32 %v5476_v56 }
 0x6fe   :  { %v5592_v60 = vpop.eup %5591 }
 0x6ff   :  { %v1125_v61 = vsel %vm5965_vm5, %v5590_v59, %v5592_v60 }
 0x700   :  { %1128 = vrot.lane.b32.xlu0 %v1125_v61, %s5845_s4  ;;  %1126 = vrot.lane.b32.xlu1 %v1125_v61, %s5844_s26 }
 0x701   :  { %v5594_v62 = vpop.eup %5593 }
 0x702   :  { %v1285_v63 = vadd.f32 1.0, %v5594_v62  ;;  %v5596_v0 = vpop.eup %5595 }
 0x704   :  { %5597 = vrcp.f32 %v1285_v63  ;;  %1130 = vrot.lane.b32.xlu1 %v1125_v61, %s5843_s25 }
 0x70e   :  { %v5598_v3 = vpop.eup %5597 }
 0x70f   :  { %v1288_v4 = vsel %vm5965_vm5, %v5596_v0, %v5598_v3  ;;  %v1557_v0 = vld [vmem:[#allocation2 + $0x6] sm:$0x1] }
 0x710   :  { %1291 = vrot.lane.b32.xlu1 %v1288_v4, %s5845_s4  ;;  %1289 = vrot.lane.b32.xlu0 %v1288_v4, %s5844_s26 }
 0x714   :  { %1293 = vrot.lane.b32.xlu0 %v1288_v4, %s5843_s25 }
 0x772   :  { %v1129_v5 = vpop.permute.xlu0 %1128  ;;  %v1127_v6 = vpop.permute.xlu1 %1126 }
 0x773   :  { %v1133_v7 = vmul.f32 %v1129_v5, %v1125_v61  ;;  %v1132_v8 = vmul.f32 %v1127_v6, %v6109_v32 }
 0x775   :  { %v6149_v10 = vadd.f32 %v1133_v7, %v1132_v8 }
 0x776   :  { %v1131_v12 = vpop.permute.xlu1 %1130 }
 0x777   :  { %5599 = vtanh.f32 %v6149_v10 }
 0x781   :  { %v5600_v13 = vpop.eup %5599 }
 0x782   :  { %v1136_v14 = vmul.f32 %v5600_v13, %v1131_v12  ;;  %v1292_v15 = vpop.permute.xlu1 %1291  ;;  %v1290_v16 = vpop.permute.xlu0 %1289 }
 0x783   :  { %v1296_v17 = vmul.f32 %v1292_v15, %v1288_v4  ;;  %v1295_v18 = vmul.f32 %v1290_v16, %v6114_v41 }
 0x784   :  { %4809 = vmatmul.mubr.msk.f32.vlgmr.msra.gmra.mrb[8].mxu1 %vm181_vm6, %v1136_v14 }
 0x785   :  { %v6154_v19 = vadd.f32 %v1296_v17, %v1295_v18  ;;  %5271 = vmatpush3.bf16.msra.mxu1 %v5969_v30  ;;  %4819 = vmatprep.mubr.msk.f32.mxu1 %vm5841_vm0, %v5842_v2 }
 0x786   :  { %5272 = vmatprep.subr.bf16.mxu1 %v5840_v1  ;;  %v1294_v21 = vpop.permute.xlu0 %1293 }
 0x787   :  { %5601 = vtanh.f32 %v6154_v19 }
 0x789   :  { %5274 = vmatpush3.bf16.msra.mxu1 %v5975_v34 }
 0x78a   :  { %5275 = vmatprep.subr.bf16.mxu1 %v5840_v1 }
 0x78c   :  { %4820 = vmatmul.mubr.msk.f32.vlgmr.msra.gmra.mrb[10].mxu1 %vm181_vm6, %v1136_v14 }
 0x78d   :  { %5277 = vmatpush3.bf16.msra.mxu1 %v5988_v45  ;;  %4830 = vmatprep.mubr.msk.f32.mxu1 %vm5841_vm0, %v5842_v2 }
 0x78e   :  { %5278 = vmatprep.subr.bf16.mxu1 %v5840_v1 }
 0x791   :  { %v5602_v20 = vpop.eup %5601  ;;  %5280 = vmatpush3.bf16.msra.mxu1 %v5993_v49 }
 0x792   :  { %v1299_v22 = vmul.f32 %v5602_v20, %v1294_v21  ;;  %5299 = vmatprep.subr.bf16.mxu1 %v5840_v1 }
 0x794   :  { %4831 = vmatmul.mubr.msk.f32.vlgmr.msra.gmra.mrb[10].mxu1 %vm181_vm6, %v1299_v22 }
 0x795   :  { %5301 = vmatpush3.bf16.msra.mxu1 %v5935_v9  ;;  %4874 = vmatprep.mubr.msk.f32.mxu1 %vm5841_vm0, %v5842_v2 }
 0x796   :  { %5302 = vmatprep.subr.bf16.mxu1 %v5840_v1 }
 0x799   :  { %5304 = vmatpush3.bf16.msra.mxu1 %v5939_v11 }
 0x79a   :  { %5305 = vmatprep.subr.bf16.mxu1 %v5840_v1 }
 0x857   :  { %v1370_v24 = vpop.f32.mrb[8].mxu1 }
 0x858   :  { %v1374_v25 = vadd.f32 %v1370_v24, %v1300_v23  ;;  %v4810_v26 = vpop.f32.mrb[9].mxu1 }
 0x85a   :  { %v4350_v27 = vmul.f32 -1.442695, %v1374_v25 }
 0x85c   :  { %5603 = vpow2.f32 %v4350_v27 }
 0x85d   :  { %5605 = vtanh.f32 %v1374_v25 }
 0x866   :  { %v5604_v28 = vpop.eup %5603 }
 0x867   :  { %v1379_v31 = vadd.f32 1.0, %v5604_v28  ;;  %v1533_v32 = vpop.f32.mrb[10].mxu1  ;;  %v5606_v37 = vpop.eup %5605 }
 0x868   :  { %v5477_v33 = vadd.f32 %v1533_v32, %v6016_v55  ;;  %v4832_v35 = vpop.f32.mrb[11].mxu1 }
 0x869   :  { %5607 = vrcp.f32 %v1379_v31 }
 0x86a   :  { %v4353_v36 = vmul.f32 -1.442695, %v5477_v33 }
 0x86c   :  { %5609 = vpow2.f32 %v4353_v36 }
 0x86d   :  { %5611 = vtanh.f32 %v5477_v33 }
 0x873   :  { %v5608_v38 = vpop.eup %5607 }
 0x874   :  { %v1382_v39 = vsel %vm5965_vm5, %v5606_v37, %v5608_v38 }
 0x875   :  { %1383 = vrot.lane.b32.xlu1 %v1382_v39, %s5844_s26  ;;  %1385 = vrot.lane.b32.xlu0 %v1382_v39, %s5845_s4 }
 0x876   :  { %v5610_v40 = vpop.eup %5609 }
 0x877   :  { %v1542_v41 = vadd.f32 1.0, %v5610_v40  ;;  %v5612_v42 = vpop.eup %5611 }
 0x879   :  { %5613 = vrcp.f32 %v1542_v41  ;;  %1387 = vrot.lane.b32.xlu1 %v1382_v39, %s5843_s25 }
 0x883   :  { %v5614_v43 = vpop.eup %5613 }
 0x884   :  { %v1545_v44 = vsel %vm5965_vm5, %v5612_v42, %v5614_v43  ;;  %v1814_v42 = vld [vmem:[#allocation2 + $0x7] sm:$0x1] }
 0x885   :  { %1548 = vrot.lane.b32.xlu1 %v1545_v44, %s5845_s4  ;;  %1546 = vrot.lane.b32.xlu0 %v1545_v44, %s5844_s26 }
 0x889   :  { %1550 = vrot.lane.b32.xlu0 %v1545_v44, %s5843_s25 }
 0x8e7   :  { %v1384_v46 = vpop.permute.xlu1 %1383  ;;  %v1386_v47 = vpop.permute.xlu0 %1385 }
 0x8e8   :  { %v1389_v48 = vmul.f32 %v1384_v46, %v6149_v10  ;;  %v1390_v50 = vmul.f32 %v1386_v47, %v1382_v39 }
 0x8ea   :  { %v6189_v51 = vadd.f32 %v1390_v50, %v1389_v48 }
 0x8eb   :  { %v1388_v52 = vpop.permute.xlu1 %1387 }
 0x8ec   :  { %5615 = vtanh.f32 %v6189_v51 }
 0x8f6   :  { %v5616_v53 = vpop.eup %5615 }
 0x8f7   :  { %v1393_v54 = vmul.f32 %v5616_v53, %v1388_v52  ;;  %v1549_v56 = vpop.permute.xlu1 %1548  ;;  %v1547_v57 = vpop.permute.xlu0 %1546 }
 0x8f8   :  { %v1553_v58 = vmul.f32 %v1549_v56, %v1545_v44  ;;  %v1552_v59 = vmul.f32 %v1547_v57, %v6154_v19 }
 0x8f9   :  { %4842 = vmatmul.mubr.msk.f32.vlgmr.msra.gmra.mrb[12].mxu0 %vm181_vm6, %v1393_v54 }
 0x8fa   :  { %v6194_v60 = vadd.f32 %v1553_v58, %v1552_v59  ;;  %5289 = vmatpush3.bf16.msra.mxu0 %v5969_v30  ;;  %4852 = vmatprep.mubr.msk.f32.mxu0 %vm5841_vm0, %v5842_v2 }
 0x8fb   :  { %5290 = vmatprep.subr.bf16.mxu0 %v5840_v1  ;;  %v1551_v62 = vpop.permute.xlu0 %1550 }
 0x8fc   :  { %5617 = vtanh.f32 %v6194_v60 }
 0x8fe   :  { %5292 = vmatpush3.bf16.msra.mxu0 %v5975_v34 }
 0x8ff   :  { %5293 = vmatprep.subr.bf16.mxu0 %v5840_v1 }
 0x901   :  { %4853 = vmatmul.mubr.msk.f32.vlgmr.msra.gmra.mrb[14].mxu0 %vm181_vm6, %v1393_v54 }
 0x902   :  { %5295 = vmatpush3.bf16.msra.mxu0 %v5988_v45  ;;  %4863 = vmatprep.mubr.msk.f32.mxu0 %vm5841_vm0, %v5842_v2 }
 0x903   :  { %5296 = vmatprep.subr.bf16.mxu0 %v5840_v1 }
 0x906   :  { %v5618_v61 = vpop.eup %5617  ;;  %5298 = vmatpush3.bf16.msra.mxu0 %v5993_v49 }
 0x907   :  { %v1556_v63 = vmul.f32 %v5618_v61, %v1551_v62  ;;  %5317 = vmatprep.subr.bf16.mxu0 %v5840_v1 }
 0x909   :  { %4864 = vmatmul.mubr.msk.f32.vlgmr.msra.gmra.mrb[14].mxu0 %vm181_vm6, %v1556_v63 }
 0x90a   :  { %5319 = vmatpush3.bf16.msra.mxu0 %v5935_v9  ;;  %4907 = vmatprep.mubr.msk.f32.mxu0 %vm5841_vm0, %v5842_v2 }
 0x90b   :  { %5320 = vmatprep.subr.bf16.mxu0 %v5840_v1 }
 0x90e   :  { %5322 = vmatpush3.bf16.msra.mxu0 %v5939_v11 }
 0x90f   :  { %5323 = vmatprep.subr.bf16.mxu0 %v5840_v1 }
 0x9cc   :  { %v1627_v3 = vpop.f32.mrb[12].mxu0 }
 0x9cd   :  { %v1631_v4 = vadd.f32 %v1627_v3, %v1557_v0  ;;  %v4843_v5 = vpop.f32.mrb[13].mxu0 }
 0x9cf   :  { %v4355_v6 = vmul.f32 -1.442695, %v1631_v4 }
 0x9d1   :  { %5619 = vpow2.f32 %v4355_v6 }
 0x9d2   :  { %5621 = vtanh.f32 %v1631_v4 }
 0x9db   :  { %v5620_v7 = vpop.eup %5619 }
 0x9dc   :  { %v1636_v8 = vadd.f32 1.0, %v5620_v7  ;;  %v1790_v10 = vpop.f32.mrb[14].mxu0  ;;  %v5622_v15 = vpop.eup %5621 }
 0x9dd   :  { %v5478_v12 = vadd.f32 %v1790_v10, %v6016_v55  ;;  %v4865_v13 = vpop.f32.mrb[15].mxu0 }
 0x9de   :  { %5623 = vrcp.f32 %v1636_v8 }
 0x9df   :  { %v4358_v14 = vmul.f32 -1.442695, %v5478_v12 }
 0x9e1   :  { %5625 = vpow2.f32 %v4358_v14 }
 0x9e2   :  { %5627 = vtanh.f32 %v5478_v12 }
 0x9e8   :  { %v5624_v16 = vpop.eup %5623 }
 0x9e9   :  { %v1639_v17 = vsel %vm5965_vm5, %v5622_v15, %v5624_v16 }
 0x9ea   :  { %1642 = vrot.lane.b32.xlu0 %v1639_v17, %s5845_s4  ;;  %1640 = vrot.lane.b32.xlu1 %v1639_v17, %s5844_s26 }
 0x9eb   :  { %v5626_v18 = vpop.eup %5625 }
 0x9ec   :  { %v1799_v19 = vadd.f32 1.0, %v5626_v18  ;;  %v5628_v20 = vpop.eup %5627 }
 0x9ee   :  { %5629 = vrcp.f32 %v1799_v19  ;;  %1644 = vrot.lane.b32.xlu1 %v1639_v17, %s5843_s25 }
 0x9f8   :  { %v5630_v21 = vpop.eup %5629 }
 0x9f9   :  { %v1802_v22 = vsel %vm5965_vm5, %v5628_v20, %v5630_v21  ;;  %v2071_v20 = vld [vmem:[#allocation2 + $0x8] sm:$0x1] }
 0x9fa   :  { %1805 = vrot.lane.b32.xlu1 %v1802_v22, %s5845_s4  ;;  %1803 = vrot.lane.b32.xlu0 %v1802_v22, %s5844_s26 }
 0x9fe   :  { %1807 = vrot.lane.b32.xlu0 %v1802_v22, %s5843_s25 }
 0xa5c   :  { %v1643_v23 = vpop.permute.xlu0 %1642  ;;  %v1641_v24 = vpop.permute.xlu1 %1640 }
 0xa5d   :  { %v1647_v25 = vmul.f32 %v1643_v23, %v1639_v17  ;;  %v1646_v26 = vmul.f32 %v1641_v24, %v6189_v51 }
 0xa5f   :  { %v6229_v27 = vadd.f32 %v1647_v25, %v1646_v26 }
 0xa60   :  { %v1645_v28 = vpop.permute.xlu1 %1644 }
 0xa61   :  { %5631 = vtanh.f32 %v6229_v27 }
 0xa6b   :  { %v5632_v31 = vpop.eup %5631 }
 0xa6c   :  { %v1650_v32 = vmul.f32 %v5632_v31, %v1645_v28  ;;  %v1806_v33 = vpop.permute.xlu1 %1805  ;;  %v1804_v35 = vpop.permute.xlu0 %1803 }
 0xa6d   :  { %v1810_v36 = vmul.f32 %v1806_v33, %v1802_v22  ;;  %v1809_v37 = vmul.f32 %v1804_v35, %v6194_v60 }
 0xa6e   :  { %4875 = vmatmul.mubr.msk.f32.vlgmr.msra.gmra.mrb[12].mxu1 %vm181_vm6, %v1650_v32 }
 0xa6f   :  { %v6234_v38 = vadd.f32 %v1810_v36, %v1809_v37  ;;  %5307 = vmatpush3.bf16.msra.mxu1 %v5969_v30  ;;  %4885 = vmatprep.mubr.msk.f32.mxu1 %vm5841_vm0, %v5842_v2 }
 0xa70   :  { %5308 = vmatprep.subr.bf16.mxu1 %v5840_v1  ;;  %v1808_v40 = vpop.permute.xlu0 %1807 }
 0xa71   :  { %5633 = vtanh.f32 %v6234_v38 }
 0xa73   :  { %5310 = vmatpush3.bf16.msra.mxu1 %v5975_v34 }
 0xa74   :  { %5311 = vmatprep.subr.bf16.mxu1 %v5840_v1 }
 0xa76   :  { %4886 = vmatmul.mubr.msk.f32.vlgmr.msra.gmra.mrb[14].mxu1 %vm181_vm6, %v1650_v32 }
 0xa77   :  { %5313 = vmatpush3.bf16.msra.mxu1 %v5988_v45  ;;  %4896 = vmatprep.mubr.msk.f32.mxu1 %vm5841_vm0, %v5842_v2 }
 0xa78   :  { %5314 = vmatprep.subr.bf16.mxu1 %v5840_v1 }
 0xa7b   :  { %v5634_v39 = vpop.eup %5633  ;;  %5316 = vmatpush3.bf16.msra.mxu1 %v5993_v49 }
 0xa7c   :  { %v1813_v41 = vmul.f32 %v5634_v39, %v1808_v40  ;;  %5335 = vmatprep.subr.bf16.mxu1 %v5840_v1 }
 0xa7e   :  { %4897 = vmatmul.mubr.msk.f32.vlgmr.msra.gmra.mrb[14].mxu1 %vm181_vm6, %v1813_v41 }
 0xa7f   :  { %5337 = vmatpush3.bf16.msra.mxu1 %v5935_v9  ;;  %4940 = vmatprep.mubr.msk.f32.mxu1 %vm5841_vm0, %v5842_v2 }
 0xa80   :  { %5338 = vmatprep.subr.bf16.mxu1 %v5840_v1 }
 0xa83   :  { %5340 = vmatpush3.bf16.msra.mxu1 %v5939_v11 }
 0xa84   :  { %5341 = vmatprep.subr.bf16.mxu1 %v5840_v1 }
 0xb41   :  { %v1884_v43 = vpop.f32.mrb[12].mxu1 }
 0xb42   :  { %v1888_v44 = vadd.f32 %v1884_v43, %v1814_v42  ;;  %v4876_v46 = vpop.f32.mrb[13].mxu1 }
 0xb44   :  { %v4360_v47 = vmul.f32 -1.442695, %v1888_v44 }
 0xb46   :  { %5635 = vpow2.f32 %v4360_v47 }
 0xb47   :  { %5637 = vtanh.f32 %v1888_v44 }
 0xb50   :  { %v5636_v48 = vpop.eup %5635 }
 0xb51   :  { %v1893_v50 = vadd.f32 1.0, %v5636_v48  ;;  %v2047_v51 = vpop.f32.mrb[14].mxu1  ;;  %v5638_v56 = vpop.eup %5637 }
 0xb52   :  { %v5479_v52 = vadd.f32 %v2047_v51, %v6016_v55  ;;  %v4898_v53 = vpop.f32.mrb[15].mxu1 }
 0xb53   :  { %5639 = vrcp.f32 %v1893_v50 }
 0xb54   :  { %v4363_v54 = vmul.f32 -1.442695, %v5479_v52 }
 0xb56   :  { %5641 = vpow2.f32 %v4363_v54 }
 0xb57   :  { %5643 = vtanh.f32 %v5479_v52 }
 0xb5d   :  { %v5640_v57 = vpop.eup %5639 }
 0xb5e   :  { %v1896_v58 = vsel %vm5965_vm5, %v5638_v56, %v5640_v57 }
 0xb5f   :  { %1897 = vrot.lane.b32.xlu1 %v1896_v58, %s5844_s26  ;;  %1899 = vrot.lane.b32.xlu0 %v1896_v58, %s5845_s4 }
 0xb60   :  { %v5642_v59 = vpop.eup %5641 }
 0xb61   :  { %v2056_v60 = vadd.f32 1.0, %v5642_v59  ;;  %v5644_v61 = vpop.eup %5643 }
 0xb63   :  { %5645 = vrcp.f32 %v2056_v60  ;;  %1901 = vrot.lane.b32.xlu1 %v1896_v58, %s5843_s25  ;;  %v2328_v60 = vld [vmem:[#allocation2 + $0x9] sm:$0x1] }
 0xb6d   :  { %v5646_v62 = vpop.eup %5645 }
 0xb6e   :  { %v2059_v63 = vsel %vm5965_vm5, %v5644_v61, %v5646_v62 }
 0xb6f   :  { %2062 = vrot.lane.b32.xlu1 %v2059_v63, %s5845_s4  ;;  %2060 = vrot.lane.b32.xlu0 %v2059_v63, %s5844_s26 }
 0xb73   :  { %2064 = vrot.lane.b32.xlu0 %v2059_v63, %s5843_s25 }
 0xbd1   :  { %v1898_v0 = vpop.permute.xlu1 %1897  ;;  %v1900_v3 = vpop.permute.xlu0 %1899 }
 0xbd2   :  { %v1903_v4 = vmul.f32 %v1898_v0, %v6229_v27  ;;  %v1904_v5 = vmul.f32 %v1900_v3, %v1896_v58 }
 0xbd4   :  { %v6269_v6 = vadd.f32 %v1904_v5, %v1903_v4 }
 0xbd5   :  { %v1902_v7 = vpop.permute.xlu1 %1901 }
 0xbd6   :  { %5647 = vtanh.f32 %v6269_v6 }
 0xbe0   :  { %v5648_v8 = vpop.eup %5647 }
 0xbe1   :  { %v1907_v10 = vmul.f32 %v5648_v8, %v1902_v7  ;;  %v2063_v12 = vpop.permute.xlu1 %2062  ;;  %v2061_v13 = vpop.permute.xlu0 %2060 }
 0xbe2   :  { %v2067_v14 = vmul.f32 %v2063_v12, %v2059_v63  ;;  %v2066_v15 = vmul.f32 %v2061_v13, %v6234_v38 }
 0xbe3   :  { %4908 = vmatmul.mubr.msk.f32.vlgmr.msra.gmra.mrb[16].mxu0 %vm181_vm6, %v1907_v10 }
 0xbe4   :  { %v6274_v16 = vadd.f32 %v2067_v14, %v2066_v15  ;;  %5325 = vmatpush3.bf16.msra.mxu0 %v5969_v30  ;;  %4918 = vmatprep.mubr.msk.f32.mxu0 %vm5841_vm0, %v5842_v2 }
 0xbe5   :  { %5326 = vmatprep.subr.bf16.mxu0 %v5840_v1  ;;  %v2065_v18 = vpop.permute.xlu0 %2064 }
 0xbe6   :  { %5649 = vtanh.f32 %v6274_v16 }
 0xbe8   :  { %5328 = vmatpush3.bf16.msra.mxu0 %v5975_v34 }
 0xbe9   :  { %5329 = vmatprep.subr.bf16.mxu0 %v5840_v1 }
 0xbeb   :  { %4919 = vmatmul.mubr.msk.f32.vlgmr.msra.gmra.mrb[18].mxu0 %vm181_vm6, %v1907_v10 }
 0xbec   :  { %5331 = vmatpush3.bf16.msra.mxu0 %v5988_v45  ;;  %4929 = vmatprep.mubr.msk.f32.mxu0 %vm5841_vm0, %v5842_v2 }
 0xbed   :  { %5332 = vmatprep.subr.bf16.mxu0 %v5840_v1 }
 0xbf0   :  { %v5650_v17 = vpop.eup %5649  ;;  %5334 = vmatpush3.bf16.msra.mxu0 %v5993_v49 }
 0xbf1   :  { %v2070_v19 = vmul.f32 %v5650_v17, %v2065_v18  ;;  %5353 = vmatprep.subr.bf16.mxu0 %v5840_v1 }
 0xbf3   :  { %4930 = vmatmul.mubr.msk.f32.vlgmr.msra.gmra.mrb[18].mxu0 %vm181_vm6, %v2070_v19 }
 0xbf4   :  { %5355 = vmatpush3.bf16.msra.mxu0 %v5935_v9  ;;  %4973 = vmatprep.mubr.msk.f32.mxu0 %vm5841_vm0, %v5842_v2 }
 0xbf5   :  { %5356 = vmatprep.subr.bf16.mxu0 %v5840_v1 }
 0xbf8   :  { %5358 = vmatpush3.bf16.msra.mxu0 %v5939_v11 }
 0xbf9   :  { %5359 = vmatprep.subr.bf16.mxu0 %v5840_v1 }
 0xcb6   :  { %v2141_v21 = vpop.f32.mrb[16].mxu0 }
 0xcb7   :  { %v2145_v22 = vadd.f32 %v2141_v21, %v2071_v20  ;;  %v4909_v23 = vpop.f32.mrb[17].mxu0 }
 0xcb9   :  { %v4365_v24 = vmul.f32 -1.442695, %v2145_v22 }
 0xcbb   :  { %5651 = vpow2.f32 %v4365_v24 }
 0xcbc   :  { %5653 = vtanh.f32 %v2145_v22 }
 0xcc5   :  { %v5652_v25 = vpop.eup %5651 }
 0xcc6   :  { %v2150_v26 = vadd.f32 1.0, %v5652_v25  ;;  %v2304_v27 = vpop.f32.mrb[18].mxu0  ;;  %v5654_v33 = vpop.eup %5653 }
 0xcc7   :  { %v5480_v28 = vadd.f32 %v2304_v27, %v6016_v55  ;;  %v4931_v31 = vpop.f32.mrb[19].mxu0 }
 0xcc8   :  { %5655 = vrcp.f32 %v2150_v26 }
 0xcc9   :  { %v4368_v32 = vmul.f32 -1.442695, %v5480_v28 }
 0xccb   :  { %5657 = vpow2.f32 %v4368_v32 }
 0xccc   :  { %5659 = vtanh.f32 %v5480_v28 }
 0xcd2   :  { %v5656_v35 = vpop.eup %5655 }
 0xcd3   :  { %v2153_v36 = vsel %vm5965_vm5, %v5654_v33, %v5656_v35 }
 0xcd4   :  { %2156 = vrot.lane.b32.xlu0 %v2153_v36, %s5845_s4  ;;  %2154 = vrot.lane.b32.xlu1 %v2153_v36, %s5844_s26 }
 0xcd5   :  { %v5658_v37 = vpop.eup %5657 }
 0xcd6   :  { %v2313_v38 = vadd.f32 1.0, %v5658_v37  ;;  %v5660_v55 = vpop.eup %5659 }
 0xcd8   :  { %5661 = vrcp.f32 %v2313_v38  ;;  %2158 = vrot.lane.b32.xlu1 %v2153_v36, %s5843_s25 }
 0xce2   :  { %v5662_v39 = vpop.eup %5661 }
 0xce3   :  { %v2316_v40 = vsel %vm5965_vm5, %v5660_v55, %v5662_v39  ;;  %v2585_v55 = vld [vmem:[#allocation2 + $0xa] sm:$0x1] }
 0xce4   :  { %2319 = vrot.lane.b32.xlu1 %v2316_v40, %s5845_s4  ;;  %2317 = vrot.lane.b32.xlu0 %v2316_v40, %s5844_s26 }
 0xce8   :  { %2321 = vrot.lane.b32.xlu0 %v2316_v40, %s5843_s25 }
 0xd46   :  { %v2157_v41 = vpop.permute.xlu0 %2156  ;;  %v2155_v42 = vpop.permute.xlu1 %2154 }
 0xd47   :  { %v2161_v43 = vmul.f32 %v2157_v41, %v2153_v36  ;;  %v2160_v44 = vmul.f32 %v2155_v42, %v6269_v6  ;;  %v6340_v6 = vld [vmem:[%s6609_s6] sm:$0x1] }
 0xd49   :  { %v6309_v46 = vadd.f32 %v2161_v43, %v2160_v44 }
 0xd4a   :  { %v2159_v47 = vpop.permute.xlu1 %2158 }
 0xd4b   :  { %5663 = vtanh.f32 %v6309_v46 }
 0xd55   :  { %v5664_v48 = vpop.eup %5663 }
 0xd56   :  { %v2164_v50 = vmul.f32 %v5664_v48, %v2159_v47  ;;  %v2320_v51 = vpop.permute.xlu1 %2319  ;;  %v2318_v52 = vpop.permute.xlu0 %2317 }
 0xd57   :  { %v2324_v53 = vmul.f32 %v2320_v51, %v2316_v40  ;;  %v2323_v54 = vmul.f32 %v2318_v52, %v6274_v16 }
 0xd58   :  { %4941 = vmatmul.mubr.msk.f32.vlgmr.msra.gmra.mrb[16].mxu1 %vm181_vm6, %v2164_v50 }
 0xd59   :  { %v6314_v56 = vadd.f32 %v2324_v53, %v2323_v54  ;;  %5343 = vmatpush3.bf16.msra.mxu1 %v5969_v30  ;;  %4951 = vmatprep.mubr.msk.f32.mxu1 %vm5841_vm0, %v5842_v2 }
 0xd5a   :  { %5344 = vmatprep.subr.bf16.mxu1 %v5840_v1  ;;  %v2322_v58 = vpop.permute.xlu0 %2321 }
 0xd5b   :  { %5665 = vtanh.f32 %v6314_v56 }
 0xd5d   :  { %5346 = vmatpush3.bf16.msra.mxu1 %v5975_v34 }
 0xd5e   :  { %5347 = vmatprep.subr.bf16.mxu1 %v5840_v1 }
 0xd60   :  { %4952 = vmatmul.mubr.msk.f32.vlgmr.msra.gmra.mrb[18].mxu1 %vm181_vm6, %v2164_v50 }
 0xd61   :  { %5349 = vmatpush3.bf16.msra.mxu1 %v5988_v45  ;;  %4962 = vmatprep.mubr.msk.f32.mxu1 %vm5841_vm0, %v5842_v2 }
 0xd62   :  { %5350 = vmatprep.subr.bf16.mxu1 %v5840_v1 }
 0xd65   :  { %v5666_v57 = vpop.eup %5665  ;;  %5352 = vmatpush3.bf16.msra.mxu1 %v5993_v49 }
 0xd66   :  { %v2327_v59 = vmul.f32 %v5666_v57, %v2322_v58  ;;  %5371 = vmatprep.subr.bf16.mxu1 %v5840_v1 }
 0xd68   :  { %4963 = vmatmul.mubr.msk.f32.vlgmr.msra.gmra.mrb[18].mxu1 %vm181_vm6, %v2327_v59 }
 0xd69   :  { %5373 = vmatpush3.bf16.msra.mxu1 %v5935_v9  ;;  %5006 = vmatprep.mubr.msk.f32.mxu1 %vm5841_vm0, %v5842_v2 }
 0xd6a   :  { %5374 = vmatprep.subr.bf16.mxu1 %v5840_v1 }
 0xd6d   :  { %5376 = vmatpush3.bf16.msra.mxu1 %v5939_v11 }
 0xd6e   :  { %5377 = vmatprep.subr.bf16.mxu1 %v5840_v1 }
 0xe2b   :  { %v2398_v61 = vpop.f32.mrb[16].mxu1 }
 0xe2c   :  { %v2402_v62 = vadd.f32 %v2398_v61, %v2328_v60  ;;  %v4942_v63 = vpop.f32.mrb[17].mxu1 }
 0xe2e   :  { %v4370_v0 = vmul.f32 -1.442695, %v2402_v62 }
 0xe30   :  { %5667 = vpow2.f32 %v4370_v0 }
 0xe31   :  { %5669 = vtanh.f32 %v2402_v62 }
 0xe3a   :  { %v5668_v3 = vpop.eup %5667 }
 0xe3b   :  { %v2407_v4 = vadd.f32 1.0, %v5668_v3  ;;  %v2561_v5 = vpop.f32.mrb[18].mxu1  ;;  %v5670_v12 = vpop.eup %5669 }
 0xe3c   :  { %v5481_v7 = vadd.f32 %v6340_v6, %v2561_v5  ;;  %v4964_v8 = vpop.f32.mrb[19].mxu1 }
 0xe3d   :  { %5671 = vrcp.f32 %v2407_v4 }
 0xe3e   :  { %v4373_v10 = vmul.f32 -1.442695, %v5481_v7 }
 0xe40   :  { %5673 = vpow2.f32 %v4373_v10 }
 0xe41   :  { %5675 = vtanh.f32 %v5481_v7 }
 0xe47   :  { %v5672_v13 = vpop.eup %5671 }
 0xe48   :  { %v2410_v14 = vsel %vm5965_vm5, %v5670_v12, %v5672_v13 }
 0xe49   :  { %2411 = vrot.lane.b32.xlu1 %v2410_v14, %s5844_s26  ;;  %2413 = vrot.lane.b32.xlu0 %v2410_v14, %s5845_s4 }
 0xe4a   :  { %v5674_v15 = vpop.eup %5673 }
 0xe4b   :  { %v2570_v16 = vadd.f32 1.0, %v5674_v15  ;;  %v5676_v17 = vpop.eup %5675 }
 0xe4d   :  { %5677 = vrcp.f32 %v2570_v16  ;;  %2415 = vrot.lane.b32.xlu1 %v2410_v14, %s5843_s25 }
 0xe57   :  { %v5678_v18 = vpop.eup %5677 }
 0xe58   :  { %v2573_v19 = vsel %vm5965_vm5, %v5676_v17, %v5678_v18  ;;  %v2842_v17 = vld [vmem:[#allocation2 + $0xb] sm:$0x1] }
 0xe59   :  { %2576 = vrot.lane.b32.xlu1 %v2573_v19, %s5845_s4  ;;  %2574 = vrot.lane.b32.xlu0 %v2573_v19, %s5844_s26 }
 0xe5d   :  { %2578 = vrot.lane.b32.xlu0 %v2573_v19, %s5843_s25 }
 0xebb   :  { %v2412_v20 = vpop.permute.xlu1 %2411  ;;  %v2414_v21 = vpop.permute.xlu0 %2413 }
 0xebc   :  { %v2417_v22 = vmul.f32 %v2412_v20, %v6309_v46  ;;  %v2418_v23 = vmul.f32 %v2414_v21, %v2410_v14 }
 0xebe   :  { %v6354_v24 = vadd.f32 %v2418_v23, %v2417_v22 }
 0xebf   :  { %v2416_v25 = vpop.permute.xlu1 %2415 }
 0xec0   :  { %5679 = vtanh.f32 %v6354_v24 }
 0xeca   :  { %v5680_v26 = vpop.eup %5679 }
 0xecb   :  { %v2421_v27 = vmul.f32 %v5680_v26, %v2416_v25  ;;  %v2577_v28 = vpop.permute.xlu1 %2576  ;;  %v2575_v31 = vpop.permute.xlu0 %2574 }
 0xecc   :  { %v2581_v32 = vmul.f32 %v2577_v28, %v2573_v19  ;;  %v2580_v33 = vmul.f32 %v2575_v31, %v6314_v56 }
 0xecd   :  { %4974 = vmatmul.mubr.msk.f32.vlgmr.msra.gmra.mrb[20].mxu0 %vm181_vm6, %v2421_v27 }
 0xece   :  { %v6359_v35 = vadd.f32 %v2581_v32, %v2580_v33  ;;  %5361 = vmatpush3.bf16.msra.mxu0 %v5969_v30  ;;  %4984 = vmatprep.mubr.msk.f32.mxu0 %vm5841_vm0, %v5842_v2 }
 0xecf   :  { %5362 = vmatprep.subr.bf16.mxu0 %v5840_v1  ;;  %v2579_v37 = vpop.permute.xlu0 %2578 }
 0xed0   :  { %5681 = vtanh.f32 %v6359_v35 }
 0xed2   :  { %5364 = vmatpush3.bf16.msra.mxu0 %v5975_v34 }
 0xed3   :  { %5365 = vmatprep.subr.bf16.mxu0 %v5840_v1 }
 0xed5   :  { %4985 = vmatmul.mubr.msk.f32.vlgmr.msra.gmra.mrb[22].mxu0 %vm181_vm6, %v2421_v27 }
 0xed6   :  { %5367 = vmatpush3.bf16.msra.mxu0 %v5988_v45  ;;  %4995 = vmatprep.mubr.msk.f32.mxu0 %vm5841_vm0, %v5842_v2 }
 0xed7   :  { %5368 = vmatprep.subr.bf16.mxu0 %v5840_v1 }
 0xeda   :  { %v5682_v36 = vpop.eup %5681  ;;  %5370 = vmatpush3.bf16.msra.mxu0 %v5993_v49 }
 0xedb   :  { %v2584_v38 = vmul.f32 %v5682_v36, %v2579_v37  ;;  %5389 = vmatprep.subr.bf16.mxu0 %v5840_v1 }
 0xedd   :  { %4996 = vmatmul.mubr.msk.f32.vlgmr.msra.gmra.mrb[22].mxu0 %vm181_vm6, %v2584_v38 }
 0xede   :  { %5391 = vmatpush3.bf16.msra.mxu0 %v5935_v9  ;;  %5039 = vmatprep.mubr.msk.f32.mxu0 %vm5841_vm0, %v5842_v2 }
 0xedf   :  { %5392 = vmatprep.subr.bf16.mxu0 %v5840_v1 }
 0xee2   :  { %5394 = vmatpush3.bf16.msra.mxu0 %v5939_v11 }
 0xee3   :  { %5395 = vmatprep.subr.bf16.mxu0 %v5840_v1 }
 0xfa0   :  { %v2655_v39 = vpop.f32.mrb[20].mxu0 }
 0xfa1   :  { %v2659_v40 = vadd.f32 %v2655_v39, %v2585_v55  ;;  %v4975_v41 = vpop.f32.mrb[21].mxu0 }
 0xfa3   :  { %v4375_v42 = vmul.f32 -1.442695, %v2659_v40 }
 0xfa5   :  { %5683 = vpow2.f32 %v4375_v42 }
 0xfa6   :  { %5685 = vtanh.f32 %v2659_v40 }
 0xfaf   :  { %v5684_v43 = vpop.eup %5683 }
 0xfb0   :  { %v2664_v44 = vadd.f32 1.0, %v5684_v43  ;;  %v2818_v46 = vpop.f32.mrb[22].mxu0  ;;  %v5686_v51 = vpop.eup %5685 }
 0xfb1   :  { %v5482_v47 = vadd.f32 %v6340_v6, %v2818_v46  ;;  %v4997_v48 = vpop.f32.mrb[23].mxu0 }
 0xfb2   :  { %5687 = vrcp.f32 %v2664_v44 }
 0xfb3   :  { %v4378_v50 = vmul.f32 -1.442695, %v5482_v47 }
 0xfb5   :  { %5689 = vpow2.f32 %v4378_v50 }
 0xfb6   :  { %5691 = vtanh.f32 %v5482_v47 }
 0xfbc   :  { %v5688_v52 = vpop.eup %5687 }
 0xfbd   :  { %v2667_v53 = vsel %vm5965_vm5, %v5686_v51, %v5688_v52 }
 0xfbe   :  { %2670 = vrot.lane.b32.xlu0 %v2667_v53, %s5845_s4  ;;  %2668 = vrot.lane.b32.xlu1 %v2667_v53, %s5844_s26 }
 0xfbf   :  { %v5690_v54 = vpop.eup %5689 }
 0xfc0   :  { %v2827_v56 = vadd.f32 1.0, %v5690_v54  ;;  %v5692_v57 = vpop.eup %5691 }
 0xfc2   :  { %5693 = vrcp.f32 %v2827_v56  ;;  %2672 = vrot.lane.b32.xlu1 %v2667_v53, %s5843_s25 }
 0xfcc   :  { %v5694_v58 = vpop.eup %5693 }
 0xfcd   :  { %v2830_v59 = vsel %vm5965_vm5, %v5692_v57, %v5694_v58  ;;  %v3099_v57 = vld [vmem:[#allocation2 + $0xc] sm:$0x1] }
 0xfce   :  { %2833 = vrot.lane.b32.xlu1 %v2830_v59, %s5845_s4  ;;  %2831 = vrot.lane.b32.xlu0 %v2830_v59, %s5844_s26 }
 0xfd2   :  { %2835 = vrot.lane.b32.xlu0 %v2830_v59, %s5843_s25 }
0x1030   :  { %v2671_v60 = vpop.permute.xlu0 %2670  ;;  %v2669_v61 = vpop.permute.xlu1 %2668 }
0x1031   :  { %v2675_v62 = vmul.f32 %v2671_v60, %v2667_v53  ;;  %v2674_v63 = vmul.f32 %v2669_v61, %v6354_v24 }
0x1033   :  { %v6394_v0 = vadd.f32 %v2675_v62, %v2674_v63 }
0x1034   :  { %v2673_v3 = vpop.permute.xlu1 %2672 }
0x1035   :  { %5695 = vtanh.f32 %v6394_v0 }
0x103f   :  { %v5696_v4 = vpop.eup %5695 }
0x1040   :  { %v2678_v5 = vmul.f32 %v5696_v4, %v2673_v3  ;;  %v2834_v7 = vpop.permute.xlu1 %2833  ;;  %v2832_v8 = vpop.permute.xlu0 %2831 }
0x1041   :  { %v2838_v10 = vmul.f32 %v2834_v7, %v2830_v59  ;;  %v2837_v12 = vmul.f32 %v2832_v8, %v6359_v35 }
0x1042   :  { %5007 = vmatmul.mubr.msk.f32.vlgmr.msra.gmra.mrb[20].mxu1 %vm181_vm6, %v2678_v5 }
0x1043   :  { %v6399_v13 = vadd.f32 %v2838_v10, %v2837_v12  ;;  %5379 = vmatpush3.bf16.msra.mxu1 %v5969_v30  ;;  %5017 = vmatprep.mubr.msk.f32.mxu1 %vm5841_vm0, %v5842_v2 }
0x1044   :  { %5380 = vmatprep.subr.bf16.mxu1 %v5840_v1  ;;  %v2836_v15 = vpop.permute.xlu0 %2835 }
0x1045   :  { %5697 = vtanh.f32 %v6399_v13 }
0x1047   :  { %5382 = vmatpush3.bf16.msra.mxu1 %v5975_v34 }
0x1048   :  { %5383 = vmatprep.subr.bf16.mxu1 %v5840_v1 }
0x104a   :  { %5018 = vmatmul.mubr.msk.f32.vlgmr.msra.gmra.mrb[22].mxu1 %vm181_vm6, %v2678_v5 }
0x104b   :  { %5385 = vmatpush3.bf16.msra.mxu1 %v5988_v45  ;;  %5028 = vmatprep.mubr.msk.f32.mxu1 %vm5841_vm0, %v5842_v2 }
0x104c   :  { %5386 = vmatprep.subr.bf16.mxu1 %v5840_v1 }
0x104f   :  { %v5698_v14 = vpop.eup %5697  ;;  %5388 = vmatpush3.bf16.msra.mxu1 %v5993_v49 }
0x1050   :  { %v2841_v16 = vmul.f32 %v5698_v14, %v2836_v15  ;;  %5407 = vmatprep.subr.bf16.mxu1 %v5840_v1 }
0x1052   :  { %5029 = vmatmul.mubr.msk.f32.vlgmr.msra.gmra.mrb[22].mxu1 %vm181_vm6, %v2841_v16 }
0x1053   :  { %5409 = vmatpush3.bf16.msra.mxu1 %v5935_v9  ;;  %5072 = vmatprep.mubr.msk.f32.mxu1 %vm5841_vm0, %v5842_v2 }
0x1054   :  { %5410 = vmatprep.subr.bf16.mxu1 %v5840_v1 }
0x1057   :  { %5412 = vmatpush3.bf16.msra.mxu1 %v5939_v11 }
0x1058   :  { %5413 = vmatprep.subr.bf16.mxu1 %v5840_v1 }
0x1115   :  { %v2912_v18 = vpop.f32.mrb[20].mxu1 }
0x1116   :  { %v2916_v19 = vadd.f32 %v2912_v18, %v2842_v17  ;;  %v5008_v20 = vpop.f32.mrb[21].mxu1 }
0x1118   :  { %v4380_v21 = vmul.f32 -1.442695, %v2916_v19 }
0x111a   :  { %5699 = vpow2.f32 %v4380_v21 }
0x111b   :  { %5701 = vtanh.f32 %v2916_v19 }
0x1124   :  { %v5700_v22 = vpop.eup %5699 }
0x1125   :  { %v2921_v23 = vadd.f32 1.0, %v5700_v22  ;;  %v3075_v24 = vpop.f32.mrb[22].mxu1  ;;  %v5702_v28 = vpop.eup %5701 }
0x1126   :  { %v5483_v25 = vadd.f32 %v6340_v6, %v3075_v24  ;;  %v5030_v26 = vpop.f32.mrb[23].mxu1 }
0x1127   :  { %5703 = vrcp.f32 %v2921_v23 }
0x1128   :  { %v4383_v27 = vmul.f32 -1.442695, %v5483_v25 }
0x112a   :  { %5705 = vpow2.f32 %v4383_v27 }
0x112b   :  { %5707 = vtanh.f32 %v5483_v25 }
0x1131   :  { %v5704_v31 = vpop.eup %5703 }
0x1132   :  { %v2924_v32 = vsel %vm5965_vm5, %v5702_v28, %v5704_v31 }
0x1133   :  { %2925 = vrot.lane.b32.xlu1 %v2924_v32, %s5844_s26  ;;  %2927 = vrot.lane.b32.xlu0 %v2924_v32, %s5845_s4 }
0x1134   :  { %v5706_v33 = vpop.eup %5705 }
0x1135   :  { %v3084_v35 = vadd.f32 1.0, %v5706_v33  ;;  %v5708_v36 = vpop.eup %5707 }
0x1137   :  { %5709 = vrcp.f32 %v3084_v35  ;;  %2929 = vrot.lane.b32.xlu1 %v2924_v32, %s5843_s25 }
0x1141   :  { %v5710_v37 = vpop.eup %5709 }
0x1142   :  { %v3087_v38 = vsel %vm5965_vm5, %v5708_v36, %v5710_v37  ;;  %v3356_v36 = vld [vmem:[#allocation2 + $0xd] sm:$0x1] }
0x1143   :  { %3090 = vrot.lane.b32.xlu1 %v3087_v38, %s5845_s4  ;;  %3088 = vrot.lane.b32.xlu0 %v3087_v38, %s5844_s26 }
0x1147   :  { %3092 = vrot.lane.b32.xlu0 %v3087_v38, %s5843_s25 }
0x11a5   :  { %v2926_v55 = vpop.permute.xlu1 %2925  ;;  %v2928_v39 = vpop.permute.xlu0 %2927 }
0x11a6   :  { %v2931_v40 = vmul.f32 %v2926_v55, %v6394_v0  ;;  %v2932_v41 = vmul.f32 %v2928_v39, %v2924_v32 }
0x11a8   :  { %v6434_v42 = vadd.f32 %v2932_v41, %v2931_v40 }
0x11a9   :  { %v2930_v43 = vpop.permute.xlu1 %2929 }
0x11aa   :  { %5711 = vtanh.f32 %v6434_v42 }
0x11b4   :  { %v5712_v44 = vpop.eup %5711 }
0x11b5   :  { %v2935_v46 = vmul.f32 %v5712_v44, %v2930_v43  ;;  %v3091_v47 = vpop.permute.xlu1 %3090  ;;  %v3089_v48 = vpop.permute.xlu0 %3088 }
0x11b6   :  { %v3095_v50 = vmul.f32 %v3091_v47, %v3087_v38  ;;  %v3094_v51 = vmul.f32 %v3089_v48, %v6399_v13 }
0x11b7   :  { %5040 = vmatmul.mubr.msk.f32.vlgmr.msra.gmra.mrb[24].mxu0 %vm181_vm6, %v2935_v46 }
0x11b8   :  { %v6439_v52 = vadd.f32 %v3095_v50, %v3094_v51  ;;  %5397 = vmatpush3.bf16.msra.mxu0 %v5969_v30  ;;  %5050 = vmatprep.mubr.msk.f32.mxu0 %vm5841_vm0, %v5842_v2 }
0x11b9   :  { %5398 = vmatprep.subr.bf16.mxu0 %v5840_v1  ;;  %v3093_v54 = vpop.permute.xlu0 %3092 }
0x11ba   :  { %5713 = vtanh.f32 %v6439_v52 }
0x11bc   :  { %5400 = vmatpush3.bf16.msra.mxu0 %v5975_v34 }
0x11bd   :  { %5401 = vmatprep.subr.bf16.mxu0 %v5840_v1 }
0x11bf   :  { %5051 = vmatmul.mubr.msk.f32.vlgmr.msra.gmra.mrb[26].mxu0 %vm181_vm6, %v2935_v46 }
0x11c0   :  { %5403 = vmatpush3.bf16.msra.mxu0 %v5988_v45  ;;  %5061 = vmatprep.mubr.msk.f32.mxu0 %vm5841_vm0, %v5842_v2 }
0x11c1   :  { %5404 = vmatprep.subr.bf16.mxu0 %v5840_v1 }
0x11c4   :  { %v5714_v53 = vpop.eup %5713  ;;  %5406 = vmatpush3.bf16.msra.mxu0 %v5993_v49 }
0x11c5   :  { %v3098_v56 = vmul.f32 %v5714_v53, %v3093_v54  ;;  %5425 = vmatprep.subr.bf16.mxu0 %v5840_v1 }
0x11c7   :  { %5062 = vmatmul.mubr.msk.f32.vlgmr.msra.gmra.mrb[26].mxu0 %vm181_vm6, %v3098_v56 }
0x11c8   :  { %5427 = vmatpush3.bf16.msra.mxu0 %v5935_v9  ;;  %5105 = vmatprep.mubr.msk.f32.mxu0 %vm5841_vm0, %v5842_v2 }
0x11c9   :  { %5428 = vmatprep.subr.bf16.mxu0 %v5840_v1 }
0x11cc   :  { %5430 = vmatpush3.bf16.msra.mxu0 %v5939_v11 }
0x11cd   :  { %5431 = vmatprep.subr.bf16.mxu0 %v5840_v1 }
0x128a   :  { %v3169_v58 = vpop.f32.mrb[24].mxu0 }
0x128b   :  { %v3173_v59 = vadd.f32 %v3169_v58, %v3099_v57  ;;  %v5041_v60 = vpop.f32.mrb[25].mxu0 }
0x128d   :  { %v4385_v61 = vmul.f32 -1.442695, %v3173_v59 }
0x128f   :  { %5715 = vpow2.f32 %v4385_v61 }
0x1290   :  { %5717 = vtanh.f32 %v3173_v59 }
0x1299   :  { %v5716_v62 = vpop.eup %5715 }
0x129a   :  { %v3178_v63 = vadd.f32 1.0, %v5716_v62  ;;  %v3332_v0 = vpop.f32.mrb[26].mxu0  ;;  %v5718_v7 = vpop.eup %5717 }
0x129b   :  { %v5484_v3 = vadd.f32 %v6340_v6, %v3332_v0  ;;  %v5063_v4 = vpop.f32.mrb[27].mxu0 }
0x129c   :  { %5719 = vrcp.f32 %v3178_v63 }
0x129d   :  { %v4388_v5 = vmul.f32 -1.442695, %v5484_v3 }
0x129f   :  { %5721 = vpow2.f32 %v4388_v5 }
0x12a0   :  { %5723 = vtanh.f32 %v5484_v3 }
0x12a6   :  { %v5720_v8 = vpop.eup %5719 }
0x12a7   :  { %v3181_v10 = vsel %vm5965_vm5, %v5718_v7, %v5720_v8 }
0x12a8   :  { %3184 = vrot.lane.b32.xlu0 %v3181_v10, %s5845_s4  ;;  %3182 = vrot.lane.b32.xlu1 %v3181_v10, %s5844_s26 }
0x12a9   :  { %v5722_v12 = vpop.eup %5721 }
0x12aa   :  { %v3341_v13 = vadd.f32 1.0, %v5722_v12  ;;  %v5724_v14 = vpop.eup %5723  ;;  %v3615_v12 = vld [vmem:[#allocation2 + $0xe] sm:$0x1] }
0x12ac   :  { %5725 = vrcp.f32 %v3341_v13  ;;  %3186 = vrot.lane.b32.xlu1 %v3181_v10, %s5843_s25 }
0x12b6   :  { %v5726_v15 = vpop.eup %5725 }
0x12b7   :  { %v3344_v16 = vsel %vm5965_vm5, %v5724_v14, %v5726_v15 }
0x12b8   :  { %3347 = vrot.lane.b32.xlu1 %v3344_v16, %s5845_s4  ;;  %3345 = vrot.lane.b32.xlu0 %v3344_v16, %s5844_s26 }
0x12bc   :  { %3349 = vrot.lane.b32.xlu0 %v3344_v16, %s5843_s25 }
0x131a   :  { %v3185_v17 = vpop.permute.xlu0 %3184  ;;  %v3183_v18 = vpop.permute.xlu1 %3182 }
0x131b   :  { %v3189_v19 = vmul.f32 %v3185_v17, %v3181_v10  ;;  %v3188_v20 = vmul.f32 %v3183_v18, %v6434_v42 }
0x131d   :  { %v6474_v21 = vadd.f32 %v3189_v19, %v3188_v20 }
0x131e   :  { %v3187_v22 = vpop.permute.xlu1 %3186 }
0x131f   :  { %5727 = vtanh.f32 %v6474_v21 }
0x1329   :  { %v5728_v23 = vpop.eup %5727 }
0x132a   :  { %v3192_v24 = vmul.f32 %v5728_v23, %v3187_v22  ;;  %v3348_v25 = vpop.permute.xlu1 %3347  ;;  %v3346_v26 = vpop.permute.xlu0 %3345 }
0x132b   :  { %v3352_v27 = vmul.f32 %v3348_v25, %v3344_v16  ;;  %v3351_v28 = vmul.f32 %v3346_v26, %v6439_v52 }
0x132c   :  { %5073 = vmatmul.mubr.msk.f32.vlgmr.msra.gmra.mrb[24].mxu1 %vm181_vm6, %v3192_v24 }
0x132d   :  { %v6479_v31 = vadd.f32 %v3352_v27, %v3351_v28  ;;  %5415 = vmatpush3.bf16.msra.mxu1 %v5969_v30  ;;  %5083 = vmatprep.mubr.msk.f32.mxu1 %vm5841_vm0, %v5842_v2 }
0x132e   :  { %5416 = vmatprep.subr.bf16.mxu1 %v5840_v1  ;;  %v3350_v33 = vpop.permute.xlu0 %3349 }
0x132f   :  { %5729 = vtanh.f32 %v6479_v31 }
0x1331   :  { %5418 = vmatpush3.bf16.msra.mxu1 %v5975_v34 }
0x1332   :  { %5419 = vmatprep.subr.bf16.mxu1 %v5840_v1 }
0x1334   :  { %5084 = vmatmul.mubr.msk.f32.vlgmr.msra.gmra.mrb[26].mxu1 %vm181_vm6, %v3192_v24 }
0x1335   :  { %5421 = vmatpush3.bf16.msra.mxu1 %v5988_v45  ;;  %5094 = vmatprep.mubr.msk.f32.mxu1 %vm5841_vm0, %v5842_v2 }
0x1336   :  { %5422 = vmatprep.subr.bf16.mxu1 %v5840_v1 }
0x1339   :  { %v5730_v32 = vpop.eup %5729  ;;  %5424 = vmatpush3.bf16.msra.mxu1 %v5993_v49 }
0x133a   :  { %v3355_v35 = vmul.f32 %v5730_v32, %v3350_v33  ;;  %5443 = vmatprep.subr.bf16.mxu1 %v5840_v1 }
0x133c   :  { %5095 = vmatmul.mubr.msk.f32.vlgmr.msra.gmra.mrb[26].mxu1 %vm181_vm6, %v3355_v35 }
0x133d   :  { %5445 = vmatpush3.bf16.msra.mxu1 %v5935_v9  ;;  %5138 = vmatprep.mubr.msk.f32.mxu1 %vm5841_vm0, %v5842_v2 }
0x133e   :  { %5446 = vmatprep.subr.bf16.mxu1 %v5840_v1 }
0x1341   :  { %5448 = vmatpush3.bf16.msra.mxu1 %v5939_v11 }
0x1342   :  { %5449 = vmatprep.subr.bf16.mxu1 %v5840_v1 }
0x13ff   :  { %v3426_v37 = vpop.f32.mrb[24].mxu1 }
0x1400   :  { %v3430_v38 = vadd.f32 %v3426_v37, %v3356_v36  ;;  %v5074_v55 = vpop.f32.mrb[25].mxu1 }
0x1402   :  { %v4390_v39 = vmul.f32 -1.442695, %v3430_v38 }
0x1404   :  { %5731 = vpow2.f32 %v4390_v39 }
0x1405   :  { %5733 = vtanh.f32 %v3430_v38 }
0x140e   :  { %v5732_v40 = vpop.eup %5731 }
0x140f   :  { %v3435_v41 = vadd.f32 1.0, %v5732_v40  ;;  %v3589_v42 = vpop.f32.mrb[26].mxu1  ;;  %v5734_v46 = vpop.eup %5733 }
0x1410   :  { %v5485_v9 = vadd.f32 %v6340_v6, %v3589_v42  ;;  %v5096_v43 = vpop.f32.mrb[27].mxu1 }
0x1411   :  { %5735 = vrcp.f32 %v3435_v41 }
0x1412   :  { %v4393_v44 = vmul.f32 -1.442695, %v5485_v9 }
0x1414   :  { %5737 = vpow2.f32 %v4393_v44 }
0x1415   :  { %5739 = vtanh.f32 %v5485_v9 }
0x141b   :  { %v5736_v11 = vpop.eup %5735 }
0x141c   :  { %v3438_v47 = vsel %vm5965_vm5, %v5734_v46, %v5736_v11 }
0x141d   :  { %3439 = vrot.lane.b32.xlu1 %v3438_v47, %s5844_s26  ;;  %3441 = vrot.lane.b32.xlu0 %v3438_v47, %s5845_s4 }
0x141e   :  { %v5738_v48 = vpop.eup %5737 }
0x141f   :  { %v3598_v50 = vadd.f32 1.0, %v5738_v48  ;;  %v5740_v51 = vpop.eup %5739 }
0x1421   :  { %5741 = vrcp.f32 %v3598_v50  ;;  %3443 = vrot.lane.b32.xlu1 %v3438_v47, %s5843_s25 }
0x142b   :  { %v5742_v52 = vpop.eup %5741 }
0x142c   :  { %v3601_v53 = vsel %vm5965_vm5, %v5740_v51, %v5742_v52 }
0x142d   :  { %3604 = vrot.lane.b32.xlu1 %v3601_v53, %s5845_s4  ;;  %3602 = vrot.lane.b32.xlu0 %v3601_v53, %s5844_s26 }
0x1431   :  { %3606 = vrot.lane.b32.xlu0 %v3601_v53, %s5843_s25 }
0x148f   :  { %v3440_v54 = vpop.permute.xlu1 %3439  ;;  %v3442_v56 = vpop.permute.xlu0 %3441 }
0x1490   :  { %v3445_v57 = vmul.f32 %v3440_v54, %v6474_v21  ;;  %v3446_v58 = vmul.f32 %v3442_v56, %v3438_v47 }
0x1492   :  { %v6514_v59 = vadd.f32 %v3446_v58, %v3445_v57 }
0x1493   :  { %v3444_v60 = vpop.permute.xlu1 %3443 }
0x1494   :  { %5743 = vtanh.f32 %v6514_v59 }
0x149e   :  { %v5744_v61 = vpop.eup %5743 }
0x149f   :  { %v3449_v62 = vmul.f32 %v5744_v61, %v3444_v60  ;;  %v3605_v63 = vpop.permute.xlu1 %3604  ;;  %v3603_v0 = vpop.permute.xlu0 %3602 }
0x14a0   :  { %v3609_v3 = vmul.f32 %v3605_v63, %v3601_v53  ;;  %v3608_v4 = vmul.f32 %v3603_v0, %v6479_v31 }
0x14a1   :  { %5106 = vmatmul.mubr.msk.f32.vlgmr.msra.gmra.mrb[28].mxu0 %vm181_vm6, %v3449_v62 }
0x14a2   :  { %v6519_v5 = vadd.f32 %v3609_v3, %v3608_v4  ;;  %5433 = vmatpush3.bf16.msra.mxu0 %v5969_v30  ;;  %5116 = vmatprep.mubr.msk.f32.mxu0 %vm5841_vm0, %v5842_v2 }
0x14a3   :  { %5434 = vmatprep.subr.bf16.mxu0 %v5840_v1  ;;  %v3607_v8 = vpop.permute.xlu0 %3606 }
0x14a4   :  { %5745 = vtanh.f32 %v6519_v5 }
0x14a6   :  { %5436 = vmatpush3.bf16.msra.mxu0 %v5975_v34 }
0x14a7   :  { %5437 = vmatprep.subr.bf16.mxu0 %v5840_v1 }
0x14a9   :  { %5117 = vmatmul.mubr.msk.f32.vlgmr.msra.gmra.mrb[30].mxu0 %vm181_vm6, %v3449_v62 }
0x14aa   :  { %5439 = vmatpush3.bf16.msra.mxu0 %v5988_v45  ;;  %5127 = vmatprep.mubr.msk.f32.mxu0 %vm5841_vm0, %v5842_v2 }
0x14ab   :  { %5440 = vmatprep.subr.bf16.mxu0 %v5840_v1 }
0x14ae   :  { %v5746_v7 = vpop.eup %5745  ;;  %5442 = vmatpush3.bf16.msra.mxu0 %v5993_v49 }
0x14af   :  { %v3612_v10 = vmul.f32 %v5746_v7, %v3607_v8  ;;  %5461 = vmatprep.subr.bf16.mxu0 %v5840_v1 }
0x14b1   :  { %3614 = vst.msk [vmem:[#allocation3] sm:$0x1] %vm3613_vm7, %v3612_v10  ;;  %5128 = vmatmul.mubr.msk.f32.vlgmr.msra.gmra.mrb[30].mxu0 %vm181_vm6, %v3612_v10 }
0x14b2   :  { %5463 = vmatpush3.bf16.msra.mxu0 %v5969_v30  ;;  %5171 = vmatprep.mubr.msk.f32.mxu0 %vm5841_vm0, %v5842_v2 }
0x14b3   :  { %5464 = vmatprep.subr.bf16.mxu0 %v5840_v1 }
0x14b6   :  { %5466 = vmatpush3.bf16.msra.mxu0 %v5975_v34 }
0x14b7   :  { %5467 = vmatprep.subr.bf16.mxu0 %v5840_v1 }
0x1574   :  { %v3685_v13 = vpop.f32.mrb[28].mxu0 }
0x1575   :  { %v3689_v14 = vadd.f32 %v3685_v13, %v3615_v12  ;;  %v5107_v15 = vpop.f32.mrb[29].mxu0 }
0x1577   :  { %v4395_v16 = vmul.f32 -1.442695, %v3689_v14 }
0x1579   :  { %5747 = vpow2.f32 %v4395_v16 }
0x157a   :  { %5749 = vtanh.f32 %v3689_v14 }
0x1583   :  { %v5748_v17 = vpop.eup %5747 }
0x1584   :  { %v3694_v18 = vadd.f32 1.0, %v5748_v17  ;;  %v3848_v19 = vpop.f32.mrb[30].mxu0  ;;  %v5750_v23 = vpop.eup %5749 }
0x1585   :  { %v5486_v20 = vadd.f32 %v6340_v6, %v3848_v19  ;;  %v5129_v21 = vpop.f32.mrb[31].mxu0 }
0x1586   :  { %5751 = vrcp.f32 %v3694_v18 }
0x1587   :  { %v4398_v22 = vmul.f32 -1.442695, %v5486_v20 }
0x1589   :  { %5753 = vpow2.f32 %v4398_v22 }
0x158a   :  { %5755 = vtanh.f32 %v5486_v20 }
0x1590   :  { %v5752_v24 = vpop.eup %5751 }
0x1591   :  { %v3697_v25 = vsel %vm5965_vm5, %v5750_v23, %v5752_v24 }
0x1592   :  { %3700 = vrot.lane.b32.xlu0 %v3697_v25, %s5845_s4  ;;  %3698 = vrot.lane.b32.xlu1 %v3697_v25, %s5844_s26 }
0x1593   :  { %v5754_v26 = vpop.eup %5753 }
0x1594   :  { %v3857_v27 = vadd.f32 1.0, %v5754_v26  ;;  %v5756_v28 = vpop.eup %5755 }
0x1596   :  { %5757 = vrcp.f32 %v3857_v27  ;;  %3702 = vrot.lane.b32.xlu1 %v3697_v25, %s5843_s25 }
0x15a0   :  { %v5758_v31 = vpop.eup %5757 }
0x15a1   :  { %v3860_v32 = vsel %vm5965_vm5, %v5756_v28, %v5758_v31 }
0x15a2   :  { %3863 = vrot.lane.b32.xlu1 %v3860_v32, %s5845_s4  ;;  %3861 = vrot.lane.b32.xlu0 %v3860_v32, %s5844_s26 }
0x15a6   :  { %3865 = vrot.lane.b32.xlu0 %v3860_v32, %s5843_s25 }
0x1604   :  { %v3701_v33 = vpop.permute.xlu0 %3700  ;;  %v3699_v35 = vpop.permute.xlu1 %3698 }
0x1605   :  { %v3705_v36 = vmul.f32 %v3701_v33, %v3697_v25  ;;  %v3704_v37 = vmul.f32 %v3699_v35, %v6514_v59 }
0x1607   :  { %v3706_v38 = vadd.f32 %v3705_v36, %v3704_v37 }
0x1608   :  { %v3703_v55 = vpop.permute.xlu1 %3702 }
0x1609   :  { %5759 = vtanh.f32 %v3706_v38 }
0x1613   :  { %v5760_v39 = vpop.eup %5759 }
0x1614   :  { %v3708_v40 = vmul.f32 %v5760_v39, %v3703_v55  ;;  %v3864_v41 = vpop.permute.xlu1 %3863  ;;  %v3862_v42 = vpop.permute.xlu0 %3861 }
0x1615   :  { %v3868_v9 = vmul.f32 %v3864_v41, %v3860_v32  ;;  %v3867_v43 = vmul.f32 %v3862_v42, %v6519_v5  ;;  %v4408_v41 = vld [vmem:[#allocation4] ss:$0 sm:$0xff] }
0x1616   :  { %5139 = vmatmul.mubr.msk.f32.vlgmr.msra.gmra.mrb[28].mxu1 %vm181_vm6, %v3708_v40 }
0x1617   :  { %v3869_v44 = vadd.f32 %v3868_v9, %v3867_v43  ;;  %5451 = vmatpush3.bf16.msra.mxu1 %v5969_v30  ;;  %5149 = vmatprep.mubr.msk.f32.mxu1 %vm5841_vm0, %v5842_v2 }
0x1618   :  { %5452 = vmatprep.subr.bf16.mxu1 %v5840_v1  ;;  %v3866_v46 = vpop.permute.xlu0 %3865 }
0x1619   :  { %5761 = vtanh.f32 %v3869_v44 }
0x161b   :  { %5454 = vmatpush3.bf16.msra.mxu1 %v5975_v34  ;;  %v3873_v34 = vld [vmem:[#allocation2 + $0xf] sm:$0x1] }
0x161c   :  { %5455 = vmatprep.subr.bf16.mxu1 %v5840_v1 }
0x161e   :  { %5150 = vmatmul.mubr.msk.f32.vlgmr.msra.gmra.mrb[30].mxu1 %vm181_vm6, %v3708_v40 }
0x161f   :  { %5457 = vmatpush3.bf16.msra.mxu1 %v5988_v45  ;;  %5160 = vmatprep.mubr.msk.f32.mxu1 %vm5841_vm0, %v5842_v2 }
0x1620   :  { %5458 = vmatprep.subr.bf16.mxu1 %v5840_v1 }
0x1623   :  { %v5762_v30 = vpop.eup %5761  ;;  %5460 = vmatpush3.bf16.msra.mxu1 %v5993_v49 }
0x1624   :  { %v3871_v11 = vmul.f32 %v5762_v30, %v3866_v46 }
0x1626   :  { %3872 = vst.msk [vmem:[#allocation3 + $0x1] sm:$0x1] %vm3613_vm7, %v3871_v11  ;;  %5161 = vmatmul.mubr.msk.f32.vlgmr.msra.gmra.mrb[30].mxu1 %vm181_vm6, %v3871_v11 }
0x16e9   :  { %v3943_v47 = vpop.f32.mrb[28].mxu1 }
0x16ea   :  { %v3947_v48 = vadd.f32 %v3943_v47, %v3873_v34  ;;  %v5140_v50 = vpop.f32.mrb[29].mxu1 }
0x16ec   :  { %v4400_v51 = vmul.f32 -1.442695, %v3947_v48 }
0x16ee   :  { %5763 = vpow2.f32 %v4400_v51 }
0x16ef   :  { %5765 = vtanh.f32 %v3947_v48 }
0x16f8   :  { %v5764_v52 = vpop.eup %5763 }
0x16f9   :  { %v3952_v53 = vadd.f32 1.0, %v5764_v52  ;;  %v4106_v54 = vpop.f32.mrb[30].mxu1  ;;  %v5766_v59 = vpop.eup %5765 }
0x16fa   :  { %v5487_v56 = vadd.f32 %v6340_v6, %v4106_v54  ;;  %v5162_v57 = vpop.f32.mrb[31].mxu1 }
0x16fb   :  { %5767 = vrcp.f32 %v3952_v53 }
0x16fc   :  { %v4403_v58 = vmul.f32 -1.442695, %v5487_v56 }
0x16fe   :  { %5769 = vpow2.f32 %v4403_v58 }
0x16ff   :  { %5771 = vtanh.f32 %v5487_v56 }
0x1705   :  { %v5768_v60 = vpop.eup %5767 }
0x1706   :  { %v3955_v61 = vsel %vm5965_vm5, %v5766_v59, %v5768_v60 }
0x1707   :  { %3956 = vrot.lane.b32.xlu1 %v3955_v61, %s5844_s26  ;;  %3958 = vrot.lane.b32.xlu0 %v3955_v61, %s5845_s4 }
0x1708   :  { %v5770_v62 = vpop.eup %5769 }
0x1709   :  { %v4115_v63 = vadd.f32 1.0, %v5770_v62  ;;  %v5772_v0 = vpop.eup %5771 }
0x170b   :  { %5773 = vrcp.f32 %v4115_v63 }
0x1715   :  { %v5774_v3 = vpop.eup %5773 }
0x1716   :  { %v4118_v4 = vsel %vm5965_vm5, %v5772_v0, %v5774_v3 }
0x1717   :  { %4121 = vrot.lane.b32.xlu0 %v4118_v4, %s5845_s4  ;;  %4119 = vrot.lane.b32.xlu1 %v4118_v4, %s5844_s26 }
0x171b   :  { %4123 = vrot.lane.b32.xlu0 %v4118_v4, %s5843_s25  ;;  %3960 = vrot.lane.b32.xlu1 %v3955_v61, %s5843_s25 }
0x1779   :  { %v3957_v5 = vpop.permute.xlu1 %3956  ;;  %v3959_v7 = vpop.permute.xlu0 %3958 }
0x177a   :  { %v3962_v8 = vmul.f32 %v3957_v5, %v3706_v38  ;;  %v3963_v10 = vmul.f32 %v3959_v7, %v3955_v61 }
0x177c   :  { %v3964_v12 = vadd.f32 %v3963_v10, %v3962_v8 }
0x177e   :  { %5775 = vtanh.f32 %v3964_v12 }
0x1788   :  { %v5776_v18 = vpop.eup %5775 }
0x1789   :  { %v4120_v13 = vpop.permute.xlu1 %4119  ;;  %v4122_v14 = vpop.permute.xlu0 %4121 }
0x178a   :  { %v4125_v15 = vmul.f32 %v4120_v13, %v3869_v44  ;;  %v4126_v16 = vmul.f32 %v4122_v14, %v4118_v4 }
0x178c   :  { %v4127_v17 = vadd.f32 %v4126_v16, %v4125_v15 }
0x178d   :  { %v3961_v19 = vpop.permute.xlu1 %3960  ;;  %v4124_v22 = vpop.permute.xlu0 %4123 }
0x178e   :  { %5777 = vtanh.f32 %v4127_v17  ;;  %v3966_v20 = vmul.f32 %v5776_v18, %v3961_v19 }
0x1790   :  { %5172 = vmatmul.mubr.msk.f32.vlgmr.msra.gmra.mrb[32].mxu0 %vm181_vm6, %v3966_v20 }
0x1791   :  { %5469 = vmatpush3.bf16.msra.mxu0 %v5988_v45  ;;  %5182 = vmatprep.mubr.msk.f32.mxu0 %vm5841_vm0, %v5842_v2 }
0x1792   :  { %5470 = vmatprep.subr.bf16.mxu0 %v5840_v1 }
0x1795   :  { %5472 = vmatpush3.bf16.msra.mxu0 %v5993_v49 }
0x1798   :  { %v5778_v21 = vpop.eup %5777 }
0x1799   :  { %v4129_v23 = vmul.f32 %v5778_v21, %v4124_v22 }
0x179b   :  { %4130 = vst.msk [vmem:[#allocation3 + $0x2] sm:$0x1] %vm3613_vm7, %v4129_v23  ;;  %5183 = vmatmul.mubr.msk.f32.vlgmr.msra.gmra.mrb[32].mxu0 %vm181_vm6, %v4129_v23 }
0x186e   :  { %v4273_v24 = vpop.f32.mrb[32].mxu0 }
0x186f   :  { %v5488_v25 = vadd.f32 %v6340_v6, %v4273_v24  ;;  %v5184_v26 = vpop.f32.mrb[33].mxu0 }
0x1871   :  { %v4406_v27 = vmul.f32 -1.442695, %v5488_v25 }
0x1873   :  { %5779 = vpow2.f32 %v4406_v27 }
0x1874   :  { %5781 = vtanh.f32 %v5488_v25 }
0x187d   :  { %v5780_v45 = vpop.eup %5779 }
0x187e   :  { %v4282_v28 = vadd.f32 1.0, %v5780_v45  ;;  %v5782_v1 = vpop.eup %5781 }
0x1880   :  { %5783 = vrcp.f32 %v4282_v28 }
0x188a   :  { %v5784_v2 = vpop.eup %5783 }
0x188b   :  { %v4285_v49 = vsel %vm5965_vm5, %v5782_v1, %v5784_v2 }
0x188c   :  { %4288 = vrot.lane.b32.xlu0 %v4285_v49, %s5845_s4  ;;  %4286 = vrot.lane.b32.xlu1 %v4285_v49, %s5844_s26 }
0x1890   :  { %4290 = vrot.lane.b32.xlu1 %v4285_v49, %s5843_s25 }
0x18fe   :  { %v4289_v31 = vpop.permute.xlu0 %4288  ;;  %v4287_v6 = vpop.permute.xlu1 %4286 }
0x18ff   :  { %v4293_v32 = vmul.f32 %v4289_v31, %v4285_v49  ;;  %v4292_v33 = vmul.f32 %v4287_v6, %v4127_v17 }
0x1901   :  { %v4294_v35 = vadd.f32 %v4293_v32, %v4292_v33 }
0x1902   :  { %v4291_v37 = vpop.permute.xlu1 %4290 }
0x1903   :  { %5785 = vtanh.f32 %v4294_v35 }
0x190d   :  { %v5786_v36 = vpop.eup %5785 }
0x190e   :  { %v4296_v38 = vmul.f32 %v5786_v36, %v4291_v37 }
0x1910   :  { %4297 = vst.msk [vmem:[#allocation3 + $0x3] sm:$0x1] %vm3613_vm7, %v4296_v38 }
0x1917   :  { %v4298_v55 = vld [vmem:[#allocation3] sm:$0xf] }
0x1918   :  { %v4305_v39 = vmul.f32 %v4407_v29, %v4298_v55 }
0x191a   :  { %v4307_v40 = vsel %vm4306_vm8, %v4305_v39, 0.0 }
0x191b   :  { %4308 = vadd.xlane.f32.xlu0 %v4307_v40 }
0x19a8   :  { %v4309_v42 = vpop.xlane.xlu0 %4308 }
0x19a9   :  { %v4316_v9 = vadd.f32 %v4408_v41, %v4309_v42 }
0x19ab   :  { %4318 = vst.msk [vmem:[%s6612_s9] sm:$0xf] %vm4317_vm9, %v4316_v9 }
0x19ac   :  { %4323 = vsyncpa [#allocation6], 1 }
0x19ad   :  { %4324 = vsyncpa [#allocation8], 1 }

</bundles_post_ra>
